<compile_context>
chip_gen: v7x
topology: tpu7x:2x2x1
jax: 0.10.0
libtpu: 0.0.40
codegen_flags: <defaults>
</compile_context>

<pallas_src>
import functools

import jax
import jax.numpy as jnp
from jax import lax
from jax.experimental import pallas as pl
from jax.experimental.pallas import tpu as pltpu


# --------------------------------------------------------------------------- #
# Kernel
# --------------------------------------------------------------------------- #
def se_bottleneck_kernel(x_ref, w1_ref, b1_ref, w2_ref, b2_ref, w3_ref, b3_ref,
                         fc1w_ref, fc1b_ref, fc2w_ref, fc2b_ref,
                         o_ref, pad_ref, *, B, H, W, dilation):
    """One grid step == B images (b_tile), fully resident in VMEM.

    Activations flow as flat (M, C) slabs with channels on the lane axis
    (matmul-ready).  All matmuls use the MXU with f32 accumulation; BN scales
    are pre-folded into the conv weights, only per-channel bias adds remain.
    """
    P = w1_ref.shape[1]                  # planes
    C4 = w3_ref.shape[1]                 # planes * 4 (== inplanes)
    d = dilation
    M = B * H * W
    mm_dtype = w1_ref.dtype              # MXU compute dtype (bf16 or f32)

    # ---- conv1 (1x1, bn1 scale folded into w1) + bias + relu ----------------
    # x is NOT kept live as f32 across the body; it is re-read from VMEM right
    # before the residual add (short live range -> less internal VMEM/spill).
    h1 = jnp.dot(x_ref[...].astype(mm_dtype), w1_ref[...],
                 preferred_element_type=jnp.float32)
    h1 = jnp.maximum(h1 + b1_ref[...], 0.0)                       # (M, P) f32

    # ---- conv2 (3x3, padding=dilation, dilation=dilation), bn2 folded -------
    # Padded feature map lives in a VMEM scratch in the matmul dtype (bf16 by
    # default), halving the vld/vst work of the window build.
    # INVARIANT: both the d-wide border AND the interior are rewritten every
    # grid step, so the persistent scratch stays correct when the batch axis is
    # megacore-split under dimension_semantics=("parallel",). Do not "optimize"
    # the border zeroing behind pl.when(program_id == 0).
    zrow = jnp.zeros((B, d, W + 2 * d, P), pad_ref.dtype)
    zcol = jnp.zeros((B, H, d, P), pad_ref.dtype)
    pad_ref[:, 0:d, :, :] = zrow
    pad_ref[:, d + H:2 * d + H, :, :] = zrow
    pad_ref[:, d:d + H, 0:d, :] = zcol
    pad_ref[:, d:d + H, d + W:2 * d + W, :] = zcol
    pad_ref[:, d:d + H, d:d + W, :] = h1.reshape(B, H, W, P).astype(pad_ref.dtype)

    if P < 128:
        # Small planes: one im2col matmul with K = 9P (avoids nine degenerate
        # K=P slivers on the MXU).
        cols = []
        for ky in range(3):
            for kx in range(3):
                win = pad_ref[:, ky * d:ky * d + H, kx * d:kx * d + W, :]
                cols.append(win.reshape(M, P))
        col = jnp.concatenate(cols, axis=-1)                      # (M, 9P) mm_dtype
        h2 = jnp.dot(col, w2_ref[...], preferred_element_type=jnp.float32)
    else:
        # Large planes: accumulate nine K=P matmuls straight from the shifted
        # windows — no (M, 9P) col buffer, no lane concat (frees vst/vld/VMEM).
        h2 = jnp.zeros((M, P), jnp.float32)
        for ky in range(3):
            for kx in range(3):
                t = ky * 3 + kx
                win = pad_ref[:, ky * d:ky * d + H, kx * d:kx * d + W, :]
                h2 = h2 + jnp.dot(win.reshape(M, P),
                                  w2_ref[t * P:(t + 1) * P, :],
                                  preferred_element_type=jnp.float32)
    h2 = jnp.maximum(h2 + b2_ref[...], 0.0)                       # (M, P) f32

    # ---- conv3 (1x1, bn3 scale folded) + bias --------------------------------
    h3 = jnp.dot(h2.astype(mm_dtype), w3_ref[...],
                 preferred_element_type=jnp.float32)
    h3 = h3 + b3_ref[...]                                         # (M, C4) f32

    # ---- SE: avgpool -> fc1 -> relu -> fc2 -> sigmoid -> scale --------------
    h3b = h3.reshape(B, H * W, C4)
    y = jnp.mean(h3b, axis=1)                                     # (B, C4) f32
    if C4 >= 256:
        # Realistic widths: run the two FCs on the MXU (y @ W.T form, f32 acc)
        # instead of building (B, hidden, C4) temps on the VPU/XLU.
        z = lax.dot_general(y, fc1w_ref[...], (((1,), (1,)), ((), ())),
                            preferred_element_type=jnp.float32)   # (B, hidden)
        z = jnp.maximum(z + fc1b_ref[...], 0.0)
        s = lax.dot_general(z, fc2w_ref[...], (((1,), (1,)), ((), ())),
                            preferred_element_type=jnp.float32)   # (B, C4)
    else:
        # Tiny widths: degenerate MXU matmuls waste the array; keep this on the
        # VPU/XLU (broadcast multiply + cross-lane reduce).
        z = jnp.sum(y[:, None, :] * fc1w_ref[...][None, :, :], axis=-1)
        z = jnp.maximum(z + fc1b_ref[...], 0.0)
        s = jnp.sum(z[:, None, :] * fc2w_ref[...][None, :, :], axis=-1)
    s = jax.nn.sigmoid(s + fc2b_ref[...])                         # (B, C4)
    out = (h3b * s[:, None, :]).reshape(M, C4)

    # ---- residual add (downsample=None => C == C4) + final relu -------------
    out = jnp.maximum(out + x_ref[...].astype(jnp.float32), 0.0)
    # TODO(synk): for C4 < 128 a lane-dense (rows, k*128) output slab would
    # avoid masked vst; all realistic SE-ResNet widths (C4 >= 256) are already
    # lane-dense, so the direct store is kept.
    o_ref[...] = out.astype(o_ref.dtype)


# --------------------------------------------------------------------------- #
# VMEM budgeting / batch-tile selection
# --------------------------------------------------------------------------- #
def _vmem_budget_bytes():
    # Physical VMEM differs per generation (v5e/v6e: 128 MiB, v7x: 64 MiB);
    # budget ~75% of it and pass that as the Mosaic scoped-vmem limit.
    try:
        phys = int(getattr(pltpu.get_tpu_info(), "vmem_capacity_bytes",
                           64 * 1024 * 1024))
    except Exception:   # interpret mode / older runtime
        phys = 64 * 1024 * 1024
    return (phys * 3) // 4


def _pick_b_tile(N, H, W, C, P, C4, hidden, mm_bytes, io_bytes, dilation, budget):
    """Largest batch tile whose working set fits `budget`, preferring >= 2 grid
    steps (megacore) and a b_tile*H*W row count that is a multiple of 8."""
    def vmem_estimate(bt):
        M = bt * H * W
        pad = bt * (H + 2 * dilation) * (W + 2 * dilation) * P * mm_bytes
        io = 2 * M * C * io_bytes + 2 * M * C4 * io_bytes          # dbl-buffered blocks
        wts = 2 * ((C * P + 9 * P * P + P * C4) * mm_bytes
                   + (2 * hidden * C4 + hidden + 2 * C4 + 2 * P) * 4)
        col = M * 9 * P * mm_bytes if P < 128 else 0
        live = 2 * M * P * 4 + 2 * M * C4 * 4 + col                # h1/h2 + h3/out + col
        return pad + io + wts + live

    cands = [bt for bt in range(1, N + 1)
             if N % bt == 0 and ((bt * H * W) % 8 == 0 or bt == N)]
    fitting = [bt for bt in cands if vmem_estimate(bt) <= budget] or [cands[0]]
    multi_step = [bt for bt in fitting if N // bt >= 2]            # keep both TCs busy
    return max(multi_step) if multi_step else max(fitting)


# --------------------------------------------------------------------------- #
# Wrapper (NHWC, transpose-free)
# --------------------------------------------------------------------------- #
def se_bottleneck_pallas(x_nhwc, kp, *, dilation=1, b_tile=None, out_dtype=None,
                         vmem_budget_bytes=None):
    """x_nhwc: (N, H, W, C) channels-last.  Keeping the surrounding network in
    NHWC makes the entry/exit reshapes free views — no HBM transpose passes."""
    N, H, W, C = x_nhwc.shape
    P = kp["w1"].shape[1]
    C4 = kp["w3"].shape[1]
    hidden = kp["fc1w"].shape[0]
    assert C == C4, "downsample=None / stride=1 path requires inplanes == 4*planes"
    out_dtype = x_nhwc.dtype if out_dtype is None else out_dtype

    if vmem_budget_bytes is None:
        vmem_budget_bytes = _vmem_budget_bytes()
    mm_bytes = kp["w1"].dtype.itemsize
    io_bytes = max(x_nhwc.dtype.itemsize, jnp.dtype(out_dtype).itemsize)
    if b_tile is None:
        b_tile = _pick_b_tile(N, H, W, C, P, C4, hidden, mm_bytes, io_bytes,
                              dilation, vmem_budget_bytes)
    assert N % b_tile == 0, "batch must be divisible by b_tile"
    M = b_tile * H * W
    assert M % 8 == 0 or b_tile == N, "b_tile*H*W must be a multiple of 8"

    x = x_nhwc.reshape(N * H * W, C)      # free view: NHWC is already channels-last

    grid_spec = pltpu.PrefetchScalarGridSpec(
        num_scalar_prefetch=0,
        grid=(N // b_tile,),
        in_specs=[
            pl.BlockSpec((M, C), lambda i: (i, 0)),                # x rows
            pl.BlockSpec(kp["w1"].shape, lambda i: (0, 0)),        # w1 (bn1 folded)
            pl.BlockSpec(kp["b1"].shape, lambda i: (0, 0)),        # bn1 shift
            pl.BlockSpec(kp["w2"].shape, lambda i: (0, 0)),        # w2 im2col (bn2 folded)
            pl.BlockSpec(kp["b2"].shape, lambda i: (0, 0)),        # bn2 shift
            pl.BlockSpec(kp["w3"].shape, lambda i: (0, 0)),        # w3 (bn3 folded)
            pl.BlockSpec(kp["b3"].shape, lambda i: (0, 0)),        # bn3 shift
            pl.BlockSpec(kp["fc1w"].shape, lambda i: (0, 0)),      # fc1 w (hidden, C4)
            pl.BlockSpec(kp["fc1b"].shape, lambda i: (0, 0)),      # fc1 b
            pl.BlockSpec(kp["fc2w"].shape, lambda i: (0, 0)),      # fc2 w (C4, hidden)
            pl.BlockSpec(kp["fc2b"].shape, lambda i: (0, 0)),      # fc2 b
        ],
        out_specs=pl.BlockSpec((M, C4), lambda i: (i, 0)),
        scratch_shapes=[
            pltpu.VMEM((b_tile, H + 2 * dilation, W + 2 * dilation, P),
                       kp["w1"].dtype),                            # padded conv2 input
        ],
    )

    out = pl.pallas_call(
        functools.partial(se_bottleneck_kernel, B=b_tile, H=H, W=W,
                          dilation=dilation),
        out_shape=jax.ShapeDtypeStruct((N * H * W, C4), out_dtype),
        grid_spec=grid_spec,
        compiler_params=pltpu.CompilerParams(
            dimension_semantics=("parallel",),          # batch tiles: megacore-splittable
            vmem_limit_bytes=int(vmem_budget_bytes)),
    )(x, kp["w1"], kp["b1"], kp["w2"], kp["b2"], kp["w3"], kp["b3"],
      kp["fc1w"], kp["fc1b"], kp["fc2w"], kp["fc2b"])

    return out.reshape(N, H, W, C4)       # free view: stays NHWC


# --------------------------------------------------------------------------- #
# Deterministic parameter construction (torch layouts) and conversion to the
# kernel layout (BN folded into conv weights in f32, then cast; im2col taps).
# --------------------------------------------------------------------------- #
def make_torch_params(key, inplanes, planes, reduction):
    C4 = planes * 4
    hidden = C4 // reduction
    ks = jax.random.split(key, 16)

    def nrm(k, shape, scale=0.1):
        return scale * jax.random.normal(k, shape, jnp.float32)

    def bn_params(k, c):
        k1, k2, k3, k4 = jax.random.split(k, 4)
        gamma = jax.random.uniform(k1, (c,), jnp.float32, 0.5, 1.5)
        beta = 0.1 * jax.random.normal(k2, (c,), jnp.float32)
        mean = 0.1 * jax.random.normal(k3, (c,), jnp.float32)
        var = jax.random.uniform(k4, (c,), jnp.float32, 0.5, 1.5)
        return gamma, beta, mean, var

    return {
        "conv1_w": nrm(ks[0], (planes, inplanes, 1, 1)),          # OIHW
        "conv2_w": nrm(ks[1], (planes, planes, 3, 3)),
        "conv3_w": nrm(ks[2], (C4, planes, 1, 1)),
        "bn1": bn_params(ks[3], planes),
        "bn2": bn_params(ks[4], planes),
        "bn3": bn_params(ks[5], C4),
        "fc1_w": nrm(ks[6], (hidden, C4)),                        # nn.Linear layout
        "fc1_b": nrm(ks[7], (hidden,)),
        "fc2_w": nrm(ks[8], (C4, hidden)),
        "fc2_b": nrm(ks[9], (C4,)),
    }


def make_kernel_params(torch_p, planes, compute_dtype=jnp.bfloat16):
    eps = 1e-5

    def fold(bn):
        g, b, m, v = bn
        scale = g / jnp.sqrt(v + eps)
        shift = b - m * scale
        return scale, shift

    s1, b1 = fold(torch_p["bn1"])
    s2, b2 = fold(torch_p["bn2"])
    s3, b3 = fold(torch_p["bn3"])

    # 1x1 convs as (Cin, Cout) matmul weights; BN scale folded in f32, then cast.
    w1 = jnp.transpose(torch_p["conv1_w"][:, :, 0, 0]) * s1[None, :]          # (C, P)
    w3 = jnp.transpose(torch_p["conv3_w"][:, :, 0, 0]) * s3[None, :]          # (P, C4)
    # 3x3 conv as im2col weight: row index = (ky*3 + kx)*P + c_in.
    w2 = jnp.transpose(torch_p["conv2_w"], (2, 3, 1, 0)).reshape(9 * planes, planes)
    w2 = w2 * s2[None, :]                                                      # (9P, P)

    return {
        "w1": w1.astype(compute_dtype), "b1": b1[None, :],
        "w2": w2.astype(compute_dtype), "b2": b2[None, :],
        "w3": w3.astype(compute_dtype), "b3": b3[None, :],
        "fc1w": torch_p["fc1_w"],                  # (hidden, C4), f32
        "fc1b": torch_p["fc1_b"][None, :],
        "fc2w": torch_p["fc2_w"],                  # (C4, hidden), f32
        "fc2b": torch_p["fc2_b"][None, :],
    }


# --------------------------------------------------------------------------- #
# Pure-JAX reference (NCHW, mirrors the PyTorch forward) for correctness check.
# --------------------------------------------------------------------------- #
def se_bottleneck_ref(x, p, *, dilation=1):
    eps = 1e-5
    dn = ("NCHW", "OIHW", "NCHW")

    def bn(t, params):
        g, b, m, v = params
        return (g[None, :, None, None] * (t - m[None, :, None, None])
                / jnp.sqrt(v + eps)[None, :, None, None] + b[None, :, None, None])

    out = lax.conv_general_dilated(x, p["conv1_w"], (1, 1), "VALID",
                                   dimension_numbers=dn)
    out = jnp.maximum(bn(out, p["bn1"]), 0.0)
    out = lax.conv_general_dilated(out, p["conv2_w"], (1, 1),
                                   [(dilation, dilation), (dilation, dilation)],
                                   rhs_dilation=(dilation, dilation),
                                   dimension_numbers=dn)
    out = jnp.maximum(bn(out, p["bn2"]), 0.0)
    out = lax.conv_general_dilated(out, p["conv3_w"], (1, 1), "VALID",
                                   dimension_numbers=dn)
    out = bn(out, p["bn3"])
    y = out.mean(axis=(2, 3))                                      # (N, C4)
    z = jnp.maximum(y @ p["fc1_w"].T + p["fc1_b"], 0.0)
    s = jax.nn.sigmoid(z @ p["fc2_w"].T + p["fc2_b"])
    out = out * s[:, :, None, None]
    out = jnp.maximum(out + x, 0.0)
    return out


if __name__ == "__main__":
    key = jax.random.PRNGKey(0)
    k1, k2, k3, k4 = jax.random.split(key, 4)

    # ---------------- config A: small planes ---------------------------------
    # (im2col conv2, VPU SE path) — also checks f32 and bf16 / bf16-I/O runs.
    N, planes, H, W = 4, 16, 8, 8
    inplanes = planes * 4          # 64
    reduction, dilation = 16, 1

    x_nhwc = jax.random.normal(k1, (N, H, W, inplanes), jnp.float32)
    x_nchw = jnp.transpose(x_nhwc, (0, 3, 1, 2))    # test-harness only (reference)

    tp = make_torch_params(k2, inplanes, planes, reduction)
    ref = se_bottleneck_ref(x_nchw, tp, dilation=dilation)
    ref_nhwc = jax.block_until_ready(jnp.transpose(ref, (0, 2, 3, 1)))

    # f32 matmul path: tight check.
    kp_f32 = make_kernel_params(tp, planes, jnp.float32)
    out_f32 = jax.block_until_ready(
        se_bottleneck_pallas(x_nhwc, kp_f32, dilation=dilation))
    assert out_f32.shape == (N, H, W, inplanes)
    err_f32 = float(jnp.max(jnp.abs(out_f32 - ref_nhwc)))
    assert err_f32 < 1e-4, f"A/f32 mismatch vs reference: {err_f32}"

    # bf16 weights + bf16 streaming I/O (HBM-bound perf config): dtype-limited tol.
    kp_bf16 = make_kernel_params(tp, planes, jnp.bfloat16)
    out_bf16 = jax.block_until_ready(
        se_bottleneck_pallas(x_nhwc.astype(jnp.bfloat16), kp_bf16,
                             dilation=dilation))
    rel_a = float(jnp.max(jnp.abs(out_bf16.astype(jnp.float32) - ref_nhwc))
                  / (jnp.max(jnp.abs(ref_nhwc)) + 1e-6))
    assert rel_a < 5e-2, f"A/bf16 mismatch vs reference: {rel_a}"

    # ---------------- config B: wide planes ----------------------------------
    # (planes >= 128 -> 9-accumulate conv2, C4 >= 256 -> MXU SE path, dilation=2,
    #  native lane-dense (M, C4) output block).
    N2, planes2, H2, W2, dil2 = 2, 128, 8, 8, 2
    inpl2 = planes2 * 4            # 512
    x2 = jax.random.normal(k3, (N2, H2, W2, inpl2), jnp.float32)
    tp2 = make_torch_params(k4, inpl2, planes2, reduction)
    ref2 = jnp.transpose(
        se_bottleneck_ref(jnp.transpose(x2, (0, 3, 1, 2)), tp2, dilation=dil2),
        (0, 2, 3, 1))
    ref2 = jax.block_until_ready(ref2)

    kp2 = make_kernel_params(tp2, planes2, jnp.bfloat16)
    out2 = jax.block_until_ready(
        se_bottleneck_pallas(x2, kp2, dilation=dil2))
    assert out2.shape == (N2, H2, W2, inpl2)
    rel_b = float(jnp.max(jnp.abs(out2 - ref2)) / (jnp.max(jnp.abs(ref2)) + 1e-6))
    assert rel_b < 5e-2, f"B/bf16 mismatch vs reference: {rel_b}"

    print("KERNEL_OK")
</pallas_src>

<mosaic_0001>
module attributes {stable_mosaic.version = 11 : i64} {
  func.func @se_bottleneck_kernel(%arg0: i32, %arg1: memref<128x64xf32, #tpu.memory_space<vmem>>, %arg2: memref<64x16xf32, #tpu.memory_space<vmem>>, %arg3: memref<1x16xf32, #tpu.memory_space<vmem>>, %arg4: memref<144x16xf32, #tpu.memory_space<vmem>>, %arg5: memref<1x16xf32, #tpu.memory_space<vmem>>, %arg6: memref<16x64xf32, #tpu.memory_space<vmem>>, %arg7: memref<1x64xf32, #tpu.memory_space<vmem>>, %arg8: memref<4x64xf32, #tpu.memory_space<vmem>>, %arg9: memref<1x4xf32, #tpu.memory_space<vmem>>, %arg10: memref<64x4xf32, #tpu.memory_space<vmem>>, %arg11: memref<1x64xf32, #tpu.memory_space<vmem>>, %arg12: memref<128x64xf32, #tpu.memory_space<vmem>>, %arg13: memref<2x10x10x16xf32, #tpu.memory_space<vmem>>) attributes {dimension_semantics = [#tpu.dimension_semantics<parallel>], iteration_bounds = array<i64: 2>, scalar_prefetch = 0 : i64, scratch_operands = 1 : i64, tpu.core_type = #tpu.core_type<tc>, window_params = [{transform_indices = @transform_0, window_bounds = array<i64: 128, 64>}, {pipeline_mode = #tpu.pipeline_mode<synchronous>, transform_indices = @transform_1, window_bounds = array<i64: 64, 16>}, {pipeline_mode = #tpu.pipeline_mode<synchronous>, transform_indices = @transform_2, window_bounds = array<i64: 1, 16>}, {pipeline_mode = #tpu.pipeline_mode<synchronous>, transform_indices = @transform_3, window_bounds = array<i64: 144, 16>}, {pipeline_mode = #tpu.pipeline_mode<synchronous>, transform_indices = @transform_4, window_bounds = array<i64: 1, 16>}, {pipeline_mode = #tpu.pipeline_mode<synchronous>, transform_indices = @transform_5, window_bounds = array<i64: 16, 64>}, {pipeline_mode = #tpu.pipeline_mode<synchronous>, transform_indices = @transform_6, window_bounds = array<i64: 1, 64>}, {pipeline_mode = #tpu.pipeline_mode<synchronous>, transform_indices = @transform_7, window_bounds = array<i64: 4, 64>}, {pipeline_mode = #tpu.pipeline_mode<synchronous>, transform_indices = @transform_8, window_bounds = array<i64: 1, 4>}, {pipeline_mode = #tpu.pipeline_mode<synchronous>, transform_indices = @transform_9, window_bounds = array<i64: 64, 4>}, {pipeline_mode = #tpu.pipeline_mode<synchronous>, transform_indices = @transform_10, window_bounds = array<i64: 1, 64>}, {transform_indices = @transform_11, window_bounds = array<i64: 128, 64>}]} {
    %c0 = arith.constant 0 : index
    %c0_0 = arith.constant 0 : index
    %0 = vector.load %arg1[%c0, %c0_0] : memref<128x64xf32, #tpu.memory_space<vmem>>, vector<128x64xf32>
    %c0_1 = arith.constant 0 : index
    %c0_2 = arith.constant 0 : index
    %1 = vector.load %arg2[%c0_1, %c0_2] : memref<64x16xf32, #tpu.memory_space<vmem>>, vector<64x16xf32>
    %cst = arith.constant dense<0.000000e+00> : vector<128x16xf32>
    %2 = tpu.matmul %0, %1, %cst {dimension_numbers = #tpu.dot_dimension_numbers<[1], [0], [0], [1], [0, 0, 1, 1], [], []>} : vector<128x64xf32>, vector<64x16xf32>, vector<128x16xf32> -> vector<128x16xf32>
    %c0_3 = arith.constant 0 : index
    %c0_4 = arith.constant 0 : index
    %3 = vector.load %arg3[%c0_3, %c0_4] : memref<1x16xf32, #tpu.memory_space<vmem>>, vector<1x16xf32>
    %4 = vector.broadcast %3 : vector<1x16xf32> to vector<128x16xf32>
    %5 = arith.addf %2, %4 : vector<128x16xf32>
    %cst_5 = arith.constant 0.000000e+00 : f32
    %6 = vector.broadcast %cst_5 : f32 to vector<128x16xf32>
    %7 = arith.maximumf %5, %6 : vector<128x16xf32>
    %cst_6 = arith.constant 0.000000e+00 : f32
    %8 = vector.broadcast %cst_6 : f32 to vector<2x1x10x16xf32>
    %cst_7 = arith.constant 0.000000e+00 : f32
    %9 = vector.broadcast %cst_7 : f32 to vector<2x8x1x16xf32>
    %c0_8 = arith.constant 0 : index
    %c0_9 = arith.constant 0 : index
    %c0_10 = arith.constant 0 : index
    %c0_11 = arith.constant 0 : index
    %10 = vector.load %arg13[%c0_8, %c0_9, %c0_10, %c0_11] : memref<2x10x10x16xf32, #tpu.memory_space<vmem>>, vector<2x1x10x16xf32>
    tpu.vector_store %arg13[%c0_8, %c0_9, %c0_10, %c0_11], %8 {strides = array<i32>} : memref<2x10x10x16xf32, #tpu.memory_space<vmem>>, vector<2x1x10x16xf32>,
    %c0_12 = arith.constant 0 : index
    %c9 = arith.constant 9 : index
    %c0_13 = arith.constant 0 : index
    %c0_14 = arith.constant 0 : index
    %11 = vector.load %arg13[%c0_12, %c9, %c0_13, %c0_14] : memref<2x10x10x16xf32, #tpu.memory_space<vmem>>, vector<2x1x10x16xf32>
    tpu.vector_store %arg13[%c0_12, %c9, %c0_13, %c0_14], %8 {strides = array<i32>} : memref<2x10x10x16xf32, #tpu.memory_space<vmem>>, vector<2x1x10x16xf32>,
    %c0_15 = arith.constant 0 : index
    %c1 = arith.constant 1 : index
    %c0_16 = arith.constant 0 : index
    %c0_17 = arith.constant 0 : index
    %12 = vector.load %arg13[%c0_15, %c1, %c0_16, %c0_17] : memref<2x10x10x16xf32, #tpu.memory_space<vmem>>, vector<2x8x1x16xf32>
    tpu.vector_store %arg13[%c0_15, %c1, %c0_16, %c0_17], %9 {strides = array<i32>} : memref<2x10x10x16xf32, #tpu.memory_space<vmem>>, vector<2x8x1x16xf32>,
    %c0_18 = arith.constant 0 : index
    %c1_19 = arith.constant 1 : index
    %c9_20 = arith.constant 9 : index
    %c0_21 = arith.constant 0 : index
    %13 = vector.load %arg13[%c0_18, %c1_19, %c9_20, %c0_21] : memref<2x10x10x16xf32, #tpu.memory_space<vmem>>, vector<2x8x1x16xf32>
    tpu.vector_store %arg13[%c0_18, %c1_19, %c9_20, %c0_21], %9 {strides = array<i32>} : memref<2x10x10x16xf32, #tpu.memory_space<vmem>>, vector<2x8x1x16xf32>,
    %14 = vector.shape_cast %7 : vector<128x16xf32> to vector<2x8x8x16xf32>
    %c0_22 = arith.constant 0 : index
    %c1_23 = arith.constant 1 : index
    %c1_24 = arith.constant 1 : index
    %c0_25 = arith.constant 0 : index
    %15 = vector.load %arg13[%c0_22, %c1_23, %c1_24, %c0_25] : memref<2x10x10x16xf32, #tpu.memory_space<vmem>>, vector<2x8x8x16xf32>
    tpu.vector_store %arg13[%c0_22, %c1_23, %c1_24, %c0_25], %14 {strides = array<i32>} : memref<2x10x10x16xf32, #tpu.memory_space<vmem>>, vector<2x8x8x16xf32>,
    %c0_26 = arith.constant 0 : index
    %c0_27 = arith.constant 0 : index
    %c0_28 = arith.constant 0 : index
    %c0_29 = arith.constant 0 : index
    %16 = vector.load %arg13[%c0_26, %c0_27, %c0_28, %c0_29] : memref<2x10x10x16xf32, #tpu.memory_space<vmem>>, vector<2x8x8x16xf32>
    %17 = vector.shape_cast %16 : vector<2x8x8x16xf32> to vector<128x16xf32>
    %c0_30 = arith.constant 0 : index
    %c0_31 = arith.constant 0 : index
    %c1_32 = arith.constant 1 : index
    %c0_33 = arith.constant 0 : index
    %18 = vector.load %arg13[%c0_30, %c0_31, %c1_32, %c0_33] : memref<2x10x10x16xf32, #tpu.memory_space<vmem>>, vector<2x8x8x16xf32>
    %19 = vector.shape_cast %18 : vector<2x8x8x16xf32> to vector<128x16xf32>
    %c0_34 = arith.constant 0 : index
    %c0_35 = arith.constant 0 : index
    %c2 = arith.constant 2 : index
    %c0_36 = arith.constant 0 : index
    %20 = vector.load %arg13[%c0_34, %c0_35, %c2, %c0_36] : memref<2x10x10x16xf32, #tpu.memory_space<vmem>>, vector<2x8x8x16xf32>
    %21 = vector.shape_cast %20 : vector<2x8x8x16xf32> to vector<128x16xf32>
    %c0_37 = arith.constant 0 : index
    %c1_38 = arith.constant 1 : index
    %c0_39 = arith.constant 0 : index
    %c0_40 = arith.constant 0 : index
    %22 = vector.load %arg13[%c0_37, %c1_38, %c0_39, %c0_40] : memref<2x10x10x16xf32, #tpu.memory_space<vmem>>, vector<2x8x8x16xf32>
    %23 = vector.shape_cast %22 : vector<2x8x8x16xf32> to vector<128x16xf32>
    %c0_41 = arith.constant 0 : index
    %c1_42 = arith.constant 1 : index
    %c1_43 = arith.constant 1 : index
    %c0_44 = arith.constant 0 : index
    %24 = vector.load %arg13[%c0_41, %c1_42, %c1_43, %c0_44] : memref<2x10x10x16xf32, #tpu.memory_space<vmem>>, vector<2x8x8x16xf32>
    %25 = vector.shape_cast %24 : vector<2x8x8x16xf32> to vector<128x16xf32>
    %c0_45 = arith.constant 0 : index
    %c1_46 = arith.constant 1 : index
    %c2_47 = arith.constant 2 : index
    %c0_48 = arith.constant 0 : index
    %26 = vector.load %arg13[%c0_45, %c1_46, %c2_47, %c0_48] : memref<2x10x10x16xf32, #tpu.memory_space<vmem>>, vector<2x8x8x16xf32>
    %27 = vector.shape_cast %26 : vector<2x8x8x16xf32> to vector<128x16xf32>
    %c0_49 = arith.constant 0 : index
    %c2_50 = arith.constant 2 : index
    %c0_51 = arith.constant 0 : index
    %c0_52 = arith.constant 0 : index
    %28 = vector.load %arg13[%c0_49, %c2_50, %c0_51, %c0_52] : memref<2x10x10x16xf32, #tpu.memory_space<vmem>>, vector<2x8x8x16xf32>
    %29 = vector.shape_cast %28 : vector<2x8x8x16xf32> to vector<128x16xf32>
    %c0_53 = arith.constant 0 : index
    %c2_54 = arith.constant 2 : index
    %c1_55 = arith.constant 1 : index
    %c0_56 = arith.constant 0 : index
    %30 = vector.load %arg13[%c0_53, %c2_54, %c1_55, %c0_56] : memref<2x10x10x16xf32, #tpu.memory_space<vmem>>, vector<2x8x8x16xf32>
    %31 = vector.shape_cast %30 : vector<2x8x8x16xf32> to vector<128x16xf32>
    %c0_57 = arith.constant 0 : index
    %c2_58 = arith.constant 2 : index
    %c2_59 = arith.constant 2 : index
    %c0_60 = arith.constant 0 : index
    %32 = vector.load %arg13[%c0_57, %c2_58, %c2_59, %c0_60] : memref<2x10x10x16xf32, #tpu.memory_space<vmem>>, vector<2x8x8x16xf32>
    %33 = vector.shape_cast %32 : vector<2x8x8x16xf32> to vector<128x16xf32>
    %34 = tpu.concatenate %17, %19, %21, %23, %25, %27, %29, %31, %33 in 1 : vector<128x16xf32>, vector<128x16xf32>, vector<128x16xf32>, vector<128x16xf32>, vector<128x16xf32>, vector<128x16xf32>, vector<128x16xf32>, vector<128x16xf32>, vector<128x16xf32> -> vector<128x144xf32>
    %c0_61 = arith.constant 0 : index
    %c0_62 = arith.constant 0 : index
    %35 = vector.load %arg4[%c0_61, %c0_62] : memref<144x16xf32, #tpu.memory_space<vmem>>, vector<144x16xf32>
    %cst_63 = arith.constant dense<0.000000e+00> : vector<128x16xf32>
    %36 = tpu.matmul %34, %35, %cst_63 {dimension_numbers = #tpu.dot_dimension_numbers<[1], [0], [0], [1], [0, 0, 1, 1], [], []>} : vector<128x144xf32>, vector<144x16xf32>, vector<128x16xf32> -> vector<128x16xf32>
    %c0_64 = arith.constant 0 : index
    %c0_65 = arith.constant 0 : index
    %37 = vector.load %arg5[%c0_64, %c0_65] : memref<1x16xf32, #tpu.memory_space<vmem>>, vector<1x16xf32>
    %38 = vector.broadcast %37 : vector<1x16xf32> to vector<128x16xf32>
    %39 = arith.addf %36, %38 : vector<128x16xf32>
    %cst_66 = arith.constant 0.000000e+00 : f32
    %40 = vector.broadcast %cst_66 : f32 to vector<128x16xf32>
    %41 = arith.maximumf %39, %40 : vector<128x16xf32>
    %c0_67 = arith.constant 0 : index
    %c0_68 = arith.constant 0 : index
    %42 = vector.load %arg6[%c0_67, %c0_68] : memref<16x64xf32, #tpu.memory_space<vmem>>, vector<16x64xf32>
    %cst_69 = arith.constant dense<0.000000e+00> : vector<128x64xf32>
    %43 = tpu.matmul %41, %42, %cst_69 {dimension_numbers = #tpu.dot_dimension_numbers<[1], [0], [0], [1], [0, 0, 1, 1], [], []>} : vector<128x16xf32>, vector<16x64xf32>, vector<128x64xf32> -> vector<128x64xf32>
    %c0_70 = arith.constant 0 : index
    %c0_71 = arith.constant 0 : index
    %44 = vector.load %arg7[%c0_70, %c0_71] : memref<1x64xf32, #tpu.memory_space<vmem>>, vector<1x64xf32>
    %45 = vector.broadcast %44 : vector<1x64xf32> to vector<128x64xf32>
    %46 = arith.addf %43, %45 : vector<128x64xf32>
    %47 = vector.shape_cast %46 : vector<128x64xf32> to vector<2x64x64xf32>
    %cst_72 = arith.constant dense<0.000000e+00> : vector<2x64xf32>
    %48 = vector.multi_reduction <add>, %47, %cst_72 [1] : vector<2x64x64xf32> to vector<2x64xf32>
    %cst_73 = arith.constant 6.400000e+01 : f32
    %49 = vector.broadcast %cst_73 : f32 to vector<2x64xf32>
    %50 = arith.divf %48, %49 : vector<2x64xf32>
    %51 = vector.shape_cast %50 : vector<2x64xf32> to vector<2x1x64xf32>
    %c0_74 = arith.constant 0 : index
    %c0_75 = arith.constant 0 : index
    %52 = vector.load %arg8[%c0_74, %c0_75] : memref<4x64xf32, #tpu.memory_space<vmem>>, vector<4x64xf32>
    %53 = vector.shape_cast %52 : vector<4x64xf32> to vector<1x4x64xf32>
    %54 = vector.broadcast %51 : vector<2x1x64xf32> to vector<2x4x64xf32>
    %55 = vector.broadcast %53 : vector<1x4x64xf32> to vector<2x4x64xf32>
    %56 = arith.mulf %54, %55 : vector<2x4x64xf32>
    %cst_76 = arith.constant dense<0.000000e+00> : vector<2x4xf32>
    %57 = vector.multi_reduction <add>, %56, %cst_76 [2] : vector<2x4x64xf32> to vector<2x4xf32>
    %c0_77 = arith.constant 0 : index
    %c0_78 = arith.constant 0 : index
    %58 = vector.load %arg9[%c0_77, %c0_78] : memref<1x4xf32, #tpu.memory_space<vmem>>, vector<1x4xf32>
    %59 = vector.broadcast %58 : vector<1x4xf32> to vector<2x4xf32>
    %60 = arith.addf %57, %59 : vector<2x4xf32>
    %cst_79 = arith.constant 0.000000e+00 : f32
    %61 = vector.broadcast %cst_79 : f32 to vector<2x4xf32>
    %62 = arith.maximumf %60, %61 : vector<2x4xf32>
    %63 = vector.shape_cast %62 : vector<2x4xf32> to vector<2x1x4xf32>
    %c0_80 = arith.constant 0 : index
    %c0_81 = arith.constant 0 : index
    %64 = vector.load %arg10[%c0_80, %c0_81] : memref<64x4xf32, #tpu.memory_space<vmem>>, vector<64x4xf32>
    %65 = vector.shape_cast %64 : vector<64x4xf32> to vector<1x64x4xf32>
    %66 = vector.broadcast %63 : vector<2x1x4xf32> to vector<2x64x4xf32>
    %67 = vector.broadcast %65 : vector<1x64x4xf32> to vector<2x64x4xf32>
    %68 = arith.mulf %66, %67 : vector<2x64x4xf32>
    %cst_82 = arith.constant dense<0.000000e+00> : vector<2x64xf32>
    %69 = vector.multi_reduction <add>, %68, %cst_82 [2] : vector<2x64x4xf32> to vector<2x64xf32>
    %c0_83 = arith.constant 0 : index
    %c0_84 = arith.constant 0 : index
    %70 = vector.load %arg11[%c0_83, %c0_84] : memref<1x64xf32, #tpu.memory_space<vmem>>, vector<1x64xf32>
    %71 = vector.broadcast %70 : vector<1x64xf32> to vector<2x64xf32>
    %72 = arith.addf %69, %71 : vector<2x64xf32>
    %73 = arith.negf %72 : vector<2x64xf32>
    %74 = math.exp %73 : vector<2x64xf32>
    %cst_85 = arith.constant 1.000000e+00 : f32
    %75 = vector.broadcast %cst_85 : f32 to vector<2x64xf32>
    %76 = arith.addf %75, %74 : vector<2x64xf32>
    %77 = arith.divf %75, %76 : vector<2x64xf32>
    %78 = vector.shape_cast %77 : vector<2x64xf32> to vector<2x1x64xf32>
    %79 = vector.broadcast %78 : vector<2x1x64xf32> to vector<2x64x64xf32>
    %80 = arith.mulf %47, %79 : vector<2x64x64xf32>
    %81 = vector.shape_cast %80 : vector<2x64x64xf32> to vector<128x64xf32>
    %c0_86 = arith.constant 0 : index
    %c0_87 = arith.constant 0 : index
    %82 = vector.load %arg1[%c0_86, %c0_87] : memref<128x64xf32, #tpu.memory_space<vmem>>, vector<128x64xf32>
    %83 = arith.addf %81, %82 : vector<128x64xf32>
    %cst_88 = arith.constant 0.000000e+00 : f32
    %84 = vector.broadcast %cst_88 : f32 to vector<128x64xf32>
    %85 = arith.maximumf %83, %84 : vector<128x64xf32>
    %c0_89 = arith.constant 0 : index
    %c0_90 = arith.constant 0 : index
    %86 = vector.load %arg12[%c0_89, %c0_90] : memref<128x64xf32, #tpu.memory_space<vmem>>, vector<128x64xf32>
    tpu.vector_store %arg12[%c0_89, %c0_90], %85 {strides = array<i32>} : memref<128x64xf32, #tpu.memory_space<vmem>>, vector<128x64xf32>,
    return
  }
  func.func @transform_0(%arg0: i32) -> (i32, i32) {
    %c0_i32 = arith.constant 0 : i32
    %c0_i32_0 = arith.constant 0 : i32
    return %arg0, %c0_i32 : i32, i32
  }
  func.func @transform_1(%arg0: i32) -> (i32, i32) {
    %c0_i32 = arith.constant 0 : i32
    %c0_i32_0 = arith.constant 0 : i32
    %c0_i32_1 = arith.constant 0 : i32
    return %c0_i32, %c0_i32_0 : i32, i32
  }
  func.func @transform_2(%arg0: i32) -> (i32, i32) {
    %c0_i32 = arith.constant 0 : i32
    %c0_i32_0 = arith.constant 0 : i32
    %c0_i32_1 = arith.constant 0 : i32
    return %c0_i32, %c0_i32_0 : i32, i32
  }
  func.func @transform_3(%arg0: i32) -> (i32, i32) {
    %c0_i32 = arith.constant 0 : i32
    %c0_i32_0 = arith.constant 0 : i32
    %c0_i32_1 = arith.constant 0 : i32
    return %c0_i32, %c0_i32_0 : i32, i32
  }
  func.func @transform_4(%arg0: i32) -> (i32, i32) {
    %c0_i32 = arith.constant 0 : i32
    %c0_i32_0 = arith.constant 0 : i32
    %c0_i32_1 = arith.constant 0 : i32
    return %c0_i32, %c0_i32_0 : i32, i32
  }
  func.func @transform_5(%arg0: i32) -> (i32, i32) {
    %c0_i32 = arith.constant 0 : i32
    %c0_i32_0 = arith.constant 0 : i32
    %c0_i32_1 = arith.constant 0 : i32
    return %c0_i32, %c0_i32_0 : i32, i32
  }
  func.func @transform_6(%arg0: i32) -> (i32, i32) {
    %c0_i32 = arith.constant 0 : i32
    %c0_i32_0 = arith.constant 0 : i32
    %c0_i32_1 = arith.constant 0 : i32
    return %c0_i32, %c0_i32_0 : i32, i32
  }
  func.func @transform_7(%arg0: i32) -> (i32, i32) {
    %c0_i32 = arith.constant 0 : i32
    %c0_i32_0 = arith.constant 0 : i32
    %c0_i32_1 = arith.constant 0 : i32
    return %c0_i32, %c0_i32_0 : i32, i32
  }
  func.func @transform_8(%arg0: i32) -> (i32, i32) {
    %c0_i32 = arith.constant 0 : i32
    %c0_i32_0 = arith.constant 0 : i32
    %c0_i32_1 = arith.constant 0 : i32
    return %c0_i32, %c0_i32_0 : i32, i32
  }
  func.func @transform_9(%arg0: i32) -> (i32, i32) {
    %c0_i32 = arith.constant 0 : i32
    %c0_i32_0 = arith.constant 0 : i32
    %c0_i32_1 = arith.constant 0 : i32
    return %c0_i32, %c0_i32_0 : i32, i32
  }
  func.func @transform_10(%arg0: i32) -> (i32, i32) {
    %c0_i32 = arith.constant 0 : i32
    %c0_i32_0 = arith.constant 0 : i32
    %c0_i32_1 = arith.constant 0 : i32
    return %c0_i32, %c0_i32_0 : i32, i32
  }
  func.func @transform_11(%arg0: i32) -> (i32, i32) {
    %c0_i32 = arith.constant 0 : i32
    %c0_i32_0 = arith.constant 0 : i32
    return %arg0, %c0_i32 : i32, i32
  }
}

</mosaic_0001>

<bundles_post_ra>
// kernel: tpu_custom_call.1
= control target key start
LH: loop header
LB: loop body
LE: loop exit
PB: predicated region body
PF: predicated region fallthrough
CT: control target
= control target key end

     0   :  { %s4919_s17 = smov 0   ;;  %s6889_s0 = inlined_call_operand.vmem [shape: f32[256,64], index: 0, kind: input, shape index: {}]   ;;  %s6890_s1 = inlined_call_operand.vmem [shape: f32[64,16], index: 1, kind: input, shape index: {}]   ;;  %s6891_s2 = inlined_call_operand.vmem [shape: f32[1,16], index: 2, kind: input, shape index: {}]   ;;  %s6892_s3 = inlined_call_operand.vmem [shape: f32[144,16], index: 3, kind: input, shape index: {}]   ;;  %s6893_s4 = inlined_call_operand.vmem [shape: f32[1,16], index: 4, kind: input, shape index: {}]   ;;  %s6894_s5 = inlined_call_operand.vmem [shape: f32[16,64], index: 5, kind: input, shape index: {}]   ;;  %s6895_s6 = inlined_call_operand.vmem [shape: f32[1,64], index: 6, kind: input, shape index: {}]   ;;  %s6896_s7 = inlined_call_operand.vmem [shape: f32[4,64], index: 7, kind: input, shape index: {}]   ;;  %s6897_s8 = inlined_call_operand.vmem [shape: f32[1,4], index: 8, kind: input, shape index: {}]   ;;  %s6898_s9 = inlined_call_operand.vmem [shape: f32[64,4], index: 9, kind: input, shape index: {}]   ;;  %s6899_s10 = inlined_call_operand.vmem [shape: f32[1,64], index: 10, kind: input, shape index: {}]   ;;  %s6900_s11 = inlined_call_operand.vmem [shape: f32[256,64], index: 11, kind: output, shape index: {}]  }
   0x1 LB: > { %s4236_s18 = sadd.s32 4294967295, %s4847_s17   ;;  %p4240_p0 = scmp.ge.s32.totalorder %s4847_s17, 1  ;;  %s4847_s17 = sphi %s4919_s17, %s21_s17  }
   0x2   : > { %p338_p1 = scmp.lt.s32.totalorder %s4847_s17, 3 }
   0x4   : > { %p339_p2 = pnand %p4240_p0, %p338_p1 }
   0x6   : > { %342 = sbr.rel (%p339_p2) target bundleno = 1759 (0x6df), region = 64 }
   0xd   : > { %v406_v0 = vld [vmem:[%s6890_s1] sm:$0xff]  ;;  %v407_v1 = vld [vmem:[%s6890_s1 + $0x8] sm:$0xff]  ;;  %v408_v2 = vld [vmem:[%s6890_s1 + $0x10] sm:$0xff]  ;;  %s4241_s25 = sshll.u32 %s4236_s18, 4  ;;  %vm421_vm0 = vcmask 523264   ;;  %vm631_vm1 = vcmask 130048  }
   0xe   : > { %v4426_v3 = vpack.c.bf16 %v407_v1, %v406_v0  ;;  %v409_v4 = vld [vmem:[%s6890_s1 + $0x18] sm:$0xff]  ;;  %p379_p3 = scmp.lt.s32.totalorder %s4241_s25, 31  ;;  %v410_v6 = vld [vmem:[%s6890_s1 + $0x20] sm:$0xff]  ;;  %v411_v7 = vld [vmem:[%s6890_s1 + $0x28] sm:$0xff]  ;;  %vm643_vm2 = vcmask 122880   ;;  %v4849_v28 = vmov 0.0  }
   0xf   : > { %v4430_v5 = vpack.c.bf16 %v409_v4, %v408_v2  ;;  %v4434_v8 = vpack.c.bf16 %v411_v7, %v410_v6  ;;  %v412_v9 = vld [vmem:[%s6890_s1 + $0x30] sm:$0xff]  ;;  %v413_v10 = vld [vmem:[%s6890_s1 + $0x38] sm:$0xff]  ;;  %661 = vst.msk [vmem:[#allocation2 + $0x29] sm:$0x1] %vm643_vm2, %v4849_v28  ;;  %644 = vst.msk [vmem:[#allocation2 + $0x10] sm:$0x1] %vm643_vm2, %v4849_v28 }
  0x10   : > { %4427 = vmatprep.subr.bf16.mxu0 %v4426_v3  ;;  %s7032_s25 = smov (!%p379_p3, %s4241_s25), 31  ;;  %v4438_v12 = vpack.c.bf16 %v413_v10, %v412_v9  ;;  %632 = vst.msk [vmem:[#allocation2] sm:$0xff] %vm631_vm1, %v4849_v28  ;;  %635 = vst.msk [vmem:[#allocation2 + $0xa0] sm:$0xff] %vm631_vm1, %v4849_v28  ;;  %vm633_vm3 = vcmask 123904   ;;  %v5032_v29 = vld [vmem:[%s6891_s2] ss:$0 sm:$0xff] }
  0x11   : > { %4429 = vmatpush3.bf16.msra.mxu0 %v4426_v3  ;;  %s4242_s13 = sshll.u32 %s7032_s25, 3  ;;  %638 = vst.msk [vmem:[#allocation2 + $0x90] sm:$0xff] %vm631_vm1, %v4849_v28  ;;  %640 = vst.msk [vmem:[#allocation2 + $0x130] sm:$0xff] %vm631_vm1, %v4849_v28  ;;  %v1402_v45 = vld [vmem:[%s6892_s3] sm:$0xff]  ;;  %v1403_v46 = vld [vmem:[%s6892_s3 + $0x8] sm:$0xff]  ;;  %v4850_v48 = vmov 0.0|0.0  }
  0x12   : > { %4431 = vmatprep.subr.bf16.mxu0 %v4430_v5  ;;  %s4959_s21 = scalar_lea.vmem %s6889_s0, %s4242_s13  ;;  %645 = vst.msk [vmem:[#allocation2 + $0x20] sm:$0x1] %vm643_vm2, %v4849_v28  ;;  %646 = vst.msk [vmem:[#allocation2 + $0x30] sm:$0x1] %vm643_vm2, %v4849_v28  ;;  %4473 = vmatprep.subr.bf16.mxu1 %v4850_v48  ;;  %v4443_v49 = vpack.c.bf16 %v1403_v46, %v1402_v45  ;;  %v1404_v60 = vld [vmem:[%s6892_s3 + $0x10] sm:$0xff]  ;;  %v1405_v61 = vld [vmem:[%s6892_s3 + $0x18] sm:$0xff] }
  0x13   : > { %v390_v11 = vld [vmem:[%s4959_s21] sm:$0xff]  ;;  %v391_v13 = vld [vmem:[%s4959_s21 + $0x8] sm:$0xff]  ;;  %v392_v14 = vld [vmem:[%s4959_s21 + $0x10] sm:$0xff]  ;;  %647 = vst.msk [vmem:[#allocation2 + $0x40] sm:$0x1] %vm643_vm2, %v4849_v28  ;;  %v4446_v1 = vpack.c.bf16 %v1405_v61, %v1404_v60  ;;  %s4851_s15 = smov 16  }
  0x14   : > { %4374 = vmatprep.mubr.msk.f32.mxu0 %vm421_vm0, %v390_v11  ;;  %v393_v15 = vld [vmem:[%s4959_s21 + $0x18] sm:$0xff]  ;;  %v394_v16 = vld [vmem:[%s4959_s21 + $0x20] sm:$0xff]  ;;  %v395_v17 = vld [vmem:[%s4959_s21 + $0x28] sm:$0xff]  ;;  %648 = vst.msk [vmem:[#allocation2 + $0x50] sm:$0x1] %vm643_vm2, %v4849_v28  ;;  %4482 = vmatpush1.bf16.msra.mxu1 %v4443_v49  ;;  %s4852_s22 = smov 32  }
  0x15   : > { %4433 = vmatpush3.bf16.msra.mxu0 %v4430_v5  ;;  %v396_v18 = vld [vmem:[%s4959_s21 + $0x30] sm:$0xff]  ;;  %v397_v19 = vld [vmem:[%s4959_s21 + $0x38] sm:$0xff]  ;;  %v398_v20 = vld [vmem:[%s4959_s21 + $0x40] sm:$0xff]  ;;  %649 = vst.msk [vmem:[#allocation2 + $0x60] sm:$0x1] %vm643_vm2, %v4849_v28  ;;  %4474 = vmatprep.subr.bf16.mxu1 %v4850_v48  ;;  %s4853_s28 = smov 48  }
  0x16   : > { %4435 = vmatprep.subr.bf16.mxu0 %v4434_v8  ;;  %v399_v21 = vld [vmem:[%s4959_s21 + $0x48] sm:$0xff]  ;;  %v400_v22 = vld [vmem:[%s4959_s21 + $0x50] sm:$0xff]  ;;  %v401_v23 = vld [vmem:[%s4959_s21 + $0x58] sm:$0xff]  ;;  %650 = vst.msk [vmem:[#allocation2 + $0x70] sm:$0x1] %vm643_vm2, %v4849_v28  ;;  %s4854_s16 = smov 64  }
  0x17   : > { %v402_v24 = vld [vmem:[%s4959_s21 + $0x60] sm:$0xff]  ;;  %v403_v25 = vld [vmem:[%s4959_s21 + $0x68] sm:$0xff]  ;;  %v404_v26 = vld [vmem:[%s4959_s21 + $0x70] sm:$0xff]  ;;  %651 = vst.msk [vmem:[#allocation2 + $0x80] sm:$0x1] %vm643_vm2, %v4849_v28  ;;  %s4855_s24 = smov 112  }
  0x18   : > { %v405_v27 = vld [vmem:[%s4959_s21 + $0x78] sm:$0xff]  ;;  %652 = vst.msk [vmem:[#allocation2 + $0xb0] sm:$0x1] %vm643_vm2, %v4849_v28  ;;  %653 = vst.msk [vmem:[#allocation2 + $0xc0] sm:$0x1] %vm643_vm2, %v4849_v28  ;;  %4483 = vmatpush1.bf16.msra.mxu1 %v4446_v1  ;;  %v1406_v11 = vld [vmem:[%s6892_s3 + $0x20] sm:$0xff] }
  0x19   : > { %4437 = vmatpush3.bf16.msra.mxu0 %v4434_v8  ;;  %654 = vst.msk [vmem:[#allocation2 + $0xd0] sm:$0x1] %vm643_vm2, %v4849_v28  ;;  %655 = vst.msk [vmem:[#allocation2 + $0xe0] sm:$0x1] %vm643_vm2, %v4849_v28  ;;  %4475 = vmatprep.subr.bf16.mxu1 %v4850_v48  ;;  %s4856_s12 = smov 80   ;;  %s4857_s23 = smov 96  }
  0x1a   : > { %4439 = vmatprep.subr.bf16.mxu0 %v4438_v12  ;;  %656 = vst.msk [vmem:[#allocation2 + $0xf0] sm:$0x1] %vm643_vm2, %v4849_v28  ;;  %657 = vst.msk [vmem:[#allocation2 + $0x100] sm:$0x1] %vm643_vm2, %v4849_v28  ;;  %vm1301_vm4 = vcmask 261120   ;;  %vm1318_vm5 = vcmask 392192  }
  0x1b   : > { %658 = vst.msk [vmem:[#allocation2 + $0x110] sm:$0x1] %vm643_vm2, %v4849_v28  ;;  %659 = vst.msk [vmem:[#allocation2 + $0x120] sm:$0x1] %vm643_vm2, %v4849_v28  ;;  %vm1351_vm6 = vcmask 654336   ;;  %vm1368_vm7 = vcmask 785408  }
  0x1c   : > { %660 = vst.msk [vmem:[#allocation2 + $0x19] sm:$0x1] %vm643_vm2, %v4849_v28  ;;  %662 = vst.msk [vmem:[#allocation2 + $0x39] sm:$0x1] %vm643_vm2, %v4849_v28  ;;  %vm1385_vm8 = vcmask 916480   ;;  %vm1886_vm9 = vcmask 519168  }
  0x1d   : > { %4441 = vmatpush3.bf16.msra.mxu0 %v4438_v12  ;;  %663 = vst.msk [vmem:[#allocation2 + $0x49] sm:$0x1] %vm643_vm2, %v4849_v28  ;;  %664 = vst.msk [vmem:[#allocation2 + $0x59] sm:$0x1] %vm643_vm2, %v4849_v28  ;;  %v1407_v12 = vld [vmem:[%s6892_s3 + $0x28] sm:$0xff]  ;;  %vm3589_vm10 = vcmask 1041409  }
  0x1e   : > { %665 = vst.msk [vmem:[#allocation2 + $0x69] sm:$0x1] %vm643_vm2, %v4849_v28  ;;  %666 = vst.msk [vmem:[#allocation2 + $0x79] sm:$0x1] %vm643_vm2, %v4849_v28  ;;  %4442 = vmatprep.subr.bf16.mxu0 %v4850_v48  ;;  %vm3591_vm11 = vcmask 1042434   ;;  %vm3593_vm12 = vcmask 1043459  }
  0x1f   : > { %667 = vst.msk [vmem:[#allocation2 + $0x89] sm:$0x1] %vm643_vm2, %v4849_v28  ;;  %668 = vst.msk [vmem:[#allocation2 + $0xb9] sm:$0x1] %vm643_vm2, %v4849_v28  ;;  %vm3595_vm13 = vcmask 1044484   ;;  %vm3597_vm14 = vcmask 1045509  }
  0x20   : > { %4375 = vmatmul.mubr.msk.f32.vlgmr.msra.gmra.mrb[0].mxu0 %vm421_vm0, %v391_v13  ;;  %669 = vst.msk [vmem:[#allocation2 + $0xc9] sm:$0x1] %vm643_vm2, %v4849_v28  ;;  %670 = vst.msk [vmem:[#allocation2 + $0xd9] sm:$0x1] %vm643_vm2, %v4849_v28  ;;  %vm3599_vm15 = vcmask 1046534  }
  0x21   : > { %4377 = vmatprep.mubr.msk.f32.mxu0 %vm421_vm0, %v392_v14  ;;  %671 = vst.msk [vmem:[#allocation2 + $0xe9] sm:$0x1] %vm643_vm2, %v4849_v28  ;;  %672 = vst.msk [vmem:[#allocation2 + $0xf9] sm:$0x1] %vm643_vm2, %v4849_v28  ;;  %4444 = vmatpush1.bf16.msra.mxu0 %v4443_v49 }
  0x22   : > { %673 = vst.msk [vmem:[#allocation2 + $0x109] sm:$0x1] %vm643_vm2, %v4849_v28  ;;  %674 = vst.msk [vmem:[#allocation2 + $0x119] sm:$0x1] %vm643_vm2, %v4849_v28  ;;  %4445 = vmatprep.subr.bf16.mxu0 %v4850_v48 }
  0x23   : > { %675 = vst.msk [vmem:[#allocation2 + $0x129] sm:$0x1] %vm643_vm2, %v4849_v28  ;;  %vm3724_vm2 = vcmask 31744  }
  0x24   : > { %4378 = vmatmul.mubr.msk.f32.gmra.mrb[2].mxu0 %vm421_vm0, %v393_v15  ;;  %634 = vst.msk [vmem:[#allocation2 + $0x8] sm:$0x3] %vm633_vm3, %v4849_v28  ;;  %636 = vst.msk [vmem:[#allocation2 + $0xa8] sm:$0x3] %vm633_vm3, %v4849_v28 }
  0x25   : > { %4380 = vmatprep.mubr.msk.f32.mxu0 %vm421_vm0, %v394_v16  ;;  %639 = vst.msk [vmem:[#allocation2 + $0x98] sm:$0x3] %vm633_vm3, %v4849_v28  ;;  %641 = vst.msk [vmem:[#allocation2 + $0x138] sm:$0x3] %vm633_vm3, %v4849_v28  ;;  %4447 = vmatpush1.bf16.msra.mxu0 %v4446_v1  ;;  %v1414_v1 = vld [vmem:[%s6892_s3 + $0x60] sm:$0xff]  ;;  %vm4003_vm3 = vcmask 130112  }
  0x26   : > { %4448 = vmatprep.subr.bf16.mxu0 %v4850_v48 }
  0x28   : > { %4381 = vmatmul.mubr.msk.f32.gmra.mrb[4].mxu0 %vm421_vm0, %v395_v17 }
  0x29   : > { %4383 = vmatprep.mubr.msk.f32.mxu0 %vm421_vm0, %v396_v18 }
  0x2b   : > { %v708_v51 = vld [vmem:[#allocation2 + $0x1] sm:$0xff] }
  0x2c   : > { %4384 = vmatmul.mubr.msk.f32.gmra.mrb[6].mxu0 %vm421_vm0, %v397_v19  ;;  %v724_v63 = vld [vmem:[#allocation2 + $0x2] sm:$0xff]  ;;  %v4449_v19 = vpack.c.bf16 %v1407_v12, %v1406_v11 }
  0x2d   : > { %4386 = vmatprep.mubr.msk.f32.mxu0 %vm421_vm0, %v398_v20 }
  0x2e   : > { %4484 = vmatpush1.bf16.msra.mxu1 %v4449_v19  ;;  %4450 = vmatpush1.bf16.msra.mxu0 %v4449_v19 }
  0x2f   : > { %4476 = vmatprep.subr.bf16.mxu1 %v4850_v48  ;;  %4451 = vmatprep.subr.bf16.mxu0 %v4850_v48 }
  0x30   : > { %4387 = vmatmul.mubr.msk.f32.gmra.mrb[8].mxu0 %vm421_vm0, %v399_v21 }
  0x31   : > { %4389 = vmatprep.mubr.msk.f32.mxu0 %vm421_vm0, %v400_v22 }
  0x34   : > { %4390 = vmatmul.mubr.msk.f32.gmra.mrb[10].mxu0 %vm421_vm0, %v401_v23 }
  0x35   : > { %4392 = vmatprep.mubr.msk.f32.mxu0 %vm421_vm0, %v402_v24  ;;  %v1408_v24 = vld [vmem:[%s6892_s3 + $0x30] sm:$0xff] }
  0x38   : > { %4393 = vmatmul.mubr.msk.f32.gmra.mrb[12].mxu0 %vm421_vm0, %v403_v25  ;;  %v1409_v25 = vld [vmem:[%s6892_s3 + $0x38] sm:$0xff] }
  0x39   : > { %4395 = vmatprep.mubr.msk.f32.mxu0 %vm421_vm0, %v404_v26 }
  0x3c   : > { %4396 = vmatmul.mubr.msk.f32.gmra.mrb[14].mxu0 %vm421_vm0, %v405_v27 }
  0xf3   : > { %v4376_v30 = vpop.f32.mrb[0].mxu0 }
  0xf4   : > { %v542_v31 = vadd.f32 %v4376_v30, %v5032_v29  ;;  %v536_v32 = vpop.f32.mrb[1].mxu0 }
  0xf5   : > { %v537_v33 = vadd.f32 %v5032_v29, %v536_v32 }
  0xf6   : > { %v616_v34 = vmax.f32 %v542_v31, 0.0 }
  0xf7   : > { %v615_v35 = vmax.f32 %v537_v33, 0.0  ;;  %v4379_v36 = vpop.f32.mrb[2].mxu0 }
  0xf8   : > { %677 = vst.msk [vmem:[#allocation2 + $0x21] sm:$0xff] %vm631_vm1, %v616_v34  ;;  %v552_v37 = vadd.f32 %v4379_v36, %v5032_v29  ;;  %v546_v38 = vpop.f32.mrb[3].mxu0  ;;  %v4452_v34 = vpack.c.bf16 %v1409_v25, %v1408_v24 }
  0xf9   : > { %676 = vst.msk [vmem:[#allocation2 + $0x11] sm:$0xff] %vm631_vm1, %v615_v35  ;;  %v547_v39 = vadd.f32 %v5032_v29, %v546_v38 }
  0xfa   : > { %v618_v40 = vmax.f32 %v552_v37, 0.0  ;;  %4485 = vmatpush1.bf16.msra.mxu1 %v4452_v34  ;;  %4453 = vmatpush1.bf16.msra.mxu0 %v4452_v34 }
  0xfb   : > { %v617_v41 = vmax.f32 %v547_v39, 0.0  ;;  %v4382_v42 = vpop.f32.mrb[4].mxu0  ;;  %v1410_v39 = vld [vmem:[%s6892_s3 + $0x40] sm:$0xff]  ;;  %4477 = vmatprep.subr.bf16.mxu1 %v4850_v48  ;;  %4454 = vmatprep.subr.bf16.mxu0 %v4850_v48 }
  0xfc   : > { %679 = vst.msk [vmem:[#allocation2 + $0x41] sm:$0xff] %vm631_vm1, %v618_v40  ;;  %v562_v43 = vadd.f32 %v4382_v42, %v5032_v29  ;;  %v556_v44 = vpop.f32.mrb[5].mxu0  ;;  %v1411_v40 = vld [vmem:[%s6892_s3 + $0x48] sm:$0xff] }
  0xfd   : > { %678 = vst.msk [vmem:[#allocation2 + $0x31] sm:$0xff] %vm631_vm1, %v617_v41  ;;  %v557_v47 = vadd.f32 %v5032_v29, %v556_v44  ;;  %v812_v41 = vld [vmem:[#allocation2 + $0x91] sm:$0xff]  ;;  %v4455_v45 = vpack.c.bf16 %v1411_v40, %v1410_v39  ;;  %v732_v39 = vld [vmem:[#allocation2 + $0xa2] sm:$0xff] }
  0xfe   : > { %v620_v50 = vmax.f32 %v562_v43, 0.0 }
  0xff   : > { %v619_v52 = vmax.f32 %v557_v47, 0.0  ;;  %v4385_v53 = vpop.f32.mrb[6].mxu0  ;;  %v5052_v54 = vld [vmem:[#allocation2 + $0x22] sm:$0xff]  ;;  %4486 = vmatpush1.bf16.msra.mxu1 %v4455_v45  ;;  %4456 = vmatpush1.bf16.msra.mxu0 %v4455_v45 }
 0x100   : > { %681 = vst.msk [vmem:[#allocation2 + $0x61] sm:$0xff] %vm631_vm1, %v620_v50  ;;  %v572_v55 = vadd.f32 %v4385_v53, %v5032_v29  ;;  %4263 = vmatprep.mubr.msk.f32.mxu0 %vm631_vm1, %v5052_v54  ;;  %v5058_v56 = vld [vmem:[#allocation2 + $0x11] sm:$0xff]  ;;  %v566_v57 = vpop.f32.mrb[7].mxu0  ;;  %v5086_v10 = vld [vmem:[#allocation2 + $0x20] sm:$0xff]  ;;  %4478 = vmatprep.subr.bf16.mxu1 %v4850_v48 }
 0x101   : > { %680 = vst.msk [vmem:[#allocation2 + $0x51] sm:$0xff] %vm631_vm1, %v619_v52  ;;  %v4509_v58 = vpack.i.bf16 %v5058_v56, %v708_v51  ;;  %v567_v59 = vadd.f32 %v5032_v29, %v566_v57  ;;  %v5071_v0 = vld [vmem:[#allocation2 + $0x12] sm:$0xff]  ;;  %v5117_v28 = vld [vmem:[#allocation2 + $0x21] sm:$0xff]  ;;  %4457 = vmatprep.subr.bf16.mxu0 %v4850_v48 }
 0x102   : > { %v622_v62 = vmax.f32 %v572_v55, 0.0  ;;  %v4514_v9 = vpack.i.bf16 %v5071_v0, %v724_v63  ;;  %v5099_v15 = vld [vmem:[#allocation2 + $0x10] sm:$0xff]  ;;  %v4524_v38 = vpack.i.bf16 %v5117_v28, %v5058_v56  ;;  %v1413_v52 = vld [vmem:[%s6892_s3 + $0x58] sm:$0xff] }
 0x103   : > { %4510 = vrot.lane.b32.xlu0 %v4509_v58, %s4851_s15  ;;  %v5074_v2 = vld [vmem:[#allocation2 + $0x42] sm:$0xff]  ;;  %v621_v3 = vmax.f32 %v567_v59, 0.0  ;;  %v4388_v4 = vpop.f32.mrb[8].mxu0  ;;  %v4519_v23 = vpack.i.bf16 %v5086_v10, %v5099_v15  ;;  %v1412_v51 = vld [vmem:[%s6892_s3 + $0x50] sm:$0xff] }
 0x104   : > { %683 = vst.msk [vmem:[#allocation2 + $0x81] sm:$0xff] %vm631_vm1, %v622_v62  ;;  %4265 = vmatprep.mubr.msk.f32.mxu1 %vm631_vm1, %v5074_v2  ;;  %v5079_v5 = vld [vmem:[#allocation2 + $0x32] sm:$0xff]  ;;  %v582_v6 = vadd.f32 %v4388_v4, %v5032_v29  ;;  %v576_v7 = vpop.f32.mrb[9].mxu0  ;;  %v5097_v14 = vld [vmem:[#allocation2 + $0x40] sm:$0xff]  ;;  %v4458_v57 = vpack.c.bf16 %v1413_v52, %v1412_v51 }
 0x105   : > { %682 = vst.msk [vmem:[#allocation2 + $0x71] sm:$0xff] %vm631_vm1, %v621_v3  ;;  %v4534_v8 = vpack.i.bf16 %v5079_v5, %v5052_v54  ;;  %v5095_v13 = vld [vmem:[#allocation2 + $0x30] sm:$0xff]  ;;  %v577_v17 = vadd.f32 %v5032_v29, %v576_v7  ;;  %v759_v27 = vld [vmem:[#allocation2 + $0x41] sm:$0xff]  ;;  %v4549_v61 = vpack.i.bf16 %v5079_v5, %v5071_v0 }
 0x106   : > { %v624_v16 = vmax.f32 %v582_v6, 0.0  ;;  %v4539_v22 = vpack.i.bf16 %v5097_v14, %v5095_v13  ;;  %v758_v26 = vld [vmem:[#allocation2 + $0x31] sm:$0xff]  ;;  %4487 = vmatpush1.bf16.msra.mxu1 %v4458_v57  ;;  %v1415_v3 = vld [vmem:[%s6892_s3 + $0x68] sm:$0xff]  ;;  %4459 = vmatpush1.bf16.msra.mxu0 %v4458_v57 }
 0x107   : > { %4535 = vrot.lane.b32.xlu1 %v4534_v8, %s4852_s22  ;;  %4515 = vrot.lane.b32.xlu0 %v4514_v9, %s4852_s22  ;;  %v4391_v18 = vpop.f32.mrb[10].mxu0  ;;  %v623_v30 = vmax.f32 %v577_v17, 0.0  ;;  %v4544_v37 = vpack.i.bf16 %v759_v27, %v758_v26  ;;  %v4559_v53 = vpack.i.bf16 %v758_v26, %v812_v41  ;;  %v4529_v55 = vpack.i.bf16 %v758_v26, %v5117_v28  ;;  %v796_v62 = vld [vmem:[#allocation2 + $0x90] sm:$0xff]  ;;  %v1417_v6 = vld [vmem:[%s6892_s3 + $0x78] sm:$0xff]  ;;  %v1419_v17 = vld [vmem:[%s6892_s3 + $0x88] sm:$0xff] }
 0x108   : > { %685 = vst.msk [vmem:[#allocation2 + $0xc1] sm:$0xff] %vm631_vm1, %v624_v16  ;;  %v592_v20 = vadd.f32 %v4391_v18, %v5032_v29  ;;  %v586_v21 = vpop.f32.mrb[11].mxu0  ;;  %v5150_v58 = vld [vmem:[#allocation2 + $0x51] sm:$0xff]  ;;  %4479 = vmatprep.subr.bf16.mxu1 %v4850_v48  ;;  %v4461_v0 = vpack.c.bf16 %v1415_v3, %v1414_v1  ;;  %v4554_v8 = vpack.i.bf16 %v5095_v13, %v796_v62  ;;  %v1418_v16 = vld [vmem:[%s6892_s3 + $0x80] sm:$0xff] }
 0x109   : > { %v587_v32 = vadd.f32 %v5032_v29, %v586_v21  ;;  %684 = vst.msk [vmem:[#allocation2 + $0xb1] sm:$0xff] %vm631_vm1, %v623_v30  ;;  %v5163_v63 = vld [vmem:[#allocation2 + $0x50] sm:$0xff]  ;;  %4460 = vmatprep.subr.bf16.mxu0 %v4850_v48  ;;  %v5197_v19 = vld [vmem:[#allocation2 + $0x60] sm:$0xff] }
 0x10a   : > { %v626_v31 = vmax.f32 %v592_v20, 0.0  ;;  %v1416_v4 = vld [vmem:[%s6892_s3 + $0x70] sm:$0xff]  ;;  %v4584_v7 = vpack.i.bf16 %v5163_v63, %v5097_v14  ;;  %4488 = vmatpush1.bf16.msra.mxu1 %v4461_v0  ;;  %4462 = vmatpush1.bf16.msra.mxu0 %v4461_v0  ;;  %v4467_v20 = vpack.c.bf16 %v1419_v17, %v1418_v16  ;;  %v4574_v21 = vpack.i.bf16 %v5197_v19, %v5163_v63 }
 0x10b   : > { %4540 = vrot.lane.b32.xlu1 %v4539_v22, %s4853_s28  ;;  %4520 = vrot.lane.b32.xlu0 %v4519_v23, %s4853_s28  ;;  %v4394_v33 = vpop.f32.mrb[12].mxu0  ;;  %v625_v35 = vmax.f32 %v587_v32, 0.0  ;;  %v4464_v9 = vpack.c.bf16 %v1417_v6, %v1416_v4  ;;  %v5184_v11 = vld [vmem:[#allocation2 + $0x52] sm:$0xff]  ;;  %v795_v18 = vld [vmem:[#allocation2 + $0x80] sm:$0xff] }
 0x10c   : > { %687 = vst.msk [vmem:[#allocation2 + $0xe1] sm:$0xff] %vm631_vm1, %v626_v31  ;;  %v596_v36 = vpop.f32.mrb[13].mxu0  ;;  %v602_v42 = vadd.f32 %v4394_v33, %v5032_v29  ;;  %4480 = vmatprep.subr.bf16.mxu1 %v4850_v48  ;;  %v4594_v12 = vpack.i.bf16 %v5184_v11, %v5074_v2  ;;  %4463 = vmatprep.subr.bf16.mxu0 %v4850_v48  ;;  %v5207_v22 = vld [vmem:[#allocation2 + $0x82] sm:$0xff]  ;;  %v715_v26 = vld [vmem:[#allocation2 + $0x71] sm:$0xff] }
 0x10d   : > { %686 = vst.msk [vmem:[#allocation2 + $0xd1] sm:$0xff] %vm631_vm1, %v625_v35  ;;  %v597_v43 = vadd.f32 %v5032_v29, %v596_v36  ;;  %v4599_v2 = vpack.i.bf16 %v5086_v10, %v795_v18  ;;  %v761_v23 = vld [vmem:[#allocation2 + $0x61] sm:$0xff]  ;;  %v4609_v24 = vpack.i.bf16 %v5052_v54, %v5207_v22  ;;  %v5218_v30 = vld [vmem:[#allocation2 + $0x72] sm:$0xff] }
 0x10e   : > { %v628_v46 = vmax.f32 %v602_v42, 0.0  ;;  %4489 = vmatpush1.bf16.msra.mxu1 %v4464_v9  ;;  %4465 = vmatpush1.bf16.msra.mxu0 %v4464_v9  ;;  %v4579_v25 = vpack.i.bf16 %v761_v23, %v5150_v58  ;;  %v811_v31 = vld [vmem:[#allocation2 + $0x81] sm:$0xff]  ;;  %v5225_v33 = vld [vmem:[#allocation2 + $0x70] sm:$0xff] }
 0x10f   : > { %4545 = vrot.lane.b32.xlu1 %v4544_v37, %s4854_s16  ;;  %4525 = vrot.lane.b32.xlu0 %v4524_v38, %s4854_s16  ;;  %v4397_v44 = vpop.f32.mrb[14].mxu0  ;;  %v627_v47 = vmax.f32 %v597_v43, 0.0  ;;  %v4604_v32 = vpack.i.bf16 %v5117_v28, %v811_v31  ;;  %v4624_v34 = vpack.i.bf16 %v795_v18, %v5225_v33  ;;  %v4634_v35 = vpack.i.bf16 %v5225_v33, %v5197_v19  ;;  %v716_v36 = vld [vmem:[#allocation2 + $0xa1] sm:$0xff] }
 0x110   : > { %v612_v49 = vadd.f32 %v4397_v44, %v5032_v29  ;;  %v606_v50 = vpop.f32.mrb[15].mxu0  ;;  %689 = vst.msk [vmem:[#allocation2 + $0x101] sm:$0xff] %vm631_vm1, %v628_v46  ;;  %4481 = vmatprep.subr.bf16.mxu1 %v4850_v48  ;;  %4466 = vmatprep.subr.bf16.mxu0 %v4850_v48  ;;  %v5216_v48 = vld [vmem:[#allocation2 + $0x62] sm:$0xff]  ;;  %v717_v37 = vld [vmem:[#allocation2 + $0xb1] sm:$0xff]  ;;  %v4629_v38 = vpack.i.bf16 %v811_v31, %v715_v26 }
 0x111   : > { %v607_v56 = vadd.f32 %v5032_v29, %v606_v50  ;;  %688 = vst.msk [vmem:[#allocation2 + $0xf1] sm:$0xff] %vm631_vm1, %v627_v47  ;;  %v4564_v29 = vpack.i.bf16 %v5150_v58, %v759_v27  ;;  %v4614_v27 = vpack.i.bf16 %v715_v26, %v761_v23  ;;  %v4619_v54 = vpack.i.bf16 %v5218_v30, %v5216_v48  ;;  %v718_v40 = vld [vmem:[#allocation2 + $0xc1] sm:$0xff]  ;;  %v733_v42 = vld [vmem:[#allocation2 + $0xb2] sm:$0xff] }
 0x112   : > { %v630_v59 = vmax.f32 %v612_v49, 0.0  ;;  %4490 = vmatpush1.bf16.msra.mxu1 %v4467_v20  ;;  %4468 = vmatpush1.bf16.msra.mxu0 %v4467_v20  ;;  %v4649_v28 = vpack.i.bf16 %v717_v37, %v716_v36  ;;  %v4654_v44 = vpack.i.bf16 %v733_v42, %v732_v39  ;;  %v5238_v45 = vld [vmem:[#allocation2 + $0xc2] sm:$0xff]  ;;  %v5242_v47 = vld [vmem:[#allocation2 + $0xb0] sm:$0xff] }
 0x113   : > { %4560 = vrot.lane.b32.xlu1 %v4559_v53, %s4855_s24  ;;  %4530 = vrot.lane.b32.xlu0 %v4529_v55, %s4851_s15  ;;  %v629_v60 = vmax.f32 %v607_v56, 0.0  ;;  %v5244_v49 = vld [vmem:[#allocation2 + $0xc0] sm:$0xff]  ;;  %v4664_v56 = vpack.i.bf16 %v718_v40, %v717_v37 }
 0x114   : > { %691 = vst.msk [vmem:[#allocation2 + $0x121] sm:$0xff] %vm631_vm1, %v630_v59  ;;  %v719_v41 = vld [vmem:[#allocation2 + $0xd1] sm:$0xff]  ;;  %v4659_v51 = vpack.i.bf16 %v5244_v49, %v5242_v47  ;;  %v5254_v53 = vld [vmem:[#allocation2 + $0xe0] sm:$0xff]  ;;  %v4669_v59 = vpack.i.bf16 %v5238_v45, %v733_v42 }
 0x115   : > { %690 = vst.msk [vmem:[#allocation2 + $0x111] sm:$0xff] %vm631_vm1, %v629_v60  ;;  %v4674_v43 = vpack.i.bf16 %v719_v41, %v718_v40  ;;  %v5240_v46 = vld [vmem:[#allocation2 + $0xd2] sm:$0xff]  ;;  %v767_v57 = vld [vmem:[#allocation2 + $0xe1] sm:$0xff] }
 0x116   : > { %v4679_v50 = vpack.i.bf16 %v5240_v46, %v5238_v45  ;;  %v5252_v52 = vld [vmem:[#allocation2 + $0xd0] sm:$0xff]  ;;  %v4689_v58 = vpack.i.bf16 %v767_v57, %v719_v41 }
 0x117   : > { %4565 = vrot.lane.b32.xlu1 %v4564_v29, %s4851_s15  ;;  %4550 = vrot.lane.b32.xlu0 %v4549_v61, %s4856_s12  ;;  %v4684_v55 = vpack.i.bf16 %v5254_v53, %v5252_v52  ;;  %v4694_v60 = vpack.i.bf16 %v5252_v52, %v5244_v49  ;;  %v722_v4 = vld [vmem:[#allocation2 + $0x101] sm:$0xff] }
 0x118   : > { %v721_v61 = vld [vmem:[#allocation2 + $0xf1] sm:$0xff]  ;;  %v5287_v16 = vld [vmem:[#allocation2 + $0x102] sm:$0xff] }
 0x119   : > { %v4709_v1 = vpack.i.bf16 %v721_v61, %v767_v57  ;;  %v5273_v3 = vld [vmem:[#allocation2 + $0xf2] sm:$0xff]  ;;  %v4724_v20 = vpack.i.bf16 %v722_v4, %v721_v61 }
 0x11b   : > { %4585 = vrot.lane.b32.xlu1 %v4584_v7, %s4857_s23  ;;  %4555 = vrot.lane.b32.xlu0 %v4554_v8, %s4857_s23  ;;  %v5279_v7 = vld [vmem:[#allocation2 + $0xf0] sm:$0xff]  ;;  %v5281_v8 = vld [vmem:[#allocation2 + $0x100] sm:$0xff] }
 0x11c   : > { %v723_v6 = vld [vmem:[#allocation2 + $0x111] sm:$0xff] }
 0x11d   : > { %v4744_v9 = vpack.i.bf16 %v723_v6, %v722_v4  ;;  %v5289_v17 = vld [vmem:[#allocation2 + $0x112] sm:$0xff] }
 0x11e   : > { %v4749_v18 = vpack.i.bf16 %v5289_v17, %v5287_v16 }
 0x11f   : > { %4595 = vrot.lane.b32.xlu1 %v4594_v12, %s4856_s12  ;;  %4570 = vrot.lane.b32.xlu0 %v4594_v12, %s4852_s22  ;;  %v4719_v12 = vpack.i.bf16 %v5281_v8, %v5279_v7 }
 0x123   : > { %4600 = vrot.lane.b32.xlu1 %v4599_v2, %s4857_s23  ;;  %4575 = vrot.lane.b32.xlu0 %v4574_v21, %s4853_s28  ;;  %v5295_v2 = vld [vmem:[#allocation2 + $0x110] sm:$0xff]  ;;  %v755_v21 = vld [vmem:[#allocation2 + $0x120] sm:$0xff] }
 0x124   : > { %v4754_v23 = vpack.i.bf16 %v755_v21, %v5295_v2  ;;  %v4764_v31 = vpack.i.bf16 %v5295_v2, %v5281_v8 }
 0x127   : > { %4610 = vrot.lane.b32.xlu1 %v4609_v24, %s4856_s12  ;;  %4580 = vrot.lane.b32.xlu0 %v4579_v25, %s4854_s16  ;;  %v4729_v24 = vpack.i.bf16 %v5279_v7, %v5254_v53  ;;  %v771_v25 = vld [vmem:[#allocation2 + $0x121] sm:$0xff] }
 0x128   : > { %v4759_v26 = vpack.i.bf16 %v771_v25, %v723_v6 }
 0x12b   : > { %4615 = vrot.lane.b32.xlu1 %v4614_v27, %s4851_s15  ;;  %4590 = vrot.lane.b32.xlu0 %v4564_v29, %s4855_s24  ;;  %v5267_v29 = vld [vmem:[#allocation2 + $0xe2] sm:$0xff] }
 0x12c   : > { %v4704_v62 = vpack.i.bf16 %v5267_v29, %v5240_v46  ;;  %v4714_v0 = vpack.i.bf16 %v5273_v3, %v5267_v29 }
 0x12f   : > { %4620 = vrot.lane.b32.xlu1 %v4619_v54, %s4852_s22  ;;  %4605 = vrot.lane.b32.xlu0 %v4604_v32, %s4855_s24  ;;  %v804_v32 = vld [vmem:[#allocation2 + $0x130] sm:$0xff] }
 0x133   : > { %4625 = vrot.lane.b32.xlu1 %v4624_v34, %s4853_s28  ;;  %4635 = vrot.lane.b32.xlu0 %v4634_v35, %s4857_s23  ;;  %v820_v34 = vld [vmem:[#allocation2 + $0x131] sm:$0xff] }
 0x137   : > { %4630 = vrot.lane.b32.xlu1 %v4629_v38, %s4854_s16  ;;  %4645 = vrot.lane.b32.xlu0 %v4619_v54, %s4856_s12  ;;  %v5315_v54 = vld [vmem:[#allocation2 + $0x122] sm:$0xff] }
 0x13b   : > { %4640 = vrot.lane.b32.xlu1 %v4614_v27, %s4855_s24  ;;  %4650 = vrot.lane.b32.xlu0 %v4649_v28, %s4851_s15  ;;  %v4739_v27 = vpack.i.bf16 %v5287_v16, %v5273_v3 }
 0x13f   : > { %4675 = vrot.lane.b32.xlu1 %v4674_v43, %s4851_s15  ;;  %4655 = vrot.lane.b32.xlu0 %v4654_v44, %s4852_s22 }
 0x143   : > { %4680 = vrot.lane.b32.xlu1 %v4679_v50, %s4852_s22  ;;  %4660 = vrot.lane.b32.xlu0 %v4659_v51, %s4853_s28 }
 0x147   : > { %4685 = vrot.lane.b32.xlu1 %v4684_v55, %s4853_s28  ;;  %4665 = vrot.lane.b32.xlu0 %v4664_v56, %s4854_s16 }
 0x14b   : > { %4690 = vrot.lane.b32.xlu1 %v4689_v58, %s4854_s16  ;;  %4670 = vrot.lane.b32.xlu0 %v4669_v59, %s4856_s12 }
 0x14f   : > { %4695 = vrot.lane.b32.xlu1 %v4694_v60, %s4857_s23  ;;  %4700 = vrot.lane.b32.xlu0 %v4674_v43, %s4855_s24 }
 0x153   : > { %4705 = vrot.lane.b32.xlu1 %v4704_v62, %s4856_s12  ;;  %4710 = vrot.lane.b32.xlu0 %v4709_v1, %s4851_s15 }
 0x157   : > { %4735 = vrot.lane.b32.xlu1 %v4709_v1, %s4855_s24  ;;  %4715 = vrot.lane.b32.xlu0 %v4714_v0, %s4852_s22 }
 0x15b   : > { %4745 = vrot.lane.b32.xlu1 %v4744_v9, %s4851_s15  ;;  %4720 = vrot.lane.b32.xlu0 %v4719_v12, %s4853_s28 }
 0x15f   : > { %4750 = vrot.lane.b32.xlu1 %v4749_v18, %s4852_s22  ;;  %4725 = vrot.lane.b32.xlu0 %v4724_v20, %s4854_s16 }
 0x163   : > { %4755 = vrot.lane.b32.xlu1 %v4754_v23, %s4853_s28  ;;  %4730 = vrot.lane.b32.xlu0 %v4729_v24, %s4857_s23 }
 0x167   : > { %4760 = vrot.lane.b32.xlu1 %v4759_v26, %s4854_s16  ;;  %4740 = vrot.lane.b32.xlu0 %v4739_v27, %s4856_s12 }
 0x16b   : > { %4765 = vrot.lane.b32.xlu1 %v4764_v31, %s4857_s23  ;;  %4770 = vrot.lane.b32.xlu0 %v4744_v9, %s4855_s24  ;;  %v692_v9 = vld [vmem:[#allocation2] sm:$0xff] }
 0x16f   : > { %1137 = vrot.lane.b32.xlu1 %v5289_v17, %s4856_s12  ;;  %1201 = vrot.lane.b32.xlu0 %v755_v21, %s4857_s23 }
 0x173   : > { %1265 = vrot.lane.b32.xlu1 %v771_v25, %s4855_s24  ;;  %1139 = vrot.lane.b32.xlu0 %v5315_v54, %s4856_s12 }
 0x175   : > { %v4511_v35 = vpop.permute.xlu0 %4510 }
 0x176   : > { %v4512_v0 = vunpack.i.l.bf16 %v4511_v35  ;;  %v4513_v12 = vunpack.i.h.bf16 %v4511_v35 }
 0x177   : > { %1203 = vrot.lane.b32.xlu1 %v804_v32, %s4857_s23  ;;  %1267 = vrot.lane.b32.xlu0 %v820_v34, %s4855_s24  ;;  %s6835_s24 = scalar_lea.vmem %s6900_s11, %s4242_s13 }
 0x178   : > { %v1285_v27 = vsel %vm631_vm1, %v692_v9, %v4512_v0  ;;  %v1286_v32 = vsel %vm631_vm1, %v5099_v15, %v4513_v12 }
 0x179   : > { %v4536_v36 = vpop.permute.xlu1 %4535  ;;  %v4516_v37 = vpop.permute.xlu0 %4515 }
 0x17a   : > { %v4537_v60 = vunpack.i.l.bf16 %v4536_v36  ;;  %v4538_v18 = vunpack.i.h.bf16 %v4536_v36  ;;  %v4517_v20 = vunpack.i.l.bf16 %v4516_v37  ;;  %v4518_v21 = vunpack.i.h.bf16 %v4516_v37 }
 0x17c   : > { %v1302_v37 = vsel %vm1301_vm4, %v1285_v27, %v4517_v20 }
 0x17d   : > { %v4541_v38 = vpop.permute.xlu1 %4540  ;;  %v5322_v28 = vpop.permute.xlu0 %4520 }
 0x17e   : > { %v4542_v4 = vunpack.i.l.bf16 %v4541_v38  ;;  %v4522_v34 = vunpack.i.l.bf16 %v5322_v28 }
 0x180   : > { %v1319_v12 = vsel %vm1318_vm5, %v1302_v37, %v4522_v34 }
 0x181   : > { %v4546_v39 = vpop.permute.xlu1 %4545  ;;  %v5324_v40 = vpop.permute.xlu0 %4525 }
 0x182   : > { %v4547_v23 = vunpack.i.l.bf16 %v4546_v39  ;;  %v4527_v15 = vunpack.i.l.bf16 %v5324_v40 }
 0x185   : > { %v5326_v41 = vpop.permute.xlu1 %4560  ;;  %v4531_v42 = vpop.permute.xlu0 %4530 }
 0x186   : > { %v4532_v55 = vunpack.i.l.bf16 %v4531_v42  ;;  %v4533_v58 = vunpack.i.h.bf16 %v4531_v42  ;;  %v4523_v42 = vunpack.i.h.bf16 %v5322_v28 }
 0x188   : > { %v1287_v59 = vsel %vm631_vm1, %v5086_v10, %v4532_v55  ;;  %v1288_v6 = vsel %vm631_vm1, %v5095_v13, %v4533_v58  ;;  %v4543_v13 = vunpack.i.h.bf16 %v4541_v38  ;;  %v1303_v58 = vsel %vm1301_vm4, %v1286_v32, %v4518_v21 }
 0x189   : > { %v5328_v43 = vpop.permute.xlu1 %4565  ;;  %v5330_v44 = vpop.permute.xlu0 %4550  ;;  %v1304_v61 = vsel %vm1301_vm4, %v1287_v59, %v4537_v60  ;;  %v1305_v24 = vsel %vm1301_vm4, %v1288_v6, %v4538_v18  ;;  %v4548_v59 = vunpack.i.h.bf16 %v4546_v39  ;;  %v4528_v60 = vunpack.i.h.bf16 %v5324_v40 }
 0x18a   : > { %v1321_v10 = vsel %vm1318_vm5, %v1304_v61, %v4542_v4  ;;  %v4553_v31 = vunpack.i.h.bf16 %v5330_v44  ;;  %v1322_v38 = vsel %vm1318_vm5, %v1305_v24, %v4543_v13  ;;  %v4552_v4 = vunpack.i.l.bf16 %v5330_v44 }
 0x18b   : > { %v1337_v36 = vsel %vm421_vm0, %v1321_v10, %v4547_v23  ;;  %v1338_v20 = vsel %vm421_vm0, %v1322_v38, %v4548_v59  ;;  %v1320_v40 = vsel %vm1318_vm5, %v1303_v58, %v4523_v42  ;;  %v1335_v23 = vsel %vm421_vm0, %v1319_v12, %v4527_v15 }
 0x18c   : > { %v1354_v28 = vsel %vm1351_vm6, %v1337_v36, %v4553_v31  ;;  %v1336_v24 = vsel %vm421_vm0, %v1320_v40, %v4528_v60  ;;  %v1352_v32 = vsel %vm1351_vm6, %v1335_v23, %v4552_v4  ;;  %v4567_v36 = vunpack.i.l.bf16 %v5328_v43 }
 0x18d   : > { %v5332_v50 = vpop.permute.xlu1 %4585  ;;  %v5334_v51 = vpop.permute.xlu0 %4555  ;;  %v4568_v4 = vunpack.i.h.bf16 %v5328_v43 }
 0x18e   : > { %v4587_v35 = vunpack.i.l.bf16 %v5332_v50  ;;  %v4588_v27 = vunpack.i.h.bf16 %v5332_v50  ;;  %v4558_v37 = vunpack.i.h.bf16 %v5334_v51 }
 0x190   : > { %v1371_v39 = vsel %vm1368_vm7, %v1354_v28, %v4587_v35 }
 0x191   : > { %v5336_v56 = vpop.permute.xlu1 %4595  ;;  %v5338_v57 = vpop.permute.xlu0 %4570 }
 0x192   : > { %v4597_v55 = vunpack.i.l.bf16 %v5336_v56  ;;  %v4573_v28 = vunpack.i.h.bf16 %v5338_v57 }
 0x194   : > { %v1355_v44 = vsel %vm1351_vm6, %v1338_v20, %v4597_v55  ;;  %v4572_v55 = vunpack.i.l.bf16 %v5338_v57 }
 0x195   : > { %v5343_v62 = vpop.permute.xlu1 %4600  ;;  %v5345_v1 = vpop.permute.xlu0 %4575  ;;  %v1372_v42 = vsel %vm1368_vm7, %v1355_v44, %v4588_v27 }
 0x196   : > { %v4603_v18 = vunpack.i.h.bf16 %v5343_v62  ;;  %v4577_v59 = vunpack.i.l.bf16 %v5345_v1  ;;  %v4578_v43 = vunpack.i.h.bf16 %v5345_v1 }
 0x198   : > { %v1369_v50 = vsel %vm1368_vm7, %v1352_v32, %v4603_v18 }
 0x199   : > { %v5351_v25 = vpop.permute.xlu1 %4610  ;;  %v5353_v26 = vpop.permute.xlu0 %4580 }
 0x19a   : > { %v4613_v6 = vunpack.i.h.bf16 %v5351_v25  ;;  %v4583_v44 = vunpack.i.h.bf16 %v5353_v26 }
 0x19c   : > { %v1353_v35 = vsel %vm1351_vm6, %v1336_v24, %v4613_v6  ;;  %v4582_v6 = vunpack.i.l.bf16 %v5353_v26 }
 0x19d   : > { %v5369_v61 = vpop.permute.xlu1 %4615  ;;  %v4591_v0 = vpop.permute.xlu0 %4590  ;;  %v1370_v15 = vsel %vm1368_vm7, %v1353_v35, %v4558_v37 }
 0x19e   : > { %v4592_v9 = vunpack.i.l.bf16 %v4591_v0  ;;  %v4593_v10 = vunpack.i.h.bf16 %v4591_v0  ;;  %v4563_v0 = vunpack.i.h.bf16 %v5326_v41  ;;  %v4617_v18 = vunpack.i.l.bf16 %v5369_v61 }
 0x19f   : > { %v4618_v27 = vunpack.i.h.bf16 %v5369_v61 }
 0x1a0   : > { %v1388_v21 = vsel %vm1385_vm8, %v1371_v39, %v4592_v9  ;;  %v1389_v58 = vsel %vm1385_vm8, %v1372_v42, %v4593_v10  ;;  %v1289_v9 = vsel %vm631_vm1, %v5097_v14, %v4567_v36  ;;  %v1387_v39 = vsel %vm1385_vm8, %v1370_v15, %v4563_v0 }
 0x1a1   : > { %v5384_v13 = vpop.permute.xlu1 %4620  ;;  %v5386_v31 = vpop.permute.xlu0 %4605  ;;  %1550 = vmatmul.mubr.f32.vlgmr.msra.gmra.mrb[0].mxu1 %v1388_v21  ;;  %v1306_v12 = vsel %vm1301_vm4, %v1289_v9, %v4572_v55  ;;  %v1290_v14 = vsel %vm631_vm1, %v5163_v63, %v4568_v4  ;;  %v4598_v21 = vunpack.i.h.bf16 %v5336_v56  ;;  %v1291_v32 = vsel %vm631_vm1, %v5197_v19, %v4617_v18 }
 0x1a2   : > { %v4608_v34 = vunpack.i.h.bf16 %v5386_v31  ;;  %4266 = vmatprep.mubr.msk.f32.mxu1 %vm631_vm1, %v5184_v11  ;;  %v1323_v20 = vsel %vm1318_vm5, %v1306_v12, %v4577_v59  ;;  %v1307_v24 = vsel %vm1301_vm4, %v1290_v14, %v4573_v28  ;;  %v4623_v35 = vunpack.i.h.bf16 %v5384_v13 }
 0x1a3   : > { %v1324_v63 = vsel %vm1318_vm5, %v1307_v24, %v4578_v43  ;;  %v4602_v43 = vunpack.i.l.bf16 %v5343_v62 }
 0x1a4   : > { %v1386_v38 = vsel %vm1385_vm8, %v1369_v50, %v4608_v34 }
 0x1a5   : > { %v4626_v60 = vpop.permute.xlu1 %4625  ;;  %v5401_v11 = vpop.permute.xlu0 %4635  ;;  %1540 = vmatmul.mubr.f32.vlgmr.msra.gmra.mrb[16].mxu0 %v1386_v38  ;;  %1555 = vmatmul.mubr.f32.gmra.mrb[2].mxu1 %v1389_v58  ;;  %v1340_v38 = vsel %vm421_vm0, %v1324_v63, %v4583_v44 }
 0x1a6   : > { %4264 = vmatprep.mubr.msk.f32.mxu0 %vm631_vm1, %v5079_v5  ;;  %4267 = vmatprep.mubr.msk.f32.mxu1 %vm631_vm1, %v5216_v48  ;;  %v4622_v5 = vunpack.i.l.bf16 %v5384_v13  ;;  %v1339_v48 = vsel %vm421_vm0, %v1323_v20, %v4582_v6  ;;  %v4627_v57 = vunpack.i.l.bf16 %v4626_v60  ;;  %v4637_v23 = vunpack.i.l.bf16 %v5401_v11 }
 0x1a7   : > { %v1356_v26 = vsel %vm1351_vm6, %v1339_v48, %v4598_v21  ;;  %v4628_v50 = vunpack.i.h.bf16 %v4626_v60  ;;  %v1292_v13 = vsel %vm631_vm1, %v5225_v33, %v4618_v27  ;;  %v4638_v6 = vunpack.i.h.bf16 %v5401_v11 }
 0x1a8   : > { %v1308_v36 = vsel %vm1301_vm4, %v1291_v32, %v4622_v5  ;;  %v1373_v59 = vsel %vm1368_vm7, %v1356_v26, %v4637_v23  ;;  %v1309_v60 = vsel %vm1301_vm4, %v1292_v13, %v4623_v35  ;;  %v4612_v5 = vunpack.i.l.bf16 %v5351_v25  ;;  %v828_v23 = vld [vmem:[#allocation2 + $0x92] sm:$0xff] }
 0x1a9   : > { %v4631_v40 = vpop.permute.xlu1 %4630  ;;  %v4646_v10 = vpop.permute.xlu0 %4645  ;;  %1545 = vmatmul.mubr.f32.gmra.mrb[18].mxu0 %v1387_v39  ;;  %v1325_v42 = vsel %vm1318_vm5, %v1308_v36, %v4627_v57  ;;  %v1326_v18 = vsel %vm1318_vm5, %v1309_v60, %v4628_v50  ;;  %v700_v39 = vld [vmem:[#allocation2 + $0xa0] sm:$0xff]  ;;  %v4607_v21 = vunpack.i.l.bf16 %v5386_v31  ;;  %v4557_v25 = vunpack.i.l.bf16 %v5334_v51 }
 0x1aa   : > { %v4632_v1 = vunpack.i.l.bf16 %v4631_v40  ;;  %v4647_v34 = vunpack.i.l.bf16 %v4646_v10  ;;  %v4648_v55 = vunpack.i.h.bf16 %v4646_v10  ;;  %v4633_v19 = vunpack.i.h.bf16 %v4631_v40 }
 0x1ab   : > { %v4562_v31 = vunpack.i.l.bf16 %v5326_v41 }
 0x1ac   : > { %v1341_v58 = vsel %vm421_vm0, %v1325_v42, %v4632_v1  ;;  %v1357_v4 = vsel %vm1351_vm6, %v1340_v38, %v4647_v34  ;;  %v1342_v20 = vsel %vm421_vm0, %v1326_v18, %v4633_v19 }
 0x1ad   : > { %v4641_v56 = vpop.permute.xlu1 %4640  ;;  %v5433_v37 = vpop.permute.xlu0 %4650  ;;  %v1358_v33 = vsel %vm1351_vm6, %v1341_v58, %v4648_v55  ;;  %v1374_v11 = vsel %vm1368_vm7, %v1357_v4, %v4638_v6  ;;  %v1359_v62 = vsel %vm1351_vm6, %v1342_v20, %v4612_v5 }
 0x1ae   : > { %v4642_v61 = vunpack.i.l.bf16 %v4641_v56  ;;  %v4643_v15 = vunpack.i.h.bf16 %v4641_v56  ;;  %v4652_v9 = vunpack.i.l.bf16 %v5433_v37  ;;  %v1376_v34 = vsel %vm1368_vm7, %v1359_v62, %v4557_v25 }
 0x1af   : > { %v1393_v51 = vsel %vm1385_vm8, %v1376_v34, %v4562_v31  ;;  %v4653_v35 = vunpack.i.h.bf16 %v5433_v37 }
 0x1b0   : > { %v1390_v0 = vsel %vm1385_vm8, %v1373_v59, %v4642_v61  ;;  %v1391_v10 = vsel %vm1385_vm8, %v1374_v11, %v4643_v15  ;;  %v1293_v14 = vsel %vm631_vm1, %v700_v39, %v4652_v9 }
 0x1b1   : > { %v5447_v28 = vpop.permute.xlu1 %4675  ;;  %v4656_v12 = vpop.permute.xlu0 %4655  ;;  %1560 = vmatmul.mubr.f32.gmra.mrb[4].mxu1 %v1390_v0  ;;  %v1294_v61 = vsel %vm631_vm1, %v5242_v47, %v4653_v35 }
 0x1b2   : > { %4268 = vmatprep.mubr.msk.f32.mxu1 %vm631_vm1, %v5218_v30  ;;  %v4657_v40 = vunpack.i.l.bf16 %v4656_v12  ;;  %v1375_v30 = vsel %vm1368_vm7, %v1358_v33, %v4602_v43  ;;  %v4658_v26 = vunpack.i.h.bf16 %v4656_v12 }
 0x1b3   : > { %v1392_v24 = vsel %vm1385_vm8, %v1375_v30, %v4607_v21 }
 0x1b4   : > { %v1310_v1 = vsel %vm1301_vm4, %v1293_v14, %v4657_v40  ;;  %v1311_v59 = vsel %vm1301_vm4, %v1294_v61, %v4658_v26  ;;  %v4677_v40 = vunpack.i.l.bf16 %v5447_v28  ;;  %v4678_v14 = vunpack.i.h.bf16 %v5447_v28 }
 0x1b5   : > { %v5459_v48 = vpop.permute.xlu1 %4680  ;;  %v4661_v57 = vpop.permute.xlu0 %4660  ;;  %1565 = vmatmul.mubr.f32.gmra.mrb[6].mxu1 %v1391_v10 }
 0x1b6   : > { %4269 = vmatprep.mubr.msk.f32.mxu1 %vm631_vm1, %v5207_v22  ;;  %v4662_v44 = vunpack.i.l.bf16 %v4661_v57  ;;  %v4663_v41 = vunpack.i.h.bf16 %v4661_v57  ;;  %v4682_v10 = vunpack.i.l.bf16 %v5459_v48  ;;  %v4683_v21 = vunpack.i.h.bf16 %v5459_v48 }
 0x1b7   : > { %v1296_v28 = vsel %vm631_vm1, %v5252_v52, %v4678_v14 }
 0x1b8   : > { %v1327_v22 = vsel %vm1318_vm5, %v1310_v1, %v4662_v44  ;;  %v1328_v4 = vsel %vm1318_vm5, %v1311_v59, %v4663_v41 }
 0x1b9   : > { %v5469_v27 = vpop.permute.xlu1 %4685  ;;  %v4666_v32 = vpop.permute.xlu0 %4665  ;;  %1570 = vmatmul.mubr.f32.gmra.mrb[8].mxu1 %v1392_v24 }
 0x1ba   : > { %v4667_v63 = vunpack.i.l.bf16 %v4666_v32  ;;  %4270 = vmatprep.mubr.msk.f32.mxu1 %vm631_vm1, %v828_v23  ;;  %v4668_v55 = vunpack.i.h.bf16 %v4666_v32  ;;  %v4688_v25 = vunpack.i.h.bf16 %v5469_v27 }
 0x1bc   : > { %v1343_v50 = vsel %vm421_vm0, %v1327_v22, %v4667_v63  ;;  %v1344_v60 = vsel %vm421_vm0, %v1328_v4, %v4668_v55 }
 0x1bd   : > { %v5477_v36 = vpop.permute.xlu1 %4690  ;;  %v4671_v56 = vpop.permute.xlu0 %4670  ;;  %1575 = vmatmul.mubr.f32.gmra.mrb[10].mxu1 %v1393_v51 }
 0x1be   : > { %v4672_v42 = vunpack.i.l.bf16 %v4671_v56  ;;  %4271 = vmatprep.mubr.msk.f32.mxu1 %vm631_vm1, %v5238_v45  ;;  %v4673_v38 = vunpack.i.h.bf16 %v4671_v56  ;;  %v4692_v62 = vunpack.i.l.bf16 %v5477_v36  ;;  %v4693_v1 = vunpack.i.h.bf16 %v5477_v36 }
 0x1c0   : > { %v1360_v37 = vsel %vm1351_vm6, %v1343_v50, %v4672_v42  ;;  %v1361_v18 = vsel %vm1351_vm6, %v1344_v60, %v4673_v38 }
 0x1c1   : > { %v4696_v19 = vpop.permute.xlu1 %4695  ;;  %v4701_v58 = vpop.permute.xlu0 %4700 }
 0x1c2   : > { %v4698_v13 = vunpack.i.h.bf16 %v4696_v19  ;;  %v4697_v15 = vunpack.i.l.bf16 %v4696_v19  ;;  %v4702_v0 = vunpack.i.l.bf16 %v4701_v58  ;;  %v4703_v6 = vunpack.i.h.bf16 %v4701_v58 }
 0x1c4   : > { %v1377_v45 = vsel %vm1368_vm7, %v1360_v37, %v4697_v15  ;;  %v1378_v39 = vsel %vm1368_vm7, %v1361_v18, %v4698_v13 }
 0x1c5   : > { %v4706_v9 = vpop.permute.xlu1 %4705  ;;  %v4711_v12 = vpop.permute.xlu0 %4710  ;;  %v1394_v47 = vsel %vm1385_vm8, %v1377_v45, %v4702_v0  ;;  %v1395_v20 = vsel %vm1385_vm8, %v1378_v39, %v4703_v6 }
 0x1c6   : > { %1580 = vmatmul.mubr.f32.gmra.mrb[12].mxu1 %v1394_v47  ;;  %v4707_v44 = vunpack.i.l.bf16 %v4706_v9  ;;  %v4708_v32 = vunpack.i.h.bf16 %v4706_v9  ;;  %v4713_v35 = vunpack.i.h.bf16 %v4711_v12  ;;  %v4712_v36 = vunpack.i.l.bf16 %v4711_v12 }
 0x1c7   : > { %4272 = vmatprep.mubr.msk.f32.mxu1 %vm631_vm1, %v5240_v46  ;;  %v4687_v46 = vunpack.i.l.bf16 %v5469_v27 }
 0x1c8   : > { %v1298_v13 = vsel %vm631_vm1, %v5279_v7, %v4713_v35  ;;  %v1297_v15 = vsel %vm631_vm1, %v5254_v53, %v4712_v36  ;;  %v836_v35 = vld [vmem:[#allocation2 + $0x132] sm:$0xff] }
 0x1c9   : > { %v5494_v33 = vpop.permute.xlu1 %4735  ;;  %v4716_v43 = vpop.permute.xlu0 %4715 }
 0x1ca   : > { %1585 = vmatmul.mubr.f32.gmra.mrb[14].mxu1 %v1395_v20  ;;  %v4737_v48 = vunpack.i.l.bf16 %v5494_v33  ;;  %v4718_v26 = vunpack.i.h.bf16 %v4716_v43  ;;  %v4717_v50 = vunpack.i.l.bf16 %v4716_v43  ;;  %v4738_v41 = vunpack.i.h.bf16 %v5494_v33 }
 0x1cb   : > { %4273 = vmatprep.mubr.msk.f32.mxu1 %vm631_vm1, %v5267_v29  ;;  %v1295_v29 = vsel %vm631_vm1, %v5244_v49, %v4677_v40  ;;  %v1313_v49 = vsel %vm1301_vm4, %v1296_v28, %v4683_v21 }
 0x1cc   : > { %v1312_v23 = vsel %vm1301_vm4, %v1295_v29, %v4682_v10  ;;  %v1330_v51 = vsel %vm1318_vm5, %v1313_v49, %v4688_v25  ;;  %v1314_v60 = vsel %vm1301_vm4, %v1297_v15, %v4717_v50  ;;  %v1315_v45 = vsel %vm1301_vm4, %v1298_v13, %v4718_v26 }
 0x1cd   : > { %v5499_v11 = vpop.permute.xlu1 %4745  ;;  %v5501_v5 = vpop.permute.xlu0 %4720  ;;  %v1329_v24 = vsel %vm1318_vm5, %v1312_v23, %v4687_v46  ;;  %v1346_v56 = vsel %vm421_vm0, %v1330_v51, %v4693_v1 }
 0x1ce   : > { %v1345_v27 = vsel %vm421_vm0, %v1329_v24, %v4692_v62  ;;  %v4722_v55 = vunpack.i.l.bf16 %v5501_v5  ;;  %v1363_v58 = vsel %vm1351_vm6, %v1346_v56, %v4708_v32  ;;  %v4723_v0 = vunpack.i.h.bf16 %v5501_v5 }
 0x1cf   : > { %v1362_v52 = vsel %vm1351_vm6, %v1345_v27, %v4707_v44  ;;  %v4747_v6 = vunpack.i.l.bf16 %v5499_v11  ;;  %v4748_v14 = vunpack.i.h.bf16 %v5499_v11 }
 0x1d0   : > { %v1331_v12 = vsel %vm1318_vm5, %v1314_v60, %v4722_v55  ;;  %v1332_v5 = vsel %vm1318_vm5, %v1315_v45, %v4723_v0  ;;  %v6901_v55 = vlaneseq }
 0x1d1   : > { %v5507_v57 = vpop.permute.xlu1 %4750  ;;  %v4726_v30 = vpop.permute.xlu0 %4725  ;;  %v1299_v62 = vsel %vm631_vm1, %v5281_v8, %v4747_v6 }
 0x1d2   : > { %v4727_v37 = vunpack.i.l.bf16 %v4726_v30  ;;  %v4728_v9 = vunpack.i.h.bf16 %v4726_v30  ;;  %v4752_v7 = vunpack.i.l.bf16 %v5507_v57 }
 0x1d4   : > { %v1347_v33 = vsel %vm421_vm0, %v1331_v12, %v4727_v37  ;;  %v1348_v46 = vsel %vm421_vm0, %v1332_v5, %v4728_v9  ;;  %v1316_v28 = vsel %vm1301_vm4, %v1299_v62, %v4752_v7 }
 0x1d5   : > { %v5520_v34 = vpop.permute.xlu1 %4755  ;;  %v4731_v31 = vpop.permute.xlu0 %4730 }
 0x1d6   : > { %v4733_v63 = vunpack.i.h.bf16 %v4731_v31  ;;  %v4732_v22 = vunpack.i.l.bf16 %v4731_v31  ;;  %v4757_v40 = vunpack.i.l.bf16 %v5520_v34  ;;  %v4758_v24 = vunpack.i.h.bf16 %v5520_v34 }
 0x1d7   : > { %v1300_v31 = vsel %vm631_vm1, %v5295_v2, %v4748_v14  ;;  %v1909_v14 = vld [vmem:[%s6898_s9 + $0x10] sm:$0xff] }
 0x1d8   : > { %v1379_v42 = vsel %vm1368_vm7, %v1362_v52, %v4732_v22  ;;  %v1380_v59 = vsel %vm1368_vm7, %v1363_v58, %v4733_v63  ;;  %v1333_v32 = vsel %vm1318_vm5, %v1316_v28, %v4757_v40  ;;  %v5653_v28 = vld [vmem:[%s6893_s4] ss:$0 sm:$0xff] }
 0x1d9   : > { %v4761_v61 = vpop.permute.xlu1 %4760  ;;  %v4741_v38 = vpop.permute.xlu0 %4740  ;;  %v1396_v19 = vsel %vm1385_vm8, %v1379_v42, %v4737_v48  ;;  %v1397_v39 = vsel %vm1385_vm8, %v1380_v59, %v4738_v41  ;;  %v1637_v42 = vld [vmem:[%s6894_s5 + $0x8] sm:$0xff] }
 0x1da   : > { %1590 = vmatmul.mubr.f32.gmra.mrb[16].mxu1 %v1396_v19  ;;  %v4742_v4 = vunpack.i.l.bf16 %v4741_v38  ;;  %v4743_v47 = vunpack.i.h.bf16 %v4741_v38  ;;  %v4762_v30 = vunpack.i.l.bf16 %v4761_v61  ;;  %v4763_v8 = vunpack.i.h.bf16 %v4761_v61  ;;  %v4296_v61 = vld [vmem:[%s6897_s8] ss:$0 sm:$0xff] }
 0x1db   : > { %4274 = vmatprep.mubr.msk.f32.mxu1 %vm631_vm1, %v5273_v3  ;;  %v5592_v38 = vshrl.u32 %v6901_v55, 7  ;;  %1900 = vbcast.lane.b32.xlu0 %v4296_v61, 256  ;;  %v1907_v19 = vld [vmem:[%s6898_s9] sm:$0xff] }
 0x1dc   : > { %v1364_v10 = vsel %vm1351_vm6, %v1347_v33, %v4742_v4  ;;  %v1365_v1 = vsel %vm1351_vm6, %v1348_v46, %v4743_v47  ;;  %v1349_v48 = vsel %vm421_vm0, %v1333_v32, %v4762_v30 }
 0x1dd   : > { %v4766_v18 = vpop.permute.xlu1 %4765  ;;  %v4771_v53 = vpop.permute.xlu0 %4770  ;;  %6939 = vst [vmem:[#allocation3_spill] sm:$0xff] %v5592_v38  ;;  %v5598_v58 = vsub.s32 0, %v5592_v38  ;;  %v5601_v37 = vsub.s32 1, %v5592_v38  ;;  %v5605_v13 = vsub.s32 2, %v5592_v38  ;;  %v5609_v0 = vsub.s32 3, %v5592_v38 }
 0x1de   : > { %v4768_v43 = vunpack.i.h.bf16 %v4766_v18  ;;  %v4767_v3 = vunpack.i.l.bf16 %v4766_v18  ;;  %v4772_v20 = vunpack.i.l.bf16 %v4771_v53  ;;  %1595 = vmatmul.mubr.f32.gmra.mrb[18].mxu1 %v1397_v39  ;;  %v4773_v29 = vunpack.i.h.bf16 %v4771_v53  ;;  %v1908_v53 = vld [vmem:[%s6898_s9 + $0x8] sm:$0xff] }
 0x1df   : > { %4275 = vmatprep.mubr.msk.f32.mxu1 %vm631_vm1, %v5287_v16  ;;  %v4753_v16 = vunpack.i.h.bf16 %v5507_v57  ;;  %v1926_v59 = vrot.slane %v1907_v19, %v5598_v58  ;;  %v1933_v15 = vrot.slane %v1907_v19, %v5601_v37  ;;  %v5612_v4 = vsub.s32 4, %v5592_v38 }
 0x1e0   : > { %v1381_v21 = vsel %vm1368_vm7, %v1364_v10, %v4767_v3  ;;  %v1382_v11 = vsel %vm1368_vm7, %v1365_v1, %v4768_v43  ;;  %v1940_v60 = vrot.slane %v1907_v19, %v5605_v13  ;;  %v1947_v45 = vrot.slane %v1907_v19, %v5609_v0 }
 0x1e1   : > { %v1138_v25 = vpop.permute.xlu1 %1137  ;;  %v1202_v44 = vpop.permute.xlu0 %1201  ;;  %v1398_v23 = vsel %vm1385_vm8, %v1381_v21, %v4772_v20  ;;  %v1399_v63 = vsel %vm1385_vm8, %v1382_v11, %v4773_v29  ;;  %v1317_v22 = vsel %vm1301_vm4, %v1300_v31, %v4753_v16  ;;  %1928 = vbcast.lane.b32.xlu1 %v1926_v59, 256  ;;  %v5617_v6 = vsub.s32 5, %v5592_v38  ;;  %v1910_v31 = vld [vmem:[%s6898_s9 + $0x18] sm:$0xff] }
 0x1e2   : > { %1600 = vmatmul.mubr.f32.gmra.mrb[20].mxu1 %v1398_v23  ;;  %v1366_v57 = vsel %vm1351_vm6, %v1349_v48, %v1138_v25  ;;  %v1334_v34 = vsel %vm1318_vm5, %v1317_v22, %v4758_v24  ;;  %1942 = vbcast.lane.b32.xlu0 %v1940_v60, 256  ;;  %v1954_v9 = vrot.slane %v1907_v19, %v5612_v4  ;;  %v5621_v12 = vsub.s32 6, %v5592_v38 }
 0x1e3   : > { %4276 = vmatprep.mubr.msk.f32.mxu1 %vm631_vm1, %v5289_v17  ;;  %v1383_v17 = vsel %vm1368_vm7, %v1366_v57, %v1202_v44  ;;  %v1350_v51 = vsel %vm421_vm0, %v1334_v34, %v4763_v8  ;;  %v1961_v7 = vrot.slane %v1907_v19, %v5617_v6  ;;  %v5625_v47 = vsub.s32 7, %v5592_v38 }
 0x1e4   : > { %v1968_v18 = vrot.slane %v1907_v19, %v5621_v12  ;;  %v1982_v33 = vrot.slane %v1908_v53, %v5598_v58  ;;  %v1989_v43 = vrot.slane %v1908_v53, %v5601_v37  ;;  %v1996_v3 = vrot.slane %v1908_v53, %v5605_v13 }
 0x1e5   : > { %v1266_v49 = vpop.permute.xlu1 %1265  ;;  %v1140_v27 = vpop.permute.xlu0 %1139  ;;  %1935 = vbcast.lane.b32.xlu1 %v1933_v15, 256  ;;  %v1975_v39 = vrot.slane %v1907_v19, %v5625_v47  ;;  %v2003_v20 = vrot.slane %v1908_v53, %v5609_v0  ;;  %v2010_v5 = vrot.slane %v1908_v53, %v5612_v4  ;;  %v2017_v40 = vrot.slane %v1908_v53, %v5617_v6 }
 0x1e6   : > { %1605 = vmatmul.mubr.f32.gmra.mrb[22].mxu1 %v1399_v63  ;;  %v1367_v2 = vsel %vm1351_vm6, %v1350_v51, %v1140_v27  ;;  %v1400_v52 = vsel %vm1385_vm8, %v1383_v17, %v1266_v49  ;;  %1956 = vbcast.lane.b32.xlu0 %v1954_v9, 256  ;;  %v2024_v10 = vrot.slane %v1908_v53, %v5621_v12  ;;  %vm4010_vm4 = vcmask 195712  }
 0x1e7   : > { %4277 = vmatprep.mubr.msk.f32.mxu1 %vm631_vm1, %v5315_v54  ;;  %v1636_v54 = vld [vmem:[%s6894_s5] sm:$0xff]  ;;  %v2031_v46 = vrot.slane %v1908_v53, %v5625_v47  ;;  %v2038_v30 = vrot.slane %v1909_v14, %v5598_v58  ;;  %v2045_v21 = vrot.slane %v1909_v14, %v5601_v37  ;;  %v2052_v62 = vrot.slane %v1909_v14, %v5605_v13 }
 0x1e8   : > { %v4469_v41 = vpack.c.bf16 %v1637_v42, %v1636_v54  ;;  %v2059_v29 = vrot.slane %v1909_v14, %v5609_v0  ;;  %v2066_v25 = vrot.slane %v1909_v14, %v5612_v4  ;;  %v2073_v1 = vrot.slane %v1909_v14, %v5617_v6 }
 0x1e9   : > { %v1204_v36 = vpop.permute.xlu1 %1203  ;;  %v1268_v26 = vpop.permute.xlu0 %1267  ;;  %1949 = vbcast.lane.b32.xlu1 %v1947_v45, 256  ;;  %v2080_v16 = vrot.slane %v1909_v14, %v5621_v12  ;;  %v2087_v57 = vrot.slane %v1909_v14, %v5625_v47  ;;  %v2094_v49 = vrot.slane %v1910_v31, %v5598_v58  ;;  %v2101_v51 = vrot.slane %v1910_v31, %v5601_v37 }
 0x1ea   : > { %v1384_v56 = vsel %vm1368_vm7, %v1367_v2, %v1204_v36  ;;  %1610 = vmatmul.mubr.f32.gmra.mrb[24].mxu1 %v1400_v52  ;;  %4470 = vmatprep.subr.bf16.mxu0 %v4469_v41  ;;  %v2108_v36 = vrot.slane %v1910_v31, %v5605_v13  ;;  %v2129_v61 = vrot.slane %v1910_v31, %v5617_v6  ;;  %vm4017_vm5 = vcmask 261312  }
 0x1eb   : > { %4278 = vmatprep.mubr.msk.f32.mxu1 %vm631_vm1, %v836_v35  ;;  %v1401_v50 = vsel %vm1385_vm8, %v1384_v56, %v1268_v26  ;;  %4472 = vmatpush3.bf16.msra.mxu0 %v4469_v41  ;;  %v2115_v56 = vrot.slane %v1910_v31, %v5609_v0  ;;  %v2136_v59 = vrot.slane %v1910_v31, %v5621_v12  ;;  %vm4024_vm6 = vcmask 326912  }
 0x1ec   : > { %1970 = vbcast.lane.b32.xlu0 %v1968_v18, 256  ;;  %v2143_v9 = vrot.slane %v1910_v31, %v5625_v47  ;;  %vm4031_vm7 = vcmask 392512   ;;  %vm4038_vm8 = vcmask 458112  }
 0x1ed   : > { %1963 = vbcast.lane.b32.xlu1 %v1961_v7, 256  ;;  %v5681_v7 = vld [vmem:[%s6898_s9 + $0x20] sm:$0xff] }
 0x1ee   : > { %1615 = vmatmul.mubr.f32.gmra.mrb[26].mxu1 %v1401_v50  ;;  %v2122_v50 = vrot.slane %v1910_v31, %v5612_v4  ;;  %v2150_v53 = vrot.slane %v5681_v7, %v5598_v58 }
 0x1f0   : > { %1984 = vbcast.lane.b32.xlu0 %v1982_v33, 256 }
 0x1f1   : > { %1977 = vbcast.lane.b32.xlu1 %v1975_v39, 256 }
 0x1f4   : > { %1998 = vbcast.lane.b32.xlu0 %v1996_v3, 256  ;;  %v2157_v3 = vrot.slane %v5681_v7, %v5601_v37 }
 0x1f5   : > { %1991 = vbcast.lane.b32.xlu1 %v1989_v43, 256 }
 0x1f8   : > { %2012 = vbcast.lane.b32.xlu0 %v2010_v5, 256  ;;  %v2164_v5 = vrot.slane %v5681_v7, %v5605_v13 }
 0x1f9   : > { %2005 = vbcast.lane.b32.xlu1 %v2003_v20, 256 }
 0x1fc   : > { %2026 = vbcast.lane.b32.xlu0 %v2024_v10, 256 }
 0x1fd   : > { %2019 = vbcast.lane.b32.xlu1 %v2017_v40, 256 }
 0x200   : > { %2040 = vbcast.lane.b32.xlu0 %v2038_v30, 256 }
 0x201   : > { %2033 = vbcast.lane.b32.xlu1 %v2031_v46, 256  ;;  %v2171_v46 = vrot.slane %v5681_v7, %v5609_v0 }
 0x204   : > { %2054 = vbcast.lane.b32.xlu0 %v2052_v62, 256 }
 0x205   : > { %2047 = vbcast.lane.b32.xlu1 %v2045_v21, 256  ;;  %v2185_v21 = vrot.slane %v5681_v7, %v5617_v6 }
 0x208   : > { %2068 = vbcast.lane.b32.xlu0 %v2066_v25, 256 }
 0x209   : > { %2061 = vbcast.lane.b32.xlu1 %v2059_v29, 256 }
 0x20c   : > { %2082 = vbcast.lane.b32.xlu0 %v2080_v16, 256 }
 0x20d   : > { %2075 = vbcast.lane.b32.xlu1 %v2073_v1, 256 }
 0x210   : > { %2096 = vbcast.lane.b32.xlu0 %v2094_v49, 256  ;;  %v5720_v49 = vld [vmem:[%s6898_s9 + $0x30] sm:$0xff] }
 0x211   : > { %2089 = vbcast.lane.b32.xlu1 %v2087_v57, 256 }
 0x214   : > { %2110 = vbcast.lane.b32.xlu0 %v2108_v36, 256  ;;  %v2283_v36 = vrot.slane %v5720_v49, %v5609_v0 }
 0x215   : > { %2103 = vbcast.lane.b32.xlu1 %v2101_v51, 256 }
 0x218   : > { %2124 = vbcast.lane.b32.xlu0 %v2122_v50, 256 }
 0x219   : > { %2117 = vbcast.lane.b32.xlu1 %v2115_v56, 256 }
 0x21c   : > { %2138 = vbcast.lane.b32.xlu0 %v2136_v59, 256  ;;  %v2311_v59 = vrot.slane %v5720_v49, %v5625_v47 }
 0x21d   : > { %2131 = vbcast.lane.b32.xlu1 %v2129_v61, 256 }
 0x220   : > { %2152 = vbcast.lane.b32.xlu0 %v2150_v53, 256 }
 0x221   : > { %2145 = vbcast.lane.b32.xlu1 %v2143_v9, 256 }
 0x224   : > { %2166 = vbcast.lane.b32.xlu0 %v2164_v5, 256 }
 0x225   : > { %2159 = vbcast.lane.b32.xlu1 %v2157_v3, 256 }
 0x229   : > { %2173 = vbcast.lane.b32.xlu1 %v2171_v46, 256 }
 0x22d   : > { %2187 = vbcast.lane.b32.xlu1 %v2185_v21, 256  ;;  %v2290_v21 = vrot.slane %v5720_v49, %v5612_v4 }
 0x274   : > { %v1551_v44 = vpop.f32.mrb[0].mxu1 }
 0x275   : > { %v1553_v23 = vpop.f32.mrb[1].mxu1  ;;  %v1552_v63 = vadd.f32 %v5653_v28, %v1551_v44  ;;  %v2199_v44 = vrot.slane %v5681_v7, %v5625_v47 }
 0x276   : > { %v5704_v23 = vld [vmem:[%s6898_s9 + $0x28] sm:$0xff] }
 0x277   : > { %v1622_v52 = vmax.f32 %v1552_v63, 0.0  ;;  %2201 = vbcast.lane.b32.xlu1 %v2199_v44, 256  ;;  %v2241_v31 = vrot.slane %v5704_v23, %v5617_v6  ;;  %v2255_v57 = vrot.slane %v5704_v23, %v5625_v47  ;;  %v2248_v46 = vrot.slane %v5704_v23, %v5621_v12 }
 0x278   : > { %v1541_v11 = vpop.f32.mrb[16].mxu0  ;;  %v1556_v24 = vpop.f32.mrb[2].mxu1 }
 0x279   : > { %v1542_v32 = vadd.f32 %v5653_v28, %v1541_v11  ;;  %v1543_v8 = vpop.f32.mrb[17].mxu0  ;;  %v1558_v48 = vpop.f32.mrb[3].mxu1  ;;  %v1557_v35 = vadd.f32 %v5653_v28, %v1556_v24 }
 0x27a   : > { %v2227_v48 = vrot.slane %v5704_v23, %v5609_v0 }
 0x27b   : > { %v1620_v27 = vmax.f32 %v1542_v32, 0.0  ;;  %v1623_v26 = vmax.f32 %v1557_v35, 0.0  ;;  %v2213_v32 = vrot.slane %v5704_v23, %v5601_v37 }
 0x27c   : > { %v1546_v22 = vpop.f32.mrb[18].mxu0 }
 0x27d   : > { %v1547_v34 = vadd.f32 %v5653_v28, %v1546_v22  ;;  %v1548_v17 = vpop.f32.mrb[19].mxu0  ;;  %4402 = vmatprep.mubr.msk.f32.mxu0 %vm631_vm1, %v1620_v27  ;;  %2215 = vbcast.lane.b32.xlu1 %v2213_v32, 256 }
 0x27f   : > { %v1621_v2 = vmax.f32 %v1547_v34, 0.0  ;;  %v2269_v34 = vrot.slane %v5720_v49, %v5601_v37 }
 0x281   : > { %4403 = vmatmul.mubr.msk.f32.vlgmr.msra.gmra.mrb[20].mxu0 %vm631_vm1, %v1621_v2  ;;  %2229 = vbcast.lane.b32.xlu1 %v2227_v48, 256 }
 0x282   : > { %4405 = vmatprep.mubr.msk.f32.mxu0 %vm631_vm1, %v1622_v52 }
 0x284   : > { %v1561_v54 = vpop.f32.mrb[4].mxu1 }
 0x285   : > { %v1562_v42 = vadd.f32 %v5653_v28, %v1561_v54  ;;  %v1563_v41 = vpop.f32.mrb[5].mxu1  ;;  %4406 = vmatmul.mubr.msk.f32.gmra.mrb[22].mxu0 %vm631_vm1, %v1623_v26  ;;  %2243 = vbcast.lane.b32.xlu1 %v2241_v31, 256  ;;  %v2297_v54 = vrot.slane %v5720_v49, %v5617_v6 }
 0x287   : > { %v1624_v19 = vmax.f32 %v1562_v42, 0.0 }
 0x288   : > { %v1566_v15 = vpop.f32.mrb[6].mxu1 }
 0x289   : > { %v1567_v60 = vadd.f32 %v5653_v28, %v1566_v15  ;;  %v1568_v45 = vpop.f32.mrb[7].mxu1  ;;  %4408 = vmatprep.mubr.msk.f32.mxu0 %vm631_vm1, %v1624_v19  ;;  %2257 = vbcast.lane.b32.xlu1 %v2255_v57, 256  ;;  %v1914_v15 = vld [vmem:[%s6898_s9 + $0x38] sm:$0xff] }
 0x28a   : > { %v2325_v53 = vrot.slane %v1914_v15, %v5601_v37  ;;  %v2178_v37 = vrot.slane %v5681_v7, %v5612_v4  ;;  %v2346_v44 = vrot.slane %v1914_v15, %v5612_v4 }
 0x28b   : > { %v1625_v18 = vmax.f32 %v1567_v60, 0.0 }
 0x28c   : > { %v1571_v39 = vpop.f32.mrb[8].mxu1  ;;  %2180 = vbcast.lane.b32.xlu0 %v2178_v37, 256 }
 0x28d   : > { %v1572_v33 = vadd.f32 %v5653_v28, %v1571_v39  ;;  %v1573_v43 = vpop.f32.mrb[9].mxu1  ;;  %4409 = vmatmul.mubr.msk.f32.gmra.mrb[24].mxu0 %vm631_vm1, %v1625_v18  ;;  %2271 = vbcast.lane.b32.xlu1 %v2269_v34, 256 }
 0x28f   : > { %v1626_v20 = vmax.f32 %v1572_v33, 0.0 }
 0x290   : > { %v1576_v40 = vpop.f32.mrb[10].mxu1 }
 0x291   : > { %v1577_v10 = vadd.f32 %v5653_v28, %v1576_v40  ;;  %v1578_v14 = vpop.f32.mrb[11].mxu1  ;;  %4411 = vmatprep.mubr.msk.f32.mxu0 %vm631_vm1, %v1626_v20  ;;  %2285 = vbcast.lane.b32.xlu1 %v2283_v36, 256  ;;  %v2339_v20 = vrot.slane %v1914_v15, %v5609_v0  ;;  %v2353_v40 = vrot.slane %v1914_v15, %v5617_v6 }
 0x292   : > { %v2192_v0 = vrot.slane %v5681_v7, %v5621_v12  ;;  %v2206_v6 = vrot.slane %v5704_v23, %v5598_v58  ;;  %v2234_v14 = vrot.slane %v5704_v23, %v5612_v4  ;;  %v2262_v7 = vrot.slane %v5720_v49, %v5598_v58 }
 0x293   : > { %v1627_v30 = vmax.f32 %v1577_v10, 0.0  ;;  %v2367_v10 = vrot.slane %v1914_v15, %v5625_v47  ;;  %v2220_v47 = vrot.slane %v5704_v23, %v5605_v13  ;;  %v2360_v23 = vrot.slane %v1914_v15, %v5621_v12 }
 0x294   : > { %2194 = vbcast.lane.b32.xlu0 %v2192_v0, 256 }
 0x295   : > { %4412 = vmatmul.mubr.msk.f32.gmra.mrb[26].mxu0 %vm631_vm1, %v1627_v30  ;;  %2299 = vbcast.lane.b32.xlu1 %v2297_v54, 256  ;;  %v2276_v30 = vrot.slane %v5720_v49, %v5605_v13 }
 0x298   : > { %2208 = vbcast.lane.b32.xlu0 %v2206_v6, 256 }
 0x299   : > { %v1581_v62 = vpop.f32.mrb[12].mxu1  ;;  %2313 = vbcast.lane.b32.xlu1 %v2311_v59, 256 }
 0x29a   : > { %v1582_v29 = vadd.f32 %v5653_v28, %v1581_v62  ;;  %v1583_v25 = vpop.f32.mrb[13].mxu1  ;;  %v2304_v62 = vrot.slane %v5720_v49, %v5621_v12 }
 0x29b   : > { %v2332_v25 = vrot.slane %v1914_v15, %v5605_v13  ;;  %v5787_v13 = vld [vmem:[%s6895_s6] ss:$0 sm:$0xff] }
 0x29c   : > { %v1628_v1 = vmax.f32 %v1582_v29, 0.0  ;;  %2222 = vbcast.lane.b32.xlu0 %v2220_v47, 256  ;;  %v2318_v29 = vrot.slane %v1914_v15, %v5598_v58  ;;  %v1883_v47 = vld [vmem:[%s6896_s7] sm:$0xf] }
 0x29d   : > { %v1586_v16 = vpop.f32.mrb[14].mxu1  ;;  %2327 = vbcast.lane.b32.xlu1 %v2325_v53, 256 }
 0x29e   : > { %v1587_v11 = vadd.f32 %v5653_v28, %v1586_v16  ;;  %v1588_v24 = vpop.f32.mrb[15].mxu1  ;;  %4414 = vmatprep.mubr.msk.f32.mxu0 %vm631_vm1, %v1628_v1  ;;  %v5776_v1 = vpop.permute.xlu1 %1928 }
 0x2a0   : > { %v1629_v8 = vmax.f32 %v1587_v11, 0.0  ;;  %2236 = vbcast.lane.b32.xlu0 %v2234_v14, 256 }
 0x2a1   : > { %2341 = vbcast.lane.b32.xlu1 %v2339_v20, 256 }
 0x2a2   : > { %4415 = vmatmul.mubr.msk.f32.gmra.mrb[28].mxu0 %vm631_vm1, %v1629_v8  ;;  %v5778_v16 = vpop.permute.xlu1 %1935 }
 0x2a4   : > { %2250 = vbcast.lane.b32.xlu0 %v2248_v46, 256 }
 0x2a5   : > { %2355 = vbcast.lane.b32.xlu1 %v2353_v40, 256 }
 0x2a6   : > { %v5780_v11 = vpop.permute.xlu1 %1949 }
 0x2a8   : > { %2264 = vbcast.lane.b32.xlu0 %v2262_v7, 256 }
 0x2a9   : > { %2369 = vbcast.lane.b32.xlu1 %v2367_v10, 256 }
 0x2aa   : > { %v5782_v24 = vpop.permute.xlu1 %1963 }
 0x2ac   : > { %2278 = vbcast.lane.b32.xlu0 %v2276_v30, 256 }
 0x2ad   : > { %v1591_v27 = vpop.f32.mrb[16].mxu1 }
 0x2ae   : > { %v1592_v63 = vadd.f32 %v5653_v28, %v1591_v27  ;;  %v1593_v22 = vpop.f32.mrb[17].mxu1  ;;  %v5789_v32 = vpop.permute.xlu1 %1977 }
 0x2b0   : > { %v1630_v17 = vmax.f32 %v1592_v63, 0.0  ;;  %2292 = vbcast.lane.b32.xlu0 %v2290_v21, 256 }
 0x2b1   : > { %v1596_v51 = vpop.f32.mrb[18].mxu1 }
 0x2b2   : > { %v1597_v35 = vadd.f32 %v5653_v28, %v1596_v51  ;;  %v1598_v2 = vpop.f32.mrb[19].mxu1  ;;  %4417 = vmatprep.mubr.msk.f32.mxu0 %vm631_vm1, %v1630_v17  ;;  %v5804_v63 = vpop.permute.xlu1 %1991 }
 0x2b4   : > { %v1631_v52 = vmax.f32 %v1597_v35, 0.0  ;;  %2306 = vbcast.lane.b32.xlu0 %v2304_v62, 256 }
 0x2b5   : > { %v1601_v56 = vpop.f32.mrb[20].mxu1 }
 0x2b6   : > { %v1602_v26 = vadd.f32 %v5653_v28, %v1601_v56  ;;  %v1603_v50 = vpop.f32.mrb[21].mxu1  ;;  %4418 = vmatmul.mubr.msk.f32.gmra.mrb[30].mxu0 %vm631_vm1, %v1631_v52  ;;  %v5814_v52 = vpop.permute.xlu1 %2005 }
 0x2b8   : > { %v1632_v42 = vmax.f32 %v1602_v26, 0.0  ;;  %2320 = vbcast.lane.b32.xlu0 %v2318_v29, 256 }
 0x2b9   : > { %v1606_v41 = vpop.f32.mrb[22].mxu1 }
 0x2ba   : > { %v1607_v61 = vadd.f32 %v5653_v28, %v1606_v41  ;;  %v1608_v19 = vpop.f32.mrb[23].mxu1  ;;  %4420 = vmatprep.mubr.msk.f32.mxu0 %vm631_vm1, %v1632_v42 }
 0x2bc   : > { %v1633_v60 = vmax.f32 %v1607_v61, 0.0  ;;  %2334 = vbcast.lane.b32.xlu0 %v2332_v25, 256  ;;  %v5823_v61 = vpop.permute.xlu1 %2019 }
 0x2bd   : > { %v1611_v45 = vpop.f32.mrb[24].mxu1 }
 0x2be   : > { %v1612_v9 = vadd.f32 %v5653_v28, %v1611_v45  ;;  %v1613_v18 = vpop.f32.mrb[25].mxu1  ;;  %4421 = vmatmul.mubr.msk.f32.gmra.mrb[32].mxu0 %vm631_vm1, %v1633_v60 }
 0x2c0   : > { %v1634_v39 = vmax.f32 %v1612_v9, 0.0  ;;  %2348 = vbcast.lane.b32.xlu0 %v2346_v44, 256 }
 0x2c1   : > { %v1616_v33 = vpop.f32.mrb[26].mxu1 }
 0x2c2   : > { %v1617_v43 = vadd.f32 %v5653_v28, %v1616_v33  ;;  %v1618_v3 = vpop.f32.mrb[27].mxu1  ;;  %4423 = vmatprep.mubr.msk.f32.mxu0 %vm631_vm1, %v1634_v39  ;;  %v4297_v28 = vld [vmem:[%s6899_s10] ss:$0 sm:$0xff]  ;;  %v5837_v39 = vpop.permute.xlu1 %2033 }
 0x2c3   : > { %3784 = vbcast.lane.b32.xlu1 %v4297_v28, 264 }
 0x2c4   : > { %v1635_v5 = vmax.f32 %v1617_v43, 0.0  ;;  %2362 = vbcast.lane.b32.xlu0 %v2360_v23, 256 }
 0x2c6   : > { %4424 = vmatmul.mubr.msk.f32.gmra.mrb[34].mxu0 %vm631_vm1, %v1635_v5  ;;  %v5839_v5 = vpop.permute.xlu1 %2047  ;;  %vm3601_vm1 = vcmask 1047559  }
 0x2c7   : > { %3788 = vbcast.lane.b32.xlu1 %v4297_v28, 272 }
 0x2c8   : > { %3780 = vbcast.lane.b32.xlu0 %v4297_v28, 256 }
 0x2ca   : > { %v5841_v0 = vpop.permute.xlu1 %2061 }
 0x2cc   : > { %3792 = vbcast.lane.b32.xlu0 %v4297_v28, 280 }
 0x2ce   : > { %v5846_v7 = vpop.permute.xlu1 %2075 }
 0x2d2   : > { %v5849_v21 = vpop.permute.xlu1 %2089 }
 0x354   : > { %v4404_v58 = vpop.f32.mrb[20].mxu0 }
 0x355   : > { %v1759_v4 = vpop.f32.mrb[21].mxu0  ;;  %v5792_v12 = vadd.f32 %v4404_v58, %v5787_v13 }
 0x356   : > { %v5795_v8 = vadd.f32 %v5787_v13, %v1759_v4 }
 0x357   : > { %6940 = vst [vmem:[#allocation4_spill] sm:$0xff] %v5792_v12  ;;  %v1839_v49 = vsel %vm421_vm0, %v5792_v12, 0.0 }
 0x358   : > { %6941 = vst [vmem:[#allocation5_spill] sm:$0xff] %v5795_v8  ;;  %v4407_v48 = vpop.f32.mrb[22].mxu0  ;;  %v1838_v27 = vsel %vm421_vm0, %v5795_v8, 0.0 }
 0x359   : > { %v1769_v31 = vpop.f32.mrb[23].mxu0  ;;  %v1840_v34 = vadd.f32 %v1839_v49, %v1838_v27  ;;  %v5809_v17 = vadd.f32 %v4407_v48, %v5787_v13  ;;  %v5864_v48 = vpop.permute.xlu1 %2103 }
 0x35a   : > { %v5798_v57 = vadd.f32 %v5787_v13, %v1769_v31  ;;  %6951 = vst [vmem:[#allocation15_spill] sm:$0xff] %v5864_v48 }
 0x35b   : > { %6943 = vst [vmem:[#allocation7_spill] sm:$0xff] %v5809_v17  ;;  %v1843_v56 = vsel %vm421_vm0, %v5809_v17, 0.0 }
 0x35c   : > { %6942 = vst [vmem:[#allocation6_spill] sm:$0xff] %v5798_v57  ;;  %v1841_v22 = vsel %vm421_vm0, %v5798_v57, 0.0 }
 0x35d   : > { %v1842_v35 = vadd.f32 %v1841_v22, %v1840_v34 }
 0x35f   : > { %v1844_v50 = vadd.f32 %v1843_v56, %v1842_v35  ;;  %v5871_v35 = vpop.permute.xlu1 %2117 }
 0x360   : > { %v4410_v51 = vpop.f32.mrb[24].mxu0 }
 0x361   : > { %v1779_v2 = vpop.f32.mrb[25].mxu0  ;;  %v5821_v54 = vadd.f32 %v4410_v51, %v5787_v13 }
 0x362   : > { %v5812_v36 = vadd.f32 %v5787_v13, %v1779_v2 }
 0x363   : > { %6945 = vst [vmem:[#allocation9_spill] sm:$0xff] %v5821_v54  ;;  %v1847_v59 = vsel %vm421_vm0, %v5821_v54, 0.0 }
 0x364   : > { %6944 = vst [vmem:[#allocation8_spill] sm:$0xff] %v5812_v36  ;;  %v1845_v26 = vsel %vm421_vm0, %v5812_v36, 0.0 }
 0x365   : > { %v1846_v42 = vadd.f32 %v1845_v26, %v1844_v50 }
 0x367   : > { %v1848_v45 = vadd.f32 %v1847_v59, %v1846_v42 }
 0x368   : > { %v4413_v41 = vpop.f32.mrb[26].mxu0 }
 0x369   : > { %v1789_v19 = vpop.f32.mrb[27].mxu0  ;;  %v5828_v15 = vadd.f32 %v4413_v41, %v5787_v13 }
 0x36a   : > { %v5831_v60 = vadd.f32 %v5787_v13, %v1789_v19  ;;  %v5883_v19 = vpop.permute.xlu1 %2131 }
 0x36b   : > { %6946 = vst [vmem:[#allocation10_spill] sm:$0xff] %v5828_v15  ;;  %v1851_v53 = vsel %vm421_vm0, %v5828_v15, 0.0  ;;  %6955 = vst [vmem:[#allocation19_spill] sm:$0xff] %v5883_v19 }
 0x36c   : > { %6947 = vst [vmem:[#allocation11_spill] sm:$0xff] %v5831_v60  ;;  %v1849_v9 = vsel %vm421_vm0, %v5831_v60, 0.0 }
 0x36d   : > { %v1850_v18 = vadd.f32 %v1849_v9, %v1848_v45 }
 0x36f   : > { %v1852_v33 = vadd.f32 %v1851_v53, %v1850_v18 }
 0x371   : > { %v1853_v43 = vrot.slane %v1852_v33, 4 }
 0x373   : > { %v1854_v3 = vadd.f32 %v1853_v43, %v1852_v33 }
 0x375   : > { %v1855_v20 = vrot.slane %v1854_v3, 2  ;;  %v4416_v40 = vpop.f32.mrb[28].mxu0 }
 0x376   : > { %v1799_v10 = vpop.f32.mrb[29].mxu0  ;;  %v5852_v62 = vadd.f32 %v4416_v40, %v5787_v13 }
 0x377   : > { %v1856_v37 = vadd.f32 %v1855_v20, %v1854_v3  ;;  %v5855_v29 = vadd.f32 %v5787_v13, %v1799_v10  ;;  %v5895_v20 = vpop.permute.xlu1 %2145 }
 0x378   : > { %6948 = vst [vmem:[#allocation12_spill] sm:$0xff] %v5852_v62  ;;  %v1860_v58 = vsel %vm421_vm0, %v5852_v62, 0.0  ;;  %6958 = vst [vmem:[#allocation22_spill] sm:$0xff] %v5895_v20 }
 0x379   : > { %v1857_v28 = vrot.slane %v1856_v37, 1  ;;  %6949 = vst [vmem:[#allocation13_spill] sm:$0xff] %v5855_v29  ;;  %v1859_v4 = vsel %vm421_vm0, %v5855_v29, 0.0 }
 0x37a   : > { %v1861_v49 = vadd.f32 %v1860_v58, %v1859_v4 }
 0x37b   : > { %v1858_v6 = vadd.f32 %v1857_v28, %v1856_v37 }
 0x37d   : > { %v1881_v14 = vmul.f32 0.015625, %v1858_v6  ;;  %v4858_v6 = vmov 0  }
 0x37e   : > { %4775 = vset.pattern.permute.xlu1 %v4858_v6  ;;  %4774 = vset.pattern.permute.xlu0 %v4858_v6 }
 0x37f   : > { %v1884_v46 = vmul.f32 %v1883_v47, %v1881_v14  ;;  %v5899_v14 = vpop.permute.xlu1 %2159 }
 0x381   : > { %v1887_v30 = vsel %vm1886_vm9, %v1884_v46, 0.0 }
 0x382   : > { %1888 = vadd.xlane.f32.xlu1 %v1887_v30 }
 0x389   : > { %v4419_v25 = vpop.f32.mrb[30].mxu0 }
 0x38a   : > { %v1809_v44 = vpop.f32.mrb[31].mxu0  ;;  %v5869_v27 = vadd.f32 %v4419_v25, %v5787_v13  ;;  %v5901_v25 = vpop.permute.xlu1 %2173 }
 0x38b   : > { %v5858_v23 = vadd.f32 %v5787_v13, %v1809_v44  ;;  %6959 = vst [vmem:[#allocation23_spill] sm:$0xff] %v5901_v25 }
 0x38c   : > { %6952 = vst [vmem:[#allocation16_spill] sm:$0xff] %v5869_v27  ;;  %v1864_v56 = vsel %vm421_vm0, %v5869_v27, 0.0 }
 0x38d   : > { %6950 = vst [vmem:[#allocation14_spill] sm:$0xff] %v5858_v23  ;;  %v1862_v31 = vsel %vm421_vm0, %v5858_v23, 0.0 }
 0x38e   : > { %v1863_v34 = vadd.f32 %v1862_v31, %v1861_v49  ;;  %v5903_v31 = vpop.permute.xlu1 %2187 }
 0x38f   : > { %6960 = vst [vmem:[#allocation24_spill] sm:$0xff] %v5903_v31 }
 0x390   : > { %v1865_v50 = vadd.f32 %v1864_v56, %v1863_v34 }
 0x391   : > { %v4422_v22 = vpop.f32.mrb[32].mxu0 }
 0x392   : > { %v1819_v51 = vpop.f32.mrb[33].mxu0  ;;  %v5881_v42 = vadd.f32 %v4422_v22, %v5787_v13  ;;  %v5906_v22 = vpop.permute.xlu1 %2201 }
 0x393   : > { %v5874_v2 = vadd.f32 %v5787_v13, %v1819_v51  ;;  %6961 = vst [vmem:[#allocation25_spill] sm:$0xff] %v5906_v22  ;;  %v5910_v51 = vpop.permute.xlu0 %1900 }
 0x394   : > { %6954 = vst [vmem:[#allocation18_spill] sm:$0xff] %v5881_v42  ;;  %v1868_v9 = vsel %vm421_vm0, %v5881_v42, 0.0 }
 0x395   : > { %6953 = vst [vmem:[#allocation17_spill] sm:$0xff] %v5874_v2  ;;  %v1866_v26 = vsel %vm421_vm0, %v5874_v2, 0.0 }
 0x396   : > { %v1867_v41 = vadd.f32 %v1866_v26, %v1865_v50  ;;  %v5908_v34 = vpop.permute.xlu1 %2215 }
 0x397   : > { %v5914_v26 = vpop.permute.xlu0 %1942 }
 0x398   : > { %v1869_v33 = vadd.f32 %v1868_v9, %v1867_v41 }
 0x399   : > { %v4425_v59 = vpop.f32.mrb[34].mxu0 }
 0x39a   : > { %v1829_v45 = vpop.f32.mrb[35].mxu0  ;;  %v5888_v18 = vadd.f32 %v4425_v59, %v5787_v13  ;;  %v5912_v56 = vpop.permute.xlu1 %2229 }
 0x39b   : > { %v5891_v53 = vadd.f32 %v5787_v13, %v1829_v45  ;;  %v5918_v41 = vpop.permute.xlu0 %1956 }
 0x39c   : > { %6956 = vst [vmem:[#allocation20_spill] sm:$0xff] %v5888_v18  ;;  %v1872_v40 = vsel %vm421_vm0, %v5888_v18, 0.0 }
 0x39d   : > { %6957 = vst [vmem:[#allocation21_spill] sm:$0xff] %v5891_v53  ;;  %v1870_v43 = vsel %vm421_vm0, %v5891_v53, 0.0 }
 0x39e   : > { %v1871_v3 = vadd.f32 %v1870_v43, %v1869_v33  ;;  %v5916_v50 = vpop.permute.xlu1 %2243 }
 0x39f   : > { %6962 = vst [vmem:[#allocation26_spill] sm:$0xff] %v5916_v50  ;;  %v5922_v59 = vpop.permute.xlu0 %1970 }
 0x3a0   : > { %v1873_v10 = vadd.f32 %v1872_v40, %v1871_v3 }
 0x3a2   : > { %v1874_v37 = vrot.slane %v1873_v10, 4 }
 0x3a3   : > { %v5926_v9 = vpop.permute.xlu0 %1984 }
 0x3a4   : > { %v1875_v28 = vadd.f32 %v1874_v37, %v1873_v10 }
 0x3a6   : > { %v1876_v13 = vrot.slane %v1875_v28, 2 }
 0x3a7   : > { %v5930_v43 = vpop.permute.xlu0 %1998 }
 0x3a8   : > { %v1877_v46 = vadd.f32 %v1876_v13, %v1875_v28 }
 0x3aa   : > { %v1878_v30 = vrot.slane %v1877_v46, 1 }
 0x3ab   : > { %v5934_v40 = vpop.permute.xlu0 %2012 }
 0x3ac   : > { %v1879_v44 = vadd.f32 %v1878_v30, %v1877_v46 }
 0x3ae   : > { %v1882_v58 = vmul.f32 0.015625, %v1879_v44 }
 0x3af   : > { %v5938_v37 = vpop.permute.xlu0 %2026 }
 0x3b0   : > { %v1885_v4 = vmul.f32 %v1883_v47, %v1882_v58  ;;  %v5920_v47 = vpop.permute.xlu1 %2257 }
 0x3b1   : > { %6963 = vst [vmem:[#allocation27_spill] sm:$0xff] %v5920_v47 }
 0x3b2   : > { %v1890_v49 = vsel %vm1886_vm9, %v1885_v4, 0.0  ;;  %vm4045_vm9 = vcmask 523712  }
 0x3b3   : > { %1891 = vadd.xlane.f32.xlu0 %v1890_v49  ;;  %v5942_v6 = vpop.permute.xlu0 %2040 }
 0x3b4   : > { %v5924_v45 = vpop.permute.xlu1 %2271 }
 0x3b7   : > { %v5946_v46 = vpop.permute.xlu0 %2054 }
 0x3b8   : > { %v5928_v33 = vpop.permute.xlu1 %2285 }
 0x3bb   : > { %v5950_v44 = vpop.permute.xlu0 %2068 }
 0x3bc   : > { %v5932_v3 = vpop.permute.xlu1 %2299 }
 0x3bf   : > { %v5954_v4 = vpop.permute.xlu0 %2082 }
 0x3c0   : > { %v5936_v10 = vpop.permute.xlu1 %2313 }
 0x3c1   : > { %6964 = vst [vmem:[#allocation28_spill] sm:$0xff] %v5936_v10 }
 0x3c3   : > { %v5958_v55 = vpop.permute.xlu0 %2096 }
 0x3c4   : > { %v5940_v28 = vpop.permute.xlu1 %2327 }
 0x3c7   : > { %v5962_v53 = vpop.permute.xlu0 %2110 }
 0x3c8   : > { %v5944_v13 = vpop.permute.xlu1 %2341 }
 0x3cb   : > { %v5967_v23 = vpop.permute.xlu0 %2124 }
 0x3cc   : > { %v5948_v30 = vpop.permute.xlu1 %2355 }
 0x3cf   : > { %v5975_v60 = vpop.permute.xlu0 %2138 }
 0x3d0   : > { %v5952_v58 = vpop.permute.xlu1 %2369 }
 0x3d3   : > { %v5983_v36 = vpop.permute.xlu0 %2152 }
 0x3d4   : > { %v5956_v49 = vpop.permute.xlu1 %3784 }
 0x3d5   : > { %6965 = vst [vmem:[#allocation29_spill] sm:$0xff] %v5956_v49 }
 0x3d8   : > { %v5960_v18 = vpop.permute.xlu1 %3788 }
 0x3d9   : > { %6966 = vst [vmem:[#allocation30_spill] sm:$0xff] %v5960_v18 }
 0x40f   : > { %v1889_v42 = vpop.xlane.xlu1 %1888 }
 0x410   : > { %v1903_v2 = vadd.f32 %v5910_v51, %v1889_v42 }
 0x412   : > { %v5965_v27 = vmax.f32 %v1903_v2, 0.0 }
 0x414   : > { %v2435_v62 = vmul.f32 %v5776_v1, %v5965_v27  ;;  %v2436_v29 = vmul.f32 %v5778_v16, %v5965_v27  ;;  %v2437_v15 = vmul.f32 %v5914_v26, %v5965_v27  ;;  %v2438_v42 = vmul.f32 %v5780_v11, %v5965_v27 }
 0x415   : > { %v2439_v2 = vmul.f32 %v5918_v41, %v5965_v27  ;;  %v2440_v54 = vmul.f32 %v5782_v24, %v5965_v27  ;;  %v2444_v17 = vmul.f32 %v5804_v63, %v5965_v27  ;;  %v2450_v12 = vmul.f32 %v5837_v39, %v5965_v27 }
 0x416   : > { %2695 = vperm.xlu1 %4775, %v2436_v29   ;;  %2692 = vperm.xlu0 %4774, %v2435_v62   ;;  %v2441_v62 = vmul.f32 %v5922_v59, %v5965_v27  ;;  %v2442_v29 = vmul.f32 %v5789_v32, %v5965_v27  ;;  %v2456_v18 = vmul.f32 %v5846_v7, %v5965_v27 }
 0x417   : > { %v2462_v38 = vmul.f32 %v5871_v35, %v5965_v27 }
 0x41a   : > { %2698 = vperm.xlu1 %4775, %v2437_v15   ;;  %2701 = vperm.xlu0 %4774, %v2438_v42   ;;  %v2443_v15 = vmul.f32 %v5926_v9, %v5965_v27  ;;  %v5991_v42 = vpop.permute.xlu0 %2166 }
 0x41e   : > { %2704 = vperm.xlu1 %4775, %v2439_v2   ;;  %2707 = vperm.xlu0 %4774, %v2440_v54   ;;  %v2445_v54 = vmul.f32 %v5930_v43, %v5965_v27  ;;  %v2446_v2 = vmul.f32 %v5814_v52, %v5965_v27  ;;  %v5999_v57 = vpop.permute.xlu0 %2180 }
 0x422   : > { %2710 = vperm.xlu1 %4775, %v2441_v62   ;;  %2713 = vperm.xlu0 %4774, %v2442_v29   ;;  %v2447_v62 = vmul.f32 %v5934_v40, %v5965_v27  ;;  %v2448_v29 = vmul.f32 %v5823_v61, %v5965_v27 }
 0x426   : > { %2716 = vperm.xlu1 %4775, %v2443_v15   ;;  %2719 = vperm.xlu0 %4774, %v2444_v17   ;;  %v2449_v17 = vmul.f32 %v5938_v37, %v5965_v27  ;;  %v6007_v15 = vpop.permute.xlu0 %2194 }
 0x427   : > { %6967 = vst [vmem:[#allocation31_spill] sm:$0xff] %v6007_v15 }
 0x42a   : > { %2722 = vperm.xlu1 %4775, %v2445_v54   ;;  %2725 = vperm.xlu0 %4774, %v2446_v2   ;;  %v2451_v54 = vmul.f32 %v5942_v6, %v5965_v27  ;;  %v2452_v2 = vmul.f32 %v5839_v5, %v5965_v27  ;;  %v6015_v8 = vpop.permute.xlu0 %2208 }
 0x42e   : > { %2728 = vperm.xlu1 %4775, %v2447_v62   ;;  %2731 = vperm.xlu0 %4774, %v2448_v29   ;;  %v2453_v62 = vmul.f32 %v5946_v46, %v5965_v27  ;;  %v2454_v29 = vmul.f32 %v5841_v0, %v5965_v27 }
 0x432   : > { %2734 = vperm.xlu1 %4775, %v2449_v17   ;;  %2737 = vperm.xlu0 %4774, %v2450_v12   ;;  %v2455_v12 = vmul.f32 %v5950_v44, %v5965_v27  ;;  %v6023_v17 = vpop.permute.xlu0 %2222 }
 0x436   : > { %2740 = vperm.xlu1 %4775, %v2451_v54   ;;  %2743 = vperm.xlu0 %4774, %v2452_v2   ;;  %v2457_v54 = vmul.f32 %v5954_v4, %v5965_v27  ;;  %v2458_v2 = vmul.f32 %v5849_v21, %v5965_v27  ;;  %v6031_v49 = vpop.permute.xlu0 %2236 }
 0x43a   : > { %2746 = vperm.xlu1 %4775, %v2453_v62   ;;  %2749 = vperm.xlu0 %4774, %v2454_v29   ;;  %v2459_v62 = vmul.f32 %v5958_v55, %v5965_v27  ;;  %v2460_v29 = vmul.f32 %v5864_v48, %v5965_v27 }
 0x43e   : > { %2752 = vperm.xlu1 %4775, %v2455_v12   ;;  %2755 = vperm.xlu0 %4774, %v2456_v18   ;;  %v2461_v18 = vmul.f32 %v5962_v53, %v5965_v27  ;;  %v6039_v12 = vpop.permute.xlu0 %2250 }
 0x43f   : > { %6968 = vst [vmem:[#allocation32_spill] sm:$0xff] %v6039_v12 }
 0x442   : > { %2758 = vperm.xlu1 %4775, %v2457_v54   ;;  %2761 = vperm.xlu0 %4774, %v2458_v2   ;;  %v2463_v54 = vmul.f32 %v5967_v23, %v5965_v27  ;;  %v2464_v2 = vmul.f32 %v5883_v19, %v5965_v27  ;;  %v6047_v48 = vpop.permute.xlu0 %2264  ;;  %v2468_v19 = vmul.f32 %v5899_v14, %v5965_v27 }
 0x446   : > { %2764 = vperm.xlu1 %4775, %v2459_v62   ;;  %2767 = vperm.xlu0 %4774, %v2460_v29   ;;  %v2465_v62 = vmul.f32 %v5975_v60, %v5965_v27  ;;  %v2466_v29 = vmul.f32 %v5895_v20, %v5965_v27 }
 0x44a   : > { %2770 = vperm.xlu1 %4775, %v2461_v18   ;;  %2773 = vperm.xlu0 %4774, %v2462_v38   ;;  %v2467_v38 = vmul.f32 %v5983_v36, %v5965_v27  ;;  %v6055_v18 = vpop.permute.xlu0 %2278 }
 0x44e   : > { %2776 = vperm.xlu1 %4775, %v2463_v54   ;;  %2779 = vperm.xlu0 %4774, %v2464_v2   ;;  %v2469_v54 = vmul.f32 %v5991_v42, %v5965_v27  ;;  %v2470_v2 = vmul.f32 %v5901_v25, %v5965_v27  ;;  %v6063_v20 = vpop.permute.xlu0 %2292  ;;  %v2474_v25 = vmul.f32 %v5906_v22, %v5965_v27 }
 0x44f   : > { %v2480_v22 = vmul.f32 %v5916_v50, %v5965_v27 }
 0x452   : > { %2782 = vperm.xlu1 %4775, %v2465_v62   ;;  %2785 = vperm.xlu0 %4774, %v2466_v29   ;;  %v2471_v62 = vmul.f32 %v5999_v57, %v5965_v27  ;;  %v2472_v29 = vmul.f32 %v5903_v31, %v5965_v27 }
 0x456   : > { %2788 = vperm.xlu1 %4775, %v2467_v38   ;;  %2791 = vperm.xlu0 %4774, %v2468_v19   ;;  %v2473_v19 = vmul.f32 %v6007_v15, %v5965_v27  ;;  %v6071_v38 = vpop.permute.xlu0 %2306 }
 0x45a   : > { %2794 = vperm.xlu1 %4775, %v2469_v54   ;;  %2797 = vperm.xlu0 %4774, %v2470_v2   ;;  %v2475_v54 = vmul.f32 %v6015_v8, %v5965_v27  ;;  %v2476_v2 = vmul.f32 %v5908_v34, %v5965_v27  ;;  %v6079_v31 = vpop.permute.xlu0 %2320 }
 0x45e   : > { %2800 = vperm.xlu1 %4775, %v2471_v62   ;;  %2803 = vperm.xlu0 %4774, %v2472_v29   ;;  %v2477_v62 = vmul.f32 %v6023_v17, %v5965_v27  ;;  %v2478_v29 = vmul.f32 %v5912_v56, %v5965_v27 }
 0x462   : > { %2806 = vperm.xlu1 %4775, %v2473_v19   ;;  %2809 = vperm.xlu0 %4774, %v2474_v25   ;;  %v2479_v25 = vmul.f32 %v6031_v49, %v5965_v27  ;;  %v6087_v19 = vpop.permute.xlu0 %2334 }
 0x466   : > { %2812 = vperm.xlu1 %4775, %v2475_v54   ;;  %2815 = vperm.xlu0 %4774, %v2476_v2   ;;  %v2481_v54 = vmul.f32 %v6039_v12, %v5965_v27  ;;  %v2482_v2 = vmul.f32 %v5920_v47, %v5965_v27  ;;  %v6095_v15 = vpop.permute.xlu0 %2348 }
 0x46a   : > { %2818 = vperm.xlu1 %4775, %v2477_v62   ;;  %2821 = vperm.xlu0 %4774, %v2478_v29   ;;  %v2483_v62 = vmul.f32 %v6047_v48, %v5965_v27  ;;  %v2484_v29 = vmul.f32 %v5924_v45, %v5965_v27  ;;  %v6105_v12 = vpop.permute.xlu0 %2362 }
 0x46e   : > { %2824 = vperm.xlu1 %4775, %v2479_v25   ;;  %2827 = vperm.xlu0 %4774, %v2480_v22   ;;  %v2485_v22 = vmul.f32 %v6055_v18, %v5965_v27  ;;  %v2486_v25 = vmul.f32 %v5928_v33, %v5965_v27  ;;  %v6111_v47 = vpop.permute.xlu0 %3780 }
 0x46f   : > { %6969 = vst [vmem:[#allocation33_spill] sm:$0xff] %v6111_v47 }
 0x472   : > { %2830 = vperm.xlu1 %4775, %v2481_v54   ;;  %2833 = vperm.xlu0 %4774, %v2482_v2   ;;  %v2487_v54 = vmul.f32 %v6063_v20, %v5965_v27  ;;  %v2488_v2 = vmul.f32 %v5932_v3, %v5965_v27  ;;  %v6117_v50 = vpop.permute.xlu0 %3792 }
 0x473   : > { %6970 = vst [vmem:[#allocation34_spill] sm:$0xff] %v6117_v50  ;;  %v2496_v50 = vmul.f32 %v5948_v30, %v5965_v27 }
 0x476   : > { %2836 = vperm.xlu1 %4775, %v2483_v62   ;;  %2839 = vperm.xlu0 %4774, %v2484_v29   ;;  %v2489_v62 = vmul.f32 %v6071_v38, %v5965_v27  ;;  %v2490_v29 = vmul.f32 %v5936_v10, %v5965_v27  ;;  %v1892_v47 = vpop.xlane.xlu0 %1891  ;;  %v2498_v10 = vmul.f32 %v5952_v58, %v5965_v27 }
 0x47a   : > { %2842 = vperm.xlu1 %4775, %v2485_v22   ;;  %2845 = vperm.xlu0 %4774, %v2486_v25   ;;  %v2491_v22 = vmul.f32 %v6079_v31, %v5965_v27  ;;  %v2492_v25 = vmul.f32 %v5940_v28, %v5965_v27 }
 0x47e   : > { %2848 = vperm.xlu1 %4775, %v2487_v54   ;;  %2851 = vperm.xlu0 %4774, %v2488_v2   ;;  %v2493_v54 = vmul.f32 %v6087_v19, %v5965_v27  ;;  %v2494_v2 = vmul.f32 %v5944_v13, %v5965_v27 }
 0x482   : > { %2854 = vperm.xlu1 %4775, %v2489_v62   ;;  %2857 = vperm.xlu0 %4774, %v2490_v29   ;;  %v2495_v62 = vmul.f32 %v6095_v15, %v5965_v27  ;;  %v1904_v29 = vadd.f32 %v5910_v51, %v1892_v47 }
 0x486   : > { %2860 = vperm.xlu1 %4775, %v2491_v22   ;;  %2863 = vperm.xlu0 %4774, %v2492_v25   ;;  %v2497_v22 = vmul.f32 %v6105_v12, %v5965_v27  ;;  %v6134_v25 = vmax.f32 %v1904_v29, 0.0 }
 0x488   : > { %v2500_v51 = vmul.f32 %v5778_v16, %v6134_v25  ;;  %v2502_v27 = vmul.f32 %v5780_v11, %v6134_v25  ;;  %v2504_v16 = vmul.f32 %v5782_v24, %v6134_v25  ;;  %v2505_v11 = vmul.f32 %v5922_v59, %v6134_v25 }
 0x489   : > { %v2507_v24 = vmul.f32 %v5926_v9, %v6134_v25  ;;  %v2510_v59 = vmul.f32 %v5814_v52, %v6134_v25  ;;  %v2512_v9 = vmul.f32 %v5823_v61, %v6134_v25  ;;  %v2513_v52 = vmul.f32 %v5938_v37, %v6134_v25 }
 0x48a   : > { %2866 = vperm.xlu1 %4775, %v2493_v54   ;;  %2869 = vperm.xlu0 %4774, %v2494_v2   ;;  %v2499_v54 = vmul.f32 %v5776_v1, %v6134_v25  ;;  %v2503_v1 = vmul.f32 %v5918_v41, %v6134_v25  ;;  %v2508_v41 = vmul.f32 %v5804_v63, %v6134_v25 }
 0x48b   : > { %v2511_v63 = vmul.f32 %v5934_v40, %v6134_v25  ;;  %v2515_v61 = vmul.f32 %v5942_v6, %v6134_v25  ;;  %v2516_v40 = vmul.f32 %v5839_v5, %v6134_v25  ;;  %v2518_v37 = vmul.f32 %v5841_v0, %v6134_v25 }
 0x48c   : > { %v2519_v5 = vmul.f32 %v5950_v44, %v6134_v25  ;;  %v2520_v6 = vmul.f32 %v5846_v7, %v6134_v25  ;;  %v2521_v0 = vmul.f32 %v5954_v4, %v6134_v25  ;;  %v2523_v7 = vmul.f32 %v5958_v55, %v6134_v25  ;;  %v6972_v44 = vld [vmem:[#allocation15_spill] sm:$0xff] }
 0x48d   : > { %v2526_v4 = vmul.f32 %v5871_v35, %v6134_v25  ;;  %v2527_v55 = vmul.f32 %v5967_v23, %v6134_v25  ;;  %v2529_v35 = vmul.f32 %v5975_v60, %v6134_v25  ;;  %v2531_v23 = vmul.f32 %v5983_v36, %v6134_v25 }
 0x48e   : > { %2872 = vperm.xlu1 %4775, %v2495_v62   ;;  %2875 = vperm.xlu0 %4774, %v2496_v50   ;;  %v2501_v50 = vmul.f32 %v5914_v26, %v6134_v25  ;;  %v2506_v26 = vmul.f32 %v5789_v32, %v6134_v25  ;;  %v2509_v32 = vmul.f32 %v5930_v43, %v6134_v25 }
 0x48f   : > { %v2514_v43 = vmul.f32 %v5837_v39, %v6134_v25  ;;  %v2517_v39 = vmul.f32 %v5946_v46, %v6134_v25  ;;  %v2522_v46 = vmul.f32 %v5849_v21, %v6134_v25  ;;  %v2525_v21 = vmul.f32 %v5962_v53, %v6134_v25  ;;  %v6974_v53 = vld [vmem:[#allocation22_spill] sm:$0xff] }
 0x490   : > { %v2533_v60 = vmul.f32 %v5991_v42, %v6134_v25  ;;  %v2540_v36 = vmul.f32 %v5908_v34, %v6134_v25  ;;  %v2547_v42 = vmul.f32 %v6047_v48, %v6134_v25  ;;  %v2548_v34 = vmul.f32 %v5924_v45, %v6134_v25 }
 0x491   : > { %v2542_v48 = vmul.f32 %v5912_v56, %v6134_v25  ;;  %v2556_v45 = vmul.f32 %v5940_v28, %v6134_v25  ;;  %v6979_v56 = vld [vmem:[#allocation24_spill] sm:$0xff]  ;;  %v2557_v28 = vmul.f32 %v6087_v19, %v6134_v25  ;;  %v2558_v19 = vmul.f32 %v5944_v13, %v6134_v25 }
 0x492   : > { %2878 = vperm.xlu1 %4775, %v2497_v22   ;;  %2881 = vperm.xlu0 %4774, %v2498_v10   ;;  %v2559_v13 = vmul.f32 %v6095_v15, %v6134_v25  ;;  %v2560_v15 = vmul.f32 %v5948_v30, %v6134_v25 }
 0x495   : > { %v6142_v47 = vpop.permute.xlu1 %2695  ;;  %v6144_v2 = vpop.permute.xlu0 %2692 }
 0x496   : > { %2884 = vperm.xlu1 %4775, %v2499_v54   ;;  %2887 = vperm.xlu0 %4774, %v2500_v51  }
 0x499   : > { %v6150_v62 = vpop.permute.xlu1 %2698  ;;  %v6152_v10 = vpop.permute.xlu0 %2701 }
 0x49a   : > { %2890 = vperm.xlu1 %4775, %v2501_v50   ;;  %2893 = vperm.xlu0 %4774, %v2502_v27  }
 0x49d   : > { %v6158_v29 = vpop.permute.xlu1 %2704  ;;  %v6160_v22 = vpop.permute.xlu0 %2707 }
 0x49e   : > { %2896 = vperm.xlu1 %4775, %v2503_v1   ;;  %2899 = vperm.xlu0 %4774, %v2504_v16  }
 0x4a1   : > { %v6166_v54 = vpop.permute.xlu1 %2710  ;;  %v6168_v51 = vpop.permute.xlu0 %2713 }
 0x4a2   : > { %2902 = vperm.xlu1 %4775, %v2505_v11   ;;  %2905 = vperm.xlu0 %4774, %v2506_v26  }
 0x4a5   : > { %v6174_v50 = vpop.permute.xlu1 %2716  ;;  %v6176_v27 = vpop.permute.xlu0 %2719 }
 0x4a6   : > { %2908 = vperm.xlu1 %4775, %v2507_v24   ;;  %2911 = vperm.xlu0 %4774, %v2508_v41  }
 0x4a9   : > { %v6182_v1 = vpop.permute.xlu1 %2722  ;;  %v6184_v16 = vpop.permute.xlu0 %2725 }
 0x4aa   : > { %2914 = vperm.xlu1 %4775, %v2509_v32   ;;  %2917 = vperm.xlu0 %4774, %v2510_v59  }
 0x4ad   : > { %v6190_v11 = vpop.permute.xlu1 %2728  ;;  %v6192_v26 = vpop.permute.xlu0 %2731 }
 0x4ae   : > { %2920 = vperm.xlu1 %4775, %v2511_v63   ;;  %2923 = vperm.xlu0 %4774, %v2512_v9  }
 0x4b1   : > { %v6198_v24 = vpop.permute.xlu1 %2734  ;;  %v6200_v41 = vpop.permute.xlu0 %2737 }
 0x4b2   : > { %2926 = vperm.xlu1 %4775, %v2513_v52   ;;  %2929 = vperm.xlu0 %4774, %v2514_v43  }
 0x4b5   : > { %v6206_v32 = vpop.permute.xlu1 %2740  ;;  %v6208_v59 = vpop.permute.xlu0 %2743 }
 0x4b6   : > { %2932 = vperm.xlu1 %4775, %v2515_v61   ;;  %2935 = vperm.xlu0 %4774, %v2516_v40  }
 0x4b9   : > { %v6214_v63 = vpop.permute.xlu1 %2746  ;;  %v6216_v9 = vpop.permute.xlu0 %2749 }
 0x4ba   : > { %2938 = vperm.xlu1 %4775, %v2517_v39   ;;  %2941 = vperm.xlu0 %4774, %v2518_v37   ;;  %v2524_v39 = vmul.f32 %v6972_v44, %v6134_v25 }
 0x4bd   : > { %v6222_v52 = vpop.permute.xlu1 %2752  ;;  %v6224_v43 = vpop.permute.xlu0 %2755 }
 0x4be   : > { %2944 = vperm.xlu1 %4775, %v2519_v5   ;;  %2947 = vperm.xlu0 %4774, %v2520_v6  }
 0x4c1   : > { %v6230_v61 = vpop.permute.xlu1 %2758  ;;  %v6232_v40 = vpop.permute.xlu0 %2761 }
 0x4c2   : > { %6971 = vst [vmem:[#allocation35_spill] sm:$0xff] %v6232_v40  ;;  %2950 = vperm.xlu1 %4775, %v2521_v0   ;;  %2953 = vperm.xlu0 %4774, %v2522_v46   ;;  %v6973_v46 = vld [vmem:[#allocation19_spill] sm:$0xff]  ;;  %v2530_v40 = vmul.f32 %v6974_v53, %v6134_v25  ;;  %v2539_v53 = vmul.f32 %v6015_v8, %v6134_v25 }
 0x4c3   : > { %v2528_v44 = vmul.f32 %v6973_v46, %v6134_v25  ;;  %v2532_v46 = vmul.f32 %v5899_v14, %v6134_v25  ;;  %v6976_v14 = vld [vmem:[#allocation23_spill] sm:$0xff]  ;;  %v2541_v8 = vmul.f32 %v6023_v17, %v6134_v25  ;;  %v2549_v17 = vmul.f32 %v6055_v18, %v6134_v25 }
 0x4c4   : > { %v2536_v18 = vmul.f32 %v6979_v56, %v6134_v25 }
 0x4c5   : > { %v6238_v37 = vpop.permute.xlu1 %2764  ;;  %v6240_v5 = vpop.permute.xlu0 %2767 }
 0x4c6   : > { %2956 = vperm.xlu1 %4775, %v2523_v7   ;;  %2959 = vperm.xlu0 %4774, %v2524_v39  }
 0x4c9   : > { %v6246_v6 = vpop.permute.xlu1 %2770  ;;  %v6248_v0 = vpop.permute.xlu0 %2773 }
 0x4ca   : > { %2962 = vperm.xlu1 %4775, %v2525_v21   ;;  %2965 = vperm.xlu0 %4774, %v2526_v4  }
 0x4cd   : > { %v6254_v7 = vpop.permute.xlu1 %2776  ;;  %v6256_v39 = vpop.permute.xlu0 %2779 }
 0x4ce   : > { %2968 = vperm.xlu1 %4775, %v2527_v55   ;;  %2971 = vperm.xlu0 %4774, %v2528_v44  }
 0x4d1   : > { %v6262_v21 = vpop.permute.xlu1 %2782  ;;  %v6264_v4 = vpop.permute.xlu0 %2785 }
 0x4d2   : > { %6975 = vst [vmem:[#allocation15_spill] sm:$0xff] %v6264_v4  ;;  %2974 = vperm.xlu1 %4775, %v2529_v35   ;;  %2977 = vperm.xlu0 %4774, %v2530_v40   ;;  %v2534_v4 = vmul.f32 %v6976_v14, %v6134_v25  ;;  %v2535_v14 = vmul.f32 %v5999_v57, %v6134_v25 }
 0x4d3   : > { %v2555_v57 = vmul.f32 %v6079_v31, %v6134_v25  ;;  %v2550_v31 = vmul.f32 %v5928_v33, %v6134_v25  ;;  %v2551_v33 = vmul.f32 %v6063_v20, %v6134_v25  ;;  %v2552_v20 = vmul.f32 %v5932_v3, %v6134_v25 }
 0x4d4   : > { %v6992_v3 = vlaneseq }
 0x4d5   : > { %v6270_v55 = vpop.permute.xlu1 %2788  ;;  %v6272_v44 = vpop.permute.xlu0 %2791 }
 0x4d6   : > { %2980 = vperm.xlu1 %4775, %v2531_v23   ;;  %2983 = vperm.xlu0 %4774, %v2532_v46  }
 0x4d9   : > { %v6278_v35 = vpop.permute.xlu1 %2794  ;;  %v6280_v40 = vpop.permute.xlu0 %2797 }
 0x4da   : > { %2986 = vperm.xlu1 %4775, %v2533_v60   ;;  %3004 = vperm.xlu0 %4774, %v2539_v53  }
 0x4dd   : > { %v6286_v23 = vpop.permute.xlu1 %2800  ;;  %v6288_v46 = vpop.permute.xlu0 %2803 }
 0x4de   : > { %3007 = vperm.xlu1 %4775, %v2540_v36   ;;  %2989 = vperm.xlu0 %4774, %v2534_v4  }
 0x4e1   : > { %v6294_v60 = vpop.permute.xlu1 %2806  ;;  %v6296_v53 = vpop.permute.xlu0 %2809 }
 0x4e2   : > { %6977 = vst [vmem:[#allocation19_spill] sm:$0xff] %v6296_v53  ;;  %3010 = vperm.xlu1 %4775, %v2541_v8   ;;  %3028 = vperm.xlu0 %4774, %v2547_v42   ;;  %v2543_v53 = vmul.f32 %v6031_v49, %v6134_v25  ;;  %v6982_v49 = vld [vmem:[#allocation31_spill] sm:$0xff] }
 0x4e3   : > { %v2537_v56 = vmul.f32 %v6982_v49, %v6134_v25 }
 0x4e5   : > { %v6302_v36 = vpop.permute.xlu1 %2812  ;;  %v6304_v4 = vpop.permute.xlu0 %2815 }
 0x4e6   : > { %3031 = vperm.xlu1 %4775, %v2548_v34   ;;  %2992 = vperm.xlu0 %4774, %v2535_v14  }
 0x4e9   : > { %v6310_v8 = vpop.permute.xlu1 %2818  ;;  %v6312_v42 = vpop.permute.xlu0 %2821 }
 0x4ea   : > { %3013 = vperm.xlu1 %4775, %v2542_v48   ;;  %3034 = vperm.xlu0 %4774, %v2549_v17  }
 0x4ed   : > { %v6318_v34 = vpop.permute.xlu1 %2824  ;;  %v6320_v14 = vpop.permute.xlu0 %2827 }
 0x4ee   : > { %6978 = vst [vmem:[#allocation22_spill] sm:$0xff] %v6320_v14  ;;  %3052 = vperm.xlu1 %4775, %v2555_v57   ;;  %3055 = vperm.xlu0 %4774, %v2556_v45   ;;  %v6987_v14 = vld [vmem:[#allocation32_spill] sm:$0xff] }
 0x4f1   : > { %v6326_v48 = vpop.permute.xlu1 %2830  ;;  %v6328_v17 = vpop.permute.xlu0 %2833 }
 0x4f2   : > { %6980 = vst [vmem:[#allocation23_spill] sm:$0xff] %v6326_v48  ;;  %6981 = vst [vmem:[#allocation24_spill] sm:$0xff] %v6328_v17  ;;  %2995 = vperm.xlu1 %4775, %v2536_v18   ;;  %3016 = vperm.xlu0 %4774, %v2543_v53   ;;  %v6983_v48 = vld [vmem:[#allocation26_spill] sm:$0xff] }
 0x4f3   : > { %v2544_v17 = vmul.f32 %v6983_v48, %v6134_v25  ;;  %v6986_v48 = vld [vmem:[#allocation25_spill] sm:$0xff] }
 0x4f4   : > { %v2538_v49 = vmul.f32 %v6986_v48, %v6134_v25 }
 0x4f5   : > { %v6334_v57 = vpop.permute.xlu1 %2836  ;;  %v6336_v45 = vpop.permute.xlu0 %2839 }
 0x4f6   : > { %3037 = vperm.xlu1 %4775, %v2550_v31   ;;  %3058 = vperm.xlu0 %4774, %v2557_v28  }
 0x4f9   : > { %v6342_v18 = vpop.permute.xlu1 %2842  ;;  %v6344_v53 = vpop.permute.xlu0 %2845 }
 0x4fa   : > { %6984 = vst [vmem:[#allocation31_spill] sm:$0xff] %v6344_v53  ;;  %2998 = vperm.xlu1 %4775, %v2537_v56   ;;  %3019 = vperm.xlu0 %4774, %v2544_v17   ;;  %v2545_v53 = vmul.f32 %v6987_v14, %v6134_v25  ;;  %v6990_v14 = vld [vmem:[#allocation27_spill] sm:$0xff] }
 0x4fb   : > { %v2546_v48 = vmul.f32 %v6990_v14, %v6134_v25 }
 0x4fd   : > { %v6350_v31 = vpop.permute.xlu1 %2848  ;;  %v6352_v28 = vpop.permute.xlu0 %2851 }
 0x4fe   : > { %6985 = vst [vmem:[#allocation26_spill] sm:$0xff] %v6352_v28  ;;  %3040 = vperm.xlu1 %4775, %v2551_v33   ;;  %3061 = vperm.xlu0 %4774, %v2558_v19  }
 0x501   : > { %v6358_v56 = vpop.permute.xlu1 %2854  ;;  %v6360_v17 = vpop.permute.xlu0 %2857 }
 0x502   : > { %6988 = vst [vmem:[#allocation25_spill] sm:$0xff] %v6358_v56  ;;  %6989 = vst [vmem:[#allocation32_spill] sm:$0xff] %v6360_v17  ;;  %3001 = vperm.xlu1 %4775, %v2538_v49   ;;  %3022 = vperm.xlu0 %4774, %v2545_v53   ;;  %v2553_v17 = vmul.f32 %v6071_v38, %v6134_v25  ;;  %v6379_v56 = vand.u32 127, %v6992_v3  ;;  %v6995_v38 = vld [vmem:[#allocation3_spill] sm:$0xff] }
 0x504   : > { %6993 = vst [vmem:[#allocation36_spill] sm:$0xff] %v6379_v56 }
 0x505   : > { %v6366_v33 = vpop.permute.xlu1 %2860  ;;  %v6368_v19 = vpop.permute.xlu0 %2863 }
 0x506   : > { %3043 = vperm.xlu1 %4775, %v2552_v20   ;;  %3064 = vperm.xlu0 %4774, %v2559_v13   ;;  %v6994_v20 = vld [vmem:[#allocation28_spill] sm:$0xff] }
 0x507   : > { %v2554_v13 = vmul.f32 %v6994_v20, %v6134_v25 }
 0x509   : > { %v6374_v49 = vpop.permute.xlu1 %2866  ;;  %v6376_v53 = vpop.permute.xlu0 %2869 }
 0x50a   : > { %6991 = vst [vmem:[#allocation27_spill] sm:$0xff] %v6374_v49  ;;  %3025 = vperm.xlu1 %4775, %v2546_v48   ;;  %3046 = vperm.xlu0 %4774, %v2553_v17   ;;  %v6391_v49 = vsub.s32 %v6379_v56, %v6995_v38  ;;  %v2561_v48 = vmul.f32 %v6105_v12, %v6134_v25 }
 0x50b   : > { %v2562_v17 = vmul.f32 %v5952_v58, %v6134_v25  ;;  %v6414_v25 = vld [vmem:[%s6899_s10] ss:$0 sm:$0xff] }
 0x50c   : > { %v3084_v20 = vrot.slane %v6142_v47, %v6391_v49  ;;  %6996 = vst [vmem:[#allocation28_spill] sm:$0xff] %v6414_v25 }
 0x50d   : > { %v6385_v28 = vpop.permute.xlu1 %2872  ;;  %v6387_v14 = vpop.permute.xlu0 %2875 }
 0x50e   : > { %3067 = vperm.xlu1 %4775, %v2560_v15   ;;  %3049 = vperm.xlu0 %4774, %v2554_v13   ;;  %v3080_v15 = vrot.slane %v6144_v2, %v6391_v49  ;;  %v3088_v13 = vrot.slane %v6150_v62, %v6391_v49  ;;  %v3092_v2 = vrot.slane %v6152_v10, %v6391_v49 }
 0x510   : > { %v3590_v47 = vsel %vm3589_vm10, %v3084_v20, %v3080_v15  ;;  %v3100_v20 = vrot.slane %v6160_v22, %v6391_v49  ;;  %v3104_v15 = vrot.slane %v6166_v54, %v6391_v49  ;;  %v3148_v22 = vrot.slane %v6208_v59, %v6391_v49 }
 0x511   : > { %v6397_v30 = vpop.permute.xlu1 %2878  ;;  %v6399_v3 = vpop.permute.xlu0 %2881  ;;  %v3592_v62 = vsel %vm3591_vm11, %v3088_v13, %v3590_v47  ;;  %v3112_v13 = vrot.slane %v6174_v50, %v6391_v49  ;;  %v3120_v47 = vrot.slane %v6182_v1, %v6391_v49  ;;  %v3152_v54 = vrot.slane %v6214_v63, %v6391_v49 }
 0x512   : > { %3070 = vperm.xlu1 %4775, %v2561_v48   ;;  %3073 = vperm.xlu0 %4774, %v2562_v17   ;;  %v3096_v48 = vrot.slane %v6158_v29, %v6391_v49  ;;  %v3594_v56 = vsel %vm3593_vm12, %v3092_v2, %v3592_v62  ;;  %v3116_v29 = vrot.slane %v6176_v27, %v6391_v49 }
 0x513   : > { %v3144_v2 = vrot.slane %v6206_v32, %v6391_v49  ;;  %v3108_v27 = vrot.slane %v6168_v51, %v6391_v49  ;;  %v3124_v32 = vrot.slane %v6184_v16, %v6391_v49  ;;  %v3128_v63 = vrot.slane %v6190_v11, %v6391_v49 }
 0x514   : > { %v3596_v10 = vsel %vm3595_vm13, %v3096_v48, %v3594_v56  ;;  %v3603_v1 = vsel %vm3589_vm10, %v3116_v29, %v3112_v13  ;;  %v3160_v13 = vrot.slane %v6222_v52, %v6391_v49  ;;  %v3176_v16 = vrot.slane %v6238_v37, %v6391_v49 }
 0x515   : > { %v6407_v12 = vpop.permute.xlu1 %2884  ;;  %v6409_v58 = vpop.permute.xlu0 %2887  ;;  %v3598_v50 = vsel %vm3597_vm14, %v3100_v20, %v3596_v10  ;;  %v3604_v48 = vsel %vm3591_vm11, %v3120_v47, %v3603_v1  ;;  %v3156_v20 = vrot.slane %v6216_v9, %v6391_v49  ;;  %v3184_v11 = vrot.slane %v6246_v6, %v6391_v49 }
 0x516   : > { %3796 = vbcast.lane.b32.xlu1 %v6414_v25, 288  ;;  %3800 = vbcast.lane.b32.xlu0 %v6414_v25, 296  ;;  %v3600_v59 = vsel %vm3599_vm15, %v3104_v15, %v3598_v50  ;;  %v3610_v25 = vsel %vm3589_vm10, %v3148_v22, %v3144_v2  ;;  %v3180_v15 = vrot.slane %v6240_v5, %v6391_v49 }
 0x517   : > { %v3611_v51 = vsel %vm3591_vm11, %v3152_v54, %v3610_v25  ;;  %v3605_v9 = vsel %vm3593_vm12, %v3124_v32, %v3604_v48  ;;  %v3132_v47 = vrot.slane %v6192_v26, %v6391_v49  ;;  %v3602_v25 = vsel %vm3601_vm1, %v3108_v27, %v3600_v59 }
 0x518   : > { %v3606_v52 = vsel %vm3595_vm13, %v3128_v63, %v3605_v9  ;;  %v3136_v37 = vrot.slane %v6198_v24, %v6391_v49  ;;  %v3612_v5 = vsel %vm3593_vm12, %v3156_v20, %v3611_v51  ;;  %v3164_v2 = vrot.slane %v6224_v43, %v6391_v49  ;;  %v6997_v63 = vld [vmem:[#allocation35_spill] sm:$0xff] }
 0x519   : > { %v6424_v17 = vpop.permute.xlu1 %2890  ;;  %v6426_v38 = vpop.permute.xlu0 %2893  ;;  %v3613_v6 = vsel %vm3595_vm13, %v3160_v13, %v3612_v5  ;;  %v3617_v54 = vsel %vm3589_vm10, %v3180_v15, %v3176_v16  ;;  %v3188_v26 = vrot.slane %v6248_v0, %v6391_v49  ;;  %v3168_v27 = vrot.slane %v6230_v61, %v6391_v49 }
 0x51a   : > { %v3618_v1 = vsel %vm3591_vm11, %v3184_v11, %v3617_v54  ;;  %v3192_v24 = vrot.slane %v6254_v7, %v6391_v49  ;;  %v6496_v32 = vsel %vm3724_vm2, %v3602_v25, 0.0  ;;  %v3607_v43 = vsel %vm3597_vm14, %v3132_v47, %v3606_v52 }
 0x51b   : > { %v3140_v59 = vrot.slane %v6200_v41, %v6391_v49  ;;  %v3208_v0 = vrot.slane %v6270_v55, %v6391_v49  ;;  %v3212_v48 = vrot.slane %v6272_v44, %v6391_v49  ;;  %v3614_v61 = vsel %vm3597_vm14, %v3164_v2, %v3613_v6 }
 0x51c   : > { %v3172_v20 = vrot.slane %v6997_v63, %v6391_v49  ;;  %v3216_v7 = vrot.slane %v6278_v35, %v6391_v49  ;;  %v3608_v13 = vsel %vm3599_vm15, %v3136_v37, %v3607_v43  ;;  %v3619_v16 = vsel %vm3593_vm12, %v3188_v26, %v3618_v1 }
 0x51d   : > { %v6444_v62 = vpop.permute.xlu1 %2896  ;;  %v6448_v56 = vpop.permute.xlu0 %2899  ;;  %v3196_v41 = vrot.slane %v6256_v39, %v6391_v49  ;;  %v3620_v11 = vsel %vm3595_vm13, %v3192_v24, %v3619_v16  ;;  %v3200_v9 = vrot.slane %v6262_v21, %v6391_v49  ;;  %v3615_v47 = vsel %vm3599_vm15, %v3168_v27, %v3614_v61 }
 0x51e   : > { %v3624_v25 = vsel %vm3589_vm10, %v3212_v48, %v3208_v0  ;;  %v3220_v52 = vrot.slane %v6280_v40, %v6391_v49  ;;  %v3240_v39 = vrot.slane %v6302_v36, %v6391_v49  ;;  %v3244_v37 = vrot.slane %v6304_v4, %v6391_v49 }
 0x51f   : > { %v3625_v5 = vsel %vm3591_vm11, %v3216_v7, %v3624_v25  ;;  %v3224_v21 = vrot.slane %v6286_v23, %v6391_v49  ;;  %v3248_v2 = vrot.slane %v6310_v8, %v6391_v49  ;;  %v3609_v6 = vsel %vm3601_vm1, %v3140_v59, %v3608_v13 }
 0x520   : > { %v3621_v54 = vsel %vm3597_vm14, %v3196_v41, %v3620_v11  ;;  %v3616_v4 = vsel %vm3601_vm1, %v3172_v20, %v3615_v47  ;;  %v3626_v24 = vsel %vm3593_vm12, %v3220_v52, %v3625_v5  ;;  %v3228_v43 = vrot.slane %v6288_v46, %v6391_v49  ;;  %v6999_v11 = vld [vmem:[#allocation19_spill] sm:$0xff]  ;;  %v7000_v47 = vld [vmem:[#allocation22_spill] sm:$0xff] }
 0x521   : > { %v6463_v10 = vpop.permute.xlu1 %2902  ;;  %v6472_v29 = vpop.permute.xlu0 %2905  ;;  %v3622_v8 = vsel %vm3599_vm15, %v3200_v9, %v3621_v54  ;;  %v3631_v59 = vsel %vm3589_vm10, %v3244_v37, %v3240_v39  ;;  %v3252_v0 = vrot.slane %v6312_v42, %v6391_v49  ;;  %v3627_v48 = vsel %vm3595_vm13, %v3224_v21, %v3626_v24  ;;  %v7001_v37 = vld [vmem:[#allocation23_spill] sm:$0xff] }
 0x522   : > { %v3232_v61 = vrot.slane %v6294_v60, %v6391_v49  ;;  %v3632_v63 = vsel %vm3591_vm11, %v3248_v2, %v3631_v59  ;;  %v3256_v20 = vrot.slane %v6318_v34, %v6391_v49  ;;  %v3276_v46 = vrot.slane %v6336_v45, %v6391_v49 }
 0x523   : > { %v3731_v34 = vsel %vm3724_vm2, %v3616_v4, 0.0  ;;  %v3280_v45 = vrot.slane %v6342_v18, %v6391_v49  ;;  %v3236_v9 = vrot.slane %v6999_v11, %v6391_v49  ;;  %v3260_v25 = vrot.slane %v7000_v47, %v6391_v49 }
 0x524   : > { %v3264_v5 = vrot.slane %v7001_v37, %v6391_v49  ;;  %v3340_v11 = vrot.slane %v6409_v58, %v6391_v49  ;;  %v7007_v37 = vld [vmem:[#allocation32_spill] sm:$0xff] }
 0x525   : > { %v2909_v22 = vpop.permute.xlu1 %2908  ;;  %v2912_v50 = vpop.permute.xlu0 %2911 }
 0x526   : > { %v3368_v55 = vrot.slane %v2909_v22, %v6391_v49  ;;  %v3372_v44 = vrot.slane %v2912_v50, %v6391_v49  ;;  %v6998_v50 = vld [vmem:[#allocation15_spill] sm:$0xff] }
 0x527   : > { %v3204_v27 = vrot.slane %v6998_v50, %v6391_v49  ;;  %v3288_v50 = vrot.slane %v6350_v31, %v6391_v49 }
 0x528   : > { %v3659_v40 = vsel %vm3589_vm10, %v3372_v44, %v3368_v55  ;;  %v3728_v55 = vsel %vm3724_vm2, %v3609_v6, 0.0  ;;  %v3628_v44 = vsel %vm3597_vm14, %v3228_v43, %v3627_v48  ;;  %v7002_v6 = vld [vmem:[#allocation31_spill] sm:$0xff] }
 0x529   : > { %v2915_v51 = vpop.permute.xlu1 %2914  ;;  %v2918_v15 = vpop.permute.xlu0 %2917  ;;  %v3629_v39 = vsel %vm3599_vm15, %v3232_v61, %v3628_v44  ;;  %v3284_v54 = vrot.slane %v7002_v6, %v6391_v49  ;;  %v7004_v43 = vld [vmem:[#allocation27_spill] sm:$0xff]  ;;  %v3320_v44 = vrot.slane %v6385_v28, %v6391_v49 }
 0x52a   : > { %v3376_v35 = vrot.slane %v2915_v51, %v6391_v49  ;;  %v3380_v36 = vrot.slane %v2918_v15, %v6391_v49  ;;  %v3272_v51 = vrot.slane %v6334_v57, %v6391_v49  ;;  %v3633_v57 = vsel %vm3593_vm12, %v3252_v0, %v3632_v63 }
 0x52b   : > { %v3623_v15 = vsel %vm3601_vm1, %v3204_v27, %v3622_v8  ;;  %v3304_v27 = vrot.slane %v6366_v33, %v6391_v49  ;;  %v7003_v8 = vld [vmem:[#allocation24_spill] sm:$0xff]  ;;  %v3312_v59 = vrot.slane %v7004_v43, %v6391_v49  ;;  %v3630_v48 = vsel %vm3601_vm1, %v3236_v9, %v3629_v39 }
 0x52c   : > { %v3660_v23 = vsel %vm3591_vm11, %v3376_v35, %v3659_v40  ;;  %v3634_v35 = vsel %vm3595_vm13, %v3256_v20, %v3633_v57  ;;  %v3638_v21 = vsel %vm3589_vm10, %v3276_v46, %v3272_v51  ;;  %v3268_v24 = vrot.slane %v7003_v8, %v6391_v49 }
 0x52d   : > { %v2921_v22 = vpop.permute.xlu1 %2920  ;;  %v2924_v26 = vpop.permute.xlu0 %2923  ;;  %v3661_v13 = vsel %vm3593_vm12, %v3380_v36, %v3660_v23  ;;  %v3639_v4 = vsel %vm3591_vm11, %v3280_v45, %v3638_v21  ;;  %v3308_v23 = vrot.slane %v6368_v19, %v6391_v49  ;;  %v3734_v33 = vsel %vm3724_vm2, %v3623_v15, 0.0 }
 0x52e   : > { %v3384_v1 = vrot.slane %v2921_v22, %v6391_v49  ;;  %v3388_v42 = vrot.slane %v2924_v26, %v6391_v49  ;;  %v3640_v20 = vsel %vm3593_vm12, %v3284_v54, %v3639_v4  ;;  %v3336_v15 = vrot.slane %v6407_v12, %v6391_v49 }
 0x52f   : > { %v3348_v54 = vrot.slane %v6426_v38, %v6391_v49  ;;  %v3332_v38 = vrot.slane %v6399_v3, %v6391_v49  ;;  %v3356_v43 = vrot.slane %v6448_v56, %v6391_v49  ;;  %v3360_v3 = vrot.slane %v6463_v10, %v6391_v49 }
 0x530   : > { %v3662_v41 = vsel %vm3595_vm13, %v3384_v1, %v3661_v13  ;;  %v3635_v1 = vsel %vm3597_vm14, %v3260_v25, %v3634_v35  ;;  %v3344_v35 = vrot.slane %v6424_v17, %v6391_v49  ;;  %v3737_v25 = vsel %vm3724_vm2, %v3630_v48, 0.0 }
 0x531   : > { %v2927_v7 = vpop.permute.xlu1 %2926  ;;  %v2930_v16 = vpop.permute.xlu0 %2929  ;;  %v3663_v18 = vsel %vm3597_vm14, %v3388_v42, %v3662_v41  ;;  %v3636_v63 = vsel %vm3599_vm15, %v3264_v5, %v3635_v1  ;;  %v3641_v42 = vsel %vm3595_vm13, %v3288_v50, %v3640_v20  ;;  %v3300_v5 = vrot.slane %v7007_v37, %v6391_v49 }
 0x532   : > { %v3392_v60 = vrot.slane %v2927_v7, %v6391_v49  ;;  %v3396_v2 = vrot.slane %v2930_v16, %v6391_v49  ;;  %v7005_v7 = vld [vmem:[#allocation26_spill] sm:$0xff]  ;;  %v3645_v16 = vsel %vm3589_vm10, %v3308_v23, %v3304_v27  ;;  %v3637_v39 = vsel %vm3601_vm1, %v3268_v24, %v3636_v63 }
 0x533   : > { %v3292_v51 = vrot.slane %v7005_v7, %v6391_v49  ;;  %v3324_v17 = vrot.slane %v6387_v14, %v6391_v49  ;;  %v3652_v6 = vsel %vm3589_vm10, %v3340_v11, %v3336_v15  ;;  %v3352_v14 = vrot.slane %v6444_v62, %v6391_v49 }
 0x534   : > { %v3664_v26 = vsel %vm3599_vm15, %v3392_v60, %v3663_v18  ;;  %v7006_v60 = vld [vmem:[#allocation25_spill] sm:$0xff]  ;;  %v3364_v20 = vrot.slane %v6472_v29, %v6391_v49 }
 0x535   : > { %v2933_v52 = vpop.permute.xlu1 %2932  ;;  %3729 = vadd.xlane.f32.xlu0 %v3728_v55  ;;  %v2936_v22 = vpop.permute.xlu0 %2935  ;;  %v3665_v19 = vsel %vm3601_vm1, %v3396_v2, %v3664_v26  ;;  %v3296_v55 = vrot.slane %v7006_v60, %v6391_v49  ;;  %v3653_v26 = vsel %vm3591_vm11, %v3344_v35, %v3652_v6 }
 0x536   : > { %v3400_v40 = vrot.slane %v2933_v52, %v6391_v49  ;;  %v3404_v36 = vrot.slane %v2936_v22, %v6391_v49  ;;  %v3752_v45 = vsel %vm3724_vm2, %v3665_v19, 0.0  ;;  %v3642_v52 = vsel %vm3597_vm14, %v3292_v51, %v3641_v42 }
 0x537   : > { %v3643_v2 = vsel %vm3599_vm15, %v3296_v55, %v3642_v52  ;;  %v3328_v22 = vrot.slane %v6397_v30, %v6391_v49  ;;  %v3740_v30 = vsel %vm3724_vm2, %v3637_v39, 0.0  ;;  %v3654_v62 = vsel %vm3593_vm12, %v3348_v54, %v3653_v26 }
 0x538   : > { %v3666_v46 = vsel %vm3589_vm10, %v3404_v36, %v3400_v40  ;;  %v3644_v24 = vsel %vm3601_vm1, %v3300_v5, %v3643_v2 }
 0x539   : > { %v2939_v0 = vpop.permute.xlu1 %2938  ;;  %3732 = vadd.xlane.f32.xlu0 %v3731_v34  ;;  %v2942_v31 = vpop.permute.xlu0 %2941  ;;  %v3646_v34 = vsel %vm3591_vm11, %v3312_v59, %v3645_v16  ;;  %v3743_v63 = vsel %vm3724_vm2, %v3644_v24, 0.0 }
 0x53a   : > { %v3408_v61 = vrot.slane %v2939_v0, %v6391_v49  ;;  %3726 = vadd.xlane.f32.xlu1 %v6496_v32  ;;  %v3412_v13 = vrot.slane %v2942_v31, %v6391_v49  ;;  %v3316_v32 = vrot.slane %v6376_v53, %v6391_v49 }
 0x53c   : > { %v3667_v41 = vsel %vm3591_vm11, %v3408_v61, %v3666_v46  ;;  %v3647_v12 = vsel %vm3593_vm12, %v3316_v32, %v3646_v34  ;;  %v3655_v61 = vsel %vm3595_vm13, %v3352_v14, %v3654_v62 }
 0x53d   : > { %v2945_v57 = vpop.permute.xlu1 %2944  ;;  %3735 = vadd.xlane.f32.xlu0 %v3734_v33  ;;  %v2948_v9 = vpop.permute.xlu0 %2947  ;;  %v3668_v47 = vsel %vm3593_vm12, %v3412_v13, %v3667_v41  ;;  %v3648_v21 = vsel %vm3595_vm13, %v3320_v44, %v3647_v12  ;;  %v3656_v56 = vsel %vm3597_vm14, %v3356_v43, %v3655_v61 }
 0x53e   : > { %v3416_v53 = vrot.slane %v2945_v57, %v6391_v49  ;;  %3753 = vadd.xlane.f32.xlu1 %v3752_v45  ;;  %v3420_v28 = vrot.slane %v2948_v9, %v6391_v49  ;;  %v3649_v23 = vsel %vm3597_vm14, %v3324_v17, %v3648_v21  ;;  %v3657_v42 = vsel %vm3599_vm15, %v3360_v3, %v3656_v56 }
 0x53f   : > { %v3650_v48 = vsel %vm3599_vm15, %v3328_v22, %v3649_v23  ;;  %v3658_v55 = vsel %vm3601_vm1, %v3364_v20, %v3657_v42  ;;  %v7008_v22 = vld [vmem:[#allocation28_spill] sm:$0xff] }
 0x540   : > { %v3669_v58 = vsel %vm3595_vm13, %v3416_v53, %v3668_v47  ;;  %v3651_v46 = vsel %vm3601_vm1, %v3332_v38, %v3650_v48  ;;  %v3749_v15 = vsel %vm3724_vm2, %v3658_v55, 0.0 }
 0x541   : > { %v2951_v18 = vpop.permute.xlu1 %2950  ;;  %3738 = vadd.xlane.f32.xlu0 %v3737_v25  ;;  %v2954_v36 = vpop.permute.xlu0 %2953  ;;  %v3670_v4 = vsel %vm3597_vm14, %v3420_v28, %v3669_v58  ;;  %v3746_v41 = vsel %vm3724_vm2, %v3651_v46, 0.0 }
 0x542   : > { %v3424_v40 = vrot.slane %v2951_v18, %v6391_v49  ;;  %v3428_v50 = vrot.slane %v2954_v36, %v6391_v49 }
 0x544   : > { %v3671_v27 = vsel %vm3599_vm15, %v3424_v40, %v3670_v4 }
 0x545   : > { %v2957_v1 = vpop.permute.xlu1 %2956  ;;  %v3672_v8 = vsel %vm3601_vm1, %v3428_v50, %v3671_v27  ;;  %3741 = vadd.xlane.f32.xlu0 %v3740_v30  ;;  %v2960_v59 = vpop.permute.xlu0 %2959 }
 0x546   : > { %v3755_v0 = vsel %vm3724_vm2, %v3672_v8, 0.0  ;;  %v3432_v31 = vrot.slane %v2957_v1, %v6391_v49  ;;  %v3436_v33 = vrot.slane %v2960_v59, %v6391_v49 }
 0x547   : > { %3756 = vadd.xlane.f32.xlu1 %v3755_v0 }
 0x548   : > { %v3673_v10 = vsel %vm3589_vm10, %v3436_v33, %v3432_v31 }
 0x549   : > { %v2963_v19 = vpop.permute.xlu1 %2962  ;;  %3744 = vadd.xlane.f32.xlu0 %v3743_v63  ;;  %v2966_v51 = vpop.permute.xlu0 %2965 }
 0x54a   : > { %v3440_v7 = vrot.slane %v2963_v19, %v6391_v49  ;;  %v3444_v13 = vrot.slane %v2966_v51, %v6391_v49 }
 0x54c   : > { %v3674_v16 = vsel %vm3591_vm11, %v3440_v7, %v3673_v10 }
 0x54d   : > { %v2969_v32 = vpop.permute.xlu1 %2968  ;;  %3747 = vadd.xlane.f32.xlu0 %v3746_v41  ;;  %v2972_v29 = vpop.permute.xlu0 %2971  ;;  %v3675_v34 = vsel %vm3593_vm12, %v3444_v13, %v3674_v16 }
 0x54e   : > { %v3448_v60 = vrot.slane %v2969_v32, %v6391_v49  ;;  %v3452_v44 = vrot.slane %v2972_v29, %v6391_v49 }
 0x550   : > { %v3676_v57 = vsel %vm3595_vm13, %v3448_v60, %v3675_v34 }
 0x551   : > { %v2975_v45 = vpop.permute.xlu1 %2974  ;;  %3750 = vadd.xlane.f32.xlu0 %v3749_v15  ;;  %v2978_v53 = vpop.permute.xlu0 %2977  ;;  %v3677_v9 = vsel %vm3597_vm14, %v3452_v44, %v3676_v57 }
 0x552   : > { %v3456_v11 = vrot.slane %v2975_v45, %v6391_v49  ;;  %v3460_v35 = vrot.slane %v2978_v53, %v6391_v49 }
 0x554   : > { %v3678_v47 = vsel %vm3599_vm15, %v3456_v11, %v3677_v9 }
 0x555   : > { %v2981_v28 = vpop.permute.xlu1 %2980  ;;  %v3679_v25 = vsel %vm3601_vm1, %v3460_v35, %v3678_v47  ;;  %v2984_v52 = vpop.permute.xlu0 %2983 }
 0x556   : > { %v3758_v12 = vsel %vm3724_vm2, %v3679_v25, 0.0  ;;  %v3464_v27 = vrot.slane %v2981_v28, %v6391_v49  ;;  %v3468_v23 = vrot.slane %v2984_v52, %v6391_v49 }
 0x557   : > { %3759 = vadd.xlane.f32.xlu1 %v3758_v12 }
 0x558   : > { %v3680_v43 = vsel %vm3589_vm10, %v3468_v23, %v3464_v27 }
 0x559   : > { %v2987_v58 = vpop.permute.xlu1 %2986  ;;  %v3005_v39 = vpop.permute.xlu0 %3004 }
 0x55a   : > { %v3472_v1 = vrot.slane %v2987_v58, %v6391_v49  ;;  %v3496_v46 = vrot.slane %v3005_v39, %v6391_v49 }
 0x55c   : > { %v3681_v48 = vsel %vm3591_vm11, %v3472_v1, %v3680_v43 }
 0x55d   : > { %v3008_v37 = vpop.permute.xlu1 %3007  ;;  %v2990_v5 = vpop.permute.xlu0 %2989 }
 0x55e   : > { %v3476_v8 = vrot.slane %v2990_v5, %v6391_v49  ;;  %v3500_v19 = vrot.slane %v3008_v37, %v6391_v49 }
 0x560   : > { %v3682_v3 = vsel %vm3593_vm12, %v3476_v8, %v3681_v48  ;;  %v3687_v41 = vsel %vm3589_vm10, %v3500_v19, %v3496_v46 }
 0x561   : > { %v3011_v21 = vpop.permute.xlu1 %3010  ;;  %v3029_v17 = vpop.permute.xlu0 %3028 }
 0x562   : > { %v3504_v7 = vrot.slane %v3011_v21, %v6391_v49  ;;  %v3528_v57 = vrot.slane %v3029_v17, %v6391_v49 }
 0x564   : > { %v3688_v34 = vsel %vm3591_vm11, %v3504_v7, %v3687_v41 }
 0x565   : > { %v3032_v18 = vpop.permute.xlu1 %3031  ;;  %v2993_v2 = vpop.permute.xlu0 %2992 }
 0x566   : > { %v3480_v24 = vrot.slane %v2993_v2, %v6391_v49  ;;  %v3532_v60 = vrot.slane %v3032_v18, %v6391_v49 }
 0x567   : > { %3808 = vbcast.lane.b32.xlu0 %v7008_v22, 312 }
 0x568   : > { %v3683_v31 = vsel %vm3595_vm13, %v3480_v24, %v3682_v3  ;;  %v3694_v35 = vsel %vm3589_vm10, %v3532_v60, %v3528_v57 }
 0x569   : > { %v3014_v6 = vpop.permute.xlu1 %3013  ;;  %v3035_v54 = vpop.permute.xlu0 %3034 }
 0x56a   : > { %v3508_v10 = vrot.slane %v3014_v6, %v6391_v49  ;;  %v3536_v15 = vrot.slane %v3035_v54, %v6391_v49 }
 0x56c   : > { %v3689_v45 = vsel %vm3593_vm12, %v3508_v10, %v3688_v34  ;;  %v3695_v5 = vsel %vm3591_vm11, %v3536_v15, %v3694_v35 }
 0x56d   : > { %v6692_v40 = vpop.permute.xlu1 %3052  ;;  %v6694_v36 = vpop.permute.xlu0 %3055 }
 0x56e   : > { %v3560_v12 = vrot.slane %v6692_v40, %v6391_v49  ;;  %v3564_v58 = vrot.slane %v6694_v36, %v6391_v49 }
 0x571   : > { %v2996_v26 = vpop.permute.xlu1 %2995  ;;  %v3017_v14 = vpop.permute.xlu0 %3016 }
 0x572   : > { %v3484_v59 = vrot.slane %v2996_v26, %v6391_v49  ;;  %v3512_v42 = vrot.slane %v3017_v14, %v6391_v49 }
 0x574   : > { %v3684_v63 = vsel %vm3597_vm14, %v3484_v59, %v3683_v31  ;;  %v3690_v11 = vsel %vm3595_vm13, %v3512_v42, %v3689_v45 }
 0x575   : > { %v3038_v4 = vpop.permute.xlu1 %3037  ;;  %v6696_v50 = vpop.permute.xlu0 %3058 }
 0x576   : > { %v3540_v53 = vrot.slane %v3038_v4, %v6391_v49  ;;  %v3568_v21 = vrot.slane %v6696_v50, %v6391_v49  ;;  %v3701_v4 = vsel %vm3589_vm10, %v3564_v58, %v3560_v12 }
 0x578   : > { %v3696_v2 = vsel %vm3593_vm12, %v3540_v53, %v3695_v5  ;;  %v3702_v23 = vsel %vm3591_vm11, %v3568_v21, %v3701_v4 }
 0x579   : > { %v2999_v30 = vpop.permute.xlu1 %2998  ;;  %v3020_v38 = vpop.permute.xlu0 %3019 }
 0x57a   : > { %v3488_v61 = vrot.slane %v2999_v30, %v6391_v49  ;;  %v3516_v29 = vrot.slane %v3020_v38, %v6391_v49 }
 0x57c   : > { %v3685_v51 = vsel %vm3599_vm15, %v3488_v61, %v3684_v63  ;;  %v3691_v47 = vsel %vm3597_vm14, %v3516_v29, %v3690_v11 }
 0x57d   : > { %v3041_v62 = vpop.permute.xlu1 %3040  ;;  %v3062_v0 = vpop.permute.xlu0 %3061 }
 0x57e   : > { %v3544_v28 = vrot.slane %v3041_v62, %v6391_v49  ;;  %v3572_v6 = vrot.slane %v3062_v0, %v6391_v49 }
 0x580   : > { %v3697_v36 = vsel %vm3595_vm13, %v3544_v28, %v3696_v2  ;;  %v3703_v1 = vsel %vm3593_vm12, %v3572_v6, %v3702_v23 }
 0x581   : > { %v3002_v33 = vpop.permute.xlu1 %3001  ;;  %v3023_v20 = vpop.permute.xlu0 %3022 }
 0x582   : > { %v3492_v56 = vrot.slane %v3002_v33, %v6391_v49  ;;  %v3520_v44 = vrot.slane %v3023_v20, %v6391_v49  ;;  %v7009_v20 = vld [vmem:[#allocation29_spill] sm:$0xff] }
 0x584   : > { %v3686_v13 = vsel %vm3601_vm1, %v3492_v56, %v3685_v51  ;;  %v3692_v37 = vsel %vm3599_vm15, %v3520_v44, %v3691_v47 }
 0x585   : > { %v3044_v16 = vpop.permute.xlu1 %3043  ;;  %v3761_v32 = vsel %vm3724_vm2, %v3686_v13, 0.0  ;;  %v3065_v55 = vpop.permute.xlu0 %3064  ;;  %v7010_v13 = vld [vmem:[#allocation30_spill] sm:$0xff] }
 0x586   : > { %3762 = vadd.xlane.f32.xlu1 %v3761_v32  ;;  %v3548_v39 = vrot.slane %v3044_v16, %v6391_v49  ;;  %v3576_v26 = vrot.slane %v3065_v55, %v6391_v49  ;;  %v7011_v16 = vld [vmem:[#allocation33_spill] sm:$0xff] }
 0x588   : > { %v3698_v50 = vsel %vm3597_vm14, %v3548_v39, %v3697_v36  ;;  %v3704_v62 = vsel %vm3595_vm13, %v3576_v26, %v3703_v1 }
 0x589   : > { %v3026_v9 = vpop.permute.xlu1 %3025  ;;  %v3047_v52 = vpop.permute.xlu0 %3046 }
 0x58a   : > { %v3524_v25 = vrot.slane %v3026_v9, %v6391_v49  ;;  %v3552_v17 = vrot.slane %v3047_v52, %v6391_v49 }
 0x58c   : > { %v3693_v18 = vsel %vm3601_vm1, %v3524_v25, %v3692_v37  ;;  %v3699_v38 = vsel %vm3599_vm15, %v3552_v17, %v3698_v50 }
 0x58d   : > { %v3068_v54 = vpop.permute.xlu1 %3067  ;;  %v3764_v40 = vsel %vm3724_vm2, %v3693_v18, 0.0  ;;  %v3050_v14 = vpop.permute.xlu0 %3049 }
 0x58e   : > { %3765 = vadd.xlane.f32.xlu1 %v3764_v40  ;;  %v3580_v30 = vrot.slane %v3068_v54, %v6391_v49  ;;  %v3556_v27 = vrot.slane %v3050_v14, %v6391_v49 }
 0x590   : > { %v3700_v24 = vsel %vm3601_vm1, %v3556_v27, %v3699_v38  ;;  %v3705_v48 = vsel %vm3597_vm14, %v3580_v30, %v3704_v62 }
 0x591   : > { %v3071_v8 = vpop.permute.xlu1 %3070  ;;  %v3074_v59 = vpop.permute.xlu0 %3073  ;;  %v3767_v0 = vsel %vm3724_vm2, %v3700_v24, 0.0 }
 0x592   : > { %v3584_v43 = vrot.slane %v3071_v8, %v6391_v49  ;;  %v3588_v61 = vrot.slane %v3074_v59, %v6391_v49  ;;  %3768 = vadd.xlane.f32.xlu1 %v3767_v0 }
 0x594   : > { %v3706_v3 = vsel %vm3599_vm15, %v3584_v43, %v3705_v48 }
 0x595   : > { %v3707_v31 = vsel %vm3601_vm1, %v3588_v61, %v3706_v3  ;;  %v6766_v19 = vpop.permute.xlu0 %3800  ;;  %v6768_v63 = vpop.permute.xlu1 %3796 }
 0x596   : > { %v3770_v33 = vsel %vm3724_vm2, %v3707_v31, 0.0 }
 0x597   : > { %3771 = vadd.xlane.f32.xlu1 %v3770_v33 }
 0x5a8   : > { %3804 = vbcast.lane.b32.xlu1 %v7008_v22, 304  ;;  %v7012_v22 = vld [vmem:[#allocation34_spill] sm:$0xff] }
 0x5c2   : > { %v3730_v56 = vpop.xlane.xlu0 %3729 }
 0x5c3   : > { %v3819_v7 = vadd.f32 %v7009_v20, %v3730_v56 }
 0x5c5   : > { %v4299_v51 = vmul.f32 -1.442695, %v3819_v7 }
 0x5c6   : > { %v3733_v46 = vpop.xlane.xlu0 %3732 }
 0x5c7   : > { %v3727_v10 = vpop.xlane.xlu1 %3726  ;;  %4776 = vpow2.f32 %v4299_v51  ;;  %v3820_v42 = vadd.f32 %v7010_v13, %v3733_v46 }
 0x5c8   : > { %v3818_v32 = vadd.f32 %v7011_v16, %v3727_v10 }
 0x5c9   : > { %v4300_v41 = vmul.f32 -1.442695, %v3820_v42 }
 0x5ca   : > { %v4298_v60 = vmul.f32 -1.442695, %v3818_v32  ;;  %v3736_v29 = vpop.xlane.xlu0 %3735 }
 0x5cb   : > { %v3754_v55 = vpop.xlane.xlu1 %3753  ;;  %4778 = vpow2.f32 %v4300_v41  ;;  %v3821_v34 = vadd.f32 %v7012_v22, %v3736_v29 }
 0x5cc   : > { %v3827_v44 = vadd.f32 %v7009_v20, %v3754_v55  ;;  %4780 = vpow2.f32 %v4298_v60 }
 0x5cd   : > { %v4301_v57 = vmul.f32 -1.442695, %v3821_v34 }
 0x5ce   : > { %v4307_v45 = vmul.f32 -1.442695, %v3827_v44  ;;  %v3739_v15 = vpop.xlane.xlu0 %3738 }
 0x5cf   : > { %4782 = vpow2.f32 %v4301_v57  ;;  %v3822_v11 = vadd.f32 %v6768_v63, %v3739_v15 }
 0x5d0   : > { %4784 = vpow2.f32 %v4307_v45 }
 0x5d1   : > { %v4777_v53 = vpop.eup %4776  ;;  %v4302_v9 = vmul.f32 -1.442695, %v3822_v11 }
 0x5d2   : > { %v3883_v35 = vadd.f32 1.0, %v4777_v53  ;;  %v3742_v47 = vpop.xlane.xlu0 %3741 }
 0x5d3   : > { %4786 = vpow2.f32 %v4302_v9  ;;  %v3823_v28 = vadd.f32 %v6766_v19, %v3742_v47 }
 0x5d4   : > { %v3757_v25 = vpop.xlane.xlu1 %3756  ;;  %4788 = vrcp.f32 %v3883_v35 }
 0x5d5   : > { %v3828_v52 = vadd.f32 %v7010_v13, %v3757_v25  ;;  %v4779_v12 = vpop.eup %4778  ;;  %v4303_v58 = vmul.f32 -1.442695, %v3823_v28 }
 0x5d6   : > { %v4781_v39 = vpop.eup %4780  ;;  %v6778_v5 = vpop.xlane.xlu0 %3744  ;;  %v3884_v17 = vadd.f32 1.0, %v4779_v12 }
 0x5d7   : > { %v4308_v37 = vmul.f32 -1.442695, %v3828_v52  ;;  %v3882_v21 = vadd.f32 1.0, %v4781_v39  ;;  %4790 = vpow2.f32 %v4303_v58 }
 0x5d9   : > { %v4783_v18 = vpop.eup %4782  ;;  %4792 = vrcp.f32 %v3882_v21 }
 0x5da   : > { %v4785_v2 = vpop.eup %4784  ;;  %4794 = vpow2.f32 %v4308_v37  ;;  %v3748_v6 = vpop.xlane.xlu0 %3747  ;;  %v3885_v36 = vadd.f32 1.0, %v4783_v18 }
 0x5db   : > { %v3891_v54 = vadd.f32 1.0, %v4785_v2  ;;  %4796 = vrcp.f32 %v3884_v17 }
 0x5dd   : > { %v4787_v40 = vpop.eup %4786  ;;  %4798 = vrcp.f32 %v3891_v54 }
 0x5de   : > { %v4789_v26 = vpop.eup %4788  ;;  %v3751_v14 = vpop.xlane.xlu0 %3750  ;;  %4800 = vrcp.f32 %v3885_v36  ;;  %v3886_v30 = vadd.f32 1.0, %v4787_v40 }
 0x5df   : > { %v3826_v4 = vadd.f32 %v7011_v16, %v3751_v14  ;;  %3950 = vperm.xlu0 %4774, %v4789_v26  }
 0x5e1   : > { %v4791_v50 = vpop.eup %4790  ;;  %v4306_v27 = vmul.f32 -1.442695, %v3826_v4 }
 0x5e2   : > { %v3887_v8 = vadd.f32 1.0, %v4791_v50  ;;  %v3809_v60 = vpop.permute.xlu0 %3808 }
 0x5e3   : > { %v4793_v23 = vpop.eup %4792  ;;  %4802 = vpow2.f32 %v4306_v27 }
 0x5e4   : > { %v3760_v38 = vpop.xlane.xlu1 %3759  ;;  %v4795_v1 = vpop.eup %4794  ;;  %3947 = vperm.xlu1 %4775, %v4793_v23   ;;  %4804 = vrcp.f32 %v3886_v30 }
 0x5e5   : > { %v3829_v24 = vadd.f32 %v7012_v22, %v3760_v38  ;;  %v3892_v62 = vadd.f32 1.0, %v4795_v1  ;;  %v4797_v43 = vpop.eup %4796  ;;  %v3825_v22 = vadd.f32 %v3809_v60, %v3748_v6  ;;  %v7013_v38 = vld [vmem:[#allocation36_spill] sm:$0xff] }
 0x5e6   : > { %v4005_v1 = vadd.s32 4294967280, %v7013_v38 }
 0x5e7   : > { %v4309_v59 = vmul.f32 -1.442695, %v3829_v24  ;;  %v4799_v0 = vpop.eup %4798  ;;  %4806 = vrcp.f32 %v3892_v62  ;;  %v4305_v45 = vmul.f32 -1.442695, %v3825_v22  ;;  %v4012_v24 = vadd.s32 4294967272, %v7013_v38 }
 0x5e8   : > { %4808 = vrcp.f32 %v3887_v8  ;;  %3974 = vperm.xlu0 %4774, %v4799_v0   ;;  %3953 = vperm.xlu1 %4775, %v4797_v43   ;;  %v4801_v48 = vpop.eup %4800  ;;  %v3998_v8 = vadd.s32 4294967288, %v7013_v38  ;;  %v4019_v62 = vadd.s32 4294967264, %v7013_v38  ;;  %v4026_v43 = vadd.s32 4294967256, %v7013_v38 }
 0x5e9   : > { %4810 = vpow2.f32 %v4309_v59 }
 0x5ec   : > { %3956 = vperm.xlu1 %4775, %v4801_v48   ;;  %v7014_v48 = vld [vmem:[#allocation3_spill] sm:$0xff] }
 0x5ed   : > { %v4803_v61 = vpop.eup %4802 }
 0x5ee   : > { %v3890_v3 = vadd.f32 1.0, %v4803_v61  ;;  %v4805_v31 = vpop.eup %4804  ;;  %v4008_v61 = vsub.s32 %v4005_v1, %v7014_v48 }
 0x5f0   : > { %4812 = vrcp.f32 %v3890_v3  ;;  %3959 = vperm.xlu1 %4775, %v4805_v31   ;;  %v4033_v3 = vadd.s32 4294967248, %v7013_v38  ;;  %v4001_v31 = vsub.s32 %v3998_v8, %v7014_v48  ;;  %v7018_v8 = vld [vmem:[#allocation7_spill] sm:$0xff] }
 0x5f1   : > { %v4807_v33 = vpop.eup %4806 }
 0x5f2   : > { %v4809_v56 = vpop.eup %4808  ;;  %3977 = vperm.xlu0 %4774, %v4807_v33   ;;  %v4015_v33 = vsub.s32 %v4012_v24, %v7014_v48 }
 0x5f3   : > { %v4811_v20 = vpop.eup %4810 }
 0x5f4   : > { %v3893_v7 = vadd.f32 1.0, %v4811_v20  ;;  %3962 = vperm.xlu1 %4775, %v4809_v56   ;;  %v4022_v56 = vsub.s32 %v4019_v62, %v7014_v48  ;;  %v7019_v62 = vld [vmem:[#allocation8_spill] sm:$0xff] }
 0x5f6   : > { %4814 = vrcp.f32 %v3893_v7  ;;  %v4040_v7 = vadd.s32 4294967240, %v7013_v38  ;;  %v7017_v38 = vld [vmem:[#allocation6_spill] sm:$0xff] }
 0x5fa   : > { %v4813_v51 = vpop.eup %4812 }
 0x5fb   : > { %3971 = vperm.xlu1 %4775, %v4813_v51  }
 0x600   : > { %v4815_v46 = vpop.eup %4814 }
 0x601   : > { %3980 = vperm.xlu0 %4774, %v4815_v46   ;;  %v4029_v46 = vsub.s32 %v4026_v43, %v7014_v48 }
 0x613   : > { %v3763_v10 = vpop.xlane.xlu1 %3762 }
 0x614   : > { %v3830_v13 = vadd.f32 %v6768_v63, %v3763_v10 }
 0x616   : > { %v4310_v42 = vmul.f32 -1.442695, %v3830_v13 }
 0x618   : > { %4816 = vpow2.f32 %v4310_v42 }
 0x61b   : > { %v3766_v16 = vpop.xlane.xlu1 %3765 }
 0x61c   : > { %v3831_v32 = vadd.f32 %v6766_v19, %v3766_v16  ;;  %v4036_v16 = vsub.s32 %v4033_v3, %v7014_v48  ;;  %v7022_v3 = vld [vmem:[#allocation10_spill] sm:$0xff] }
 0x61e   : > { %v4311_v41 = vmul.f32 -1.442695, %v3831_v32 }
 0x61f   : > { %v3769_v29 = vpop.xlane.xlu1 %3768 }
 0x620   : > { %4818 = vpow2.f32 %v4311_v41 }
 0x622   : > { %v4817_v55 = vpop.eup %4816 }
 0x623   : > { %v3894_v34 = vadd.f32 1.0, %v4817_v55 }
 0x624   : > { %v3772_v44 = vpop.xlane.xlu1 %3771 }
 0x625   : > { %4820 = vrcp.f32 %v3894_v34  ;;  %v3833_v57 = vadd.f32 %v3809_v60, %v3772_v44  ;;  %v6802_v34 = vsub.s32 %v4040_v7, %v7014_v48  ;;  %v7021_v48 = vld [vmem:[#allocation11_spill] sm:$0xff] }
 0x626   : > { %4822 = vpow2.f32 %v4305_v45 }
 0x627   : > { %v4313_v15 = vmul.f32 -1.442695, %v3833_v57 }
 0x628   : > { %v3805_v11 = vpop.permute.xlu1 %3804 }
 0x629   : > { %v3824_v63 = vadd.f32 %v3805_v11, %v6778_v5  ;;  %v3832_v53 = vadd.f32 %v3805_v11, %v3769_v29  ;;  %4824 = vpow2.f32 %v4313_v15 }
 0x62a   : > { %v4819_v9 = vpop.eup %4818 }
 0x62b   : > { %v3895_v35 = vadd.f32 1.0, %v4819_v9  ;;  %v4304_v19 = vmul.f32 -1.442695, %v3824_v63  ;;  %v4312_v47 = vmul.f32 -1.442695, %v3832_v53 }
 0x62d   : > { %4826 = vrcp.f32 %v3895_v35 }
 0x62e   : > { %4828 = vpow2.f32 %v4304_v19 }
 0x62f   : > { %v4821_v28 = vpop.eup %4820  ;;  %4830 = vpow2.f32 %v4312_v47 }
 0x630   : > { %3983 = vperm.xlu0 %4774, %v4821_v28   ;;  %v4823_v25 = vpop.eup %4822 }
 0x631   : > { %v3889_v21 = vadd.f32 1.0, %v4823_v25 }
 0x633   : > { %v4825_v52 = vpop.eup %4824 }
 0x634   : > { %v3897_v17 = vadd.f32 1.0, %v4825_v52 }
 0x637   : > { %v4827_v12 = vpop.eup %4826 }
 0x638   : > { %v4829_v58 = vpop.eup %4828  ;;  %3986 = vperm.xlu0 %4774, %v4827_v12  }
 0x639   : > { %v4831_v39 = vpop.eup %4830  ;;  %v3888_v37 = vadd.f32 1.0, %v4829_v58 }
 0x63a   : > { %v3896_v5 = vadd.f32 1.0, %v4831_v39 }
 0x63b   : > { %4832 = vrcp.f32 %v3888_v37 }
 0x63c   : > { %4834 = vrcp.f32 %v3896_v5 }
 0x63d   : > { %4836 = vrcp.f32 %v3889_v21  ;;  %v4116_v21 = vld [vmem:[%s4959_s21] sm:$0xff] }
 0x63e   : > { %4838 = vrcp.f32 %v3897_v17  ;;  %v4117_v17 = vld [vmem:[%s4959_s21 + $0x8] sm:$0xff] }
 0x645   : > { %v4833_v18 = vpop.eup %4832 }
 0x646   : > { %v4835_v2 = vpop.eup %4834  ;;  %3965 = vperm.xlu1 %4775, %v4833_v18  }
 0x647   : > { %3989 = vperm.xlu0 %4774, %v4835_v2   ;;  %v4837_v6 = vpop.eup %4836  ;;  %v4118_v2 = vld [vmem:[%s4959_s21 + $0x10] sm:$0xff] }
 0x648   : > { %v4839_v54 = vpop.eup %4838 }
 0x64a   : > { %3968 = vperm.xlu1 %4775, %v4837_v6   ;;  %v4119_v6 = vld [vmem:[%s4959_s21 + $0x18] sm:$0xff] }
 0x64b   : > { %3992 = vperm.xlu0 %4774, %v4839_v54   ;;  %v4120_v54 = vld [vmem:[%s4959_s21 + $0x20] sm:$0xff] }
 0x65e   : > { %v3951_v26 = vpop.permute.xlu0 %3950 }
 0x65f   : > { %v4002_v32 = vrot.slane %v3951_v26, %v4001_v31  ;;  %v4121_v26 = vld [vmem:[%s4959_s21 + $0x28] sm:$0xff] }
 0x663   : > { %v3948_v40 = vpop.permute.xlu1 %3947 }
 0x664   : > { %v3997_v51 = vrot.slane %v3948_v40, %v6391_v49 }
 0x667   : > { %v3954_v36 = vpop.permute.xlu1 %3953  ;;  %v3975_v4 = vpop.permute.xlu0 %3974 }
 0x668   : > { %v4009_v13 = vrot.slane %v3954_v36, %v4008_v61  ;;  %v4054_v42 = vrot.slane %v3975_v4, %v4001_v31  ;;  %v4123_v4 = vld [vmem:[%s4959_s21 + $0x38] sm:$0xff] }
 0x66b   : > { %v3957_v14 = vpop.permute.xlu1 %3956 }
 0x66c   : > { %v4016_v41 = vrot.slane %v3957_v14, %v4015_v33  ;;  %v4122_v14 = vld [vmem:[%s4959_s21 + $0x30] sm:$0xff] }
 0x66f   : > { %v3960_v50 = vpop.permute.xlu1 %3959 }
 0x670   : > { %v4023_v60 = vrot.slane %v3960_v50, %v4022_v56  ;;  %v7015_v50 = vld [vmem:[#allocation5_spill] sm:$0xff] }
 0x671   : > { %v3978_v30 = vpop.permute.xlu0 %3977 }
 0x672   : > { %v4059_v44 = vrot.slane %v3978_v30, %v4008_v61 }
 0x673   : > { %v3963_v27 = vpop.permute.xlu1 %3962 }
 0x674   : > { %v4030_v57 = vrot.slane %v3963_v27, %v4029_v46  ;;  %v7016_v27 = vld [vmem:[#allocation4_spill] sm:$0xff] }
 0x67a   : > { %v3972_v59 = vpop.permute.xlu1 %3971 }
 0x67b   : > { %v4050_v20 = vrot.slane %v3972_v59, %v6391_v49  ;;  %v4004_v49 = vsel %vm4003_vm3, %v4002_v32, %v3997_v51  ;;  %v7020_v59 = vld [vmem:[#allocation9_spill] sm:$0xff] }
 0x67c   : > { %v4011_v11 = vsel %vm4010_vm4, %v4009_v13, %v4004_v49  ;;  %v4125_v49 = vld [vmem:[%s4959_s21 + $0x48] sm:$0xff] }
 0x67d   : > { %v4055_v29 = vsel %vm4003_vm3, %v4054_v42, %v4050_v20  ;;  %v4018_v9 = vsel %vm4017_vm5, %v4016_v41, %v4011_v11  ;;  %v4129_v11 = vld [vmem:[%s4959_s21 + $0x68] sm:$0xff] }
 0x67e   : > { %v4060_v35 = vsel %vm4010_vm4, %v4059_v44, %v4055_v29  ;;  %v4025_v47 = vsel %vm4024_vm6, %v4023_v60, %v4018_v9  ;;  %v4126_v44 = vld [vmem:[%s4959_s21 + $0x50] sm:$0xff] }
 0x67f   : > { %v4032_v52 = vsel %vm4031_vm7, %v4030_v57, %v4025_v47  ;;  %v4127_v57 = vld [vmem:[%s4959_s21 + $0x58] sm:$0xff]  ;;  %v7023_v9 = vld [vmem:[#allocation13_spill] sm:$0xff] }
 0x680   : > { %v3981_v23 = vpop.permute.xlu0 %3980 }
 0x681   : > { %v4064_v55 = vrot.slane %v3981_v23, %v4015_v33 }
 0x683   : > { %v4065_v28 = vsel %vm4017_vm5, %v4064_v55, %v4060_v35 }
 0x6af   : > { %v3984_v0 = vpop.permute.xlu0 %3983 }
 0x6b0   : > { %v4069_v45 = vrot.slane %v3984_v0, %v4022_v56 }
 0x6b2   : > { %v4070_v12 = vsel %vm4024_vm6, %v4069_v45, %v4065_v28  ;;  %v4128_v45 = vld [vmem:[%s4959_s21 + $0x60] sm:$0xff]  ;;  %v7025_v28 = vld [vmem:[#allocation14_spill] sm:$0xff] }
 0x6b7   : > { %v3987_v10 = vpop.permute.xlu0 %3986 }
 0x6b8   : > { %v4074_v63 = vrot.slane %v3987_v10, %v4029_v46 }
 0x6ba   : > { %v4075_v37 = vsel %vm4031_vm7, %v4074_v63, %v4070_v12  ;;  %v4130_v63 = vld [vmem:[%s4959_s21 + $0x70] sm:$0xff] }
 0x6c5   : > { %v3966_v22 = vpop.permute.xlu1 %3965 }
 0x6c6   : > { %v3990_v15 = vpop.permute.xlu0 %3989  ;;  %v4037_v53 = vrot.slane %v3966_v22, %v4036_v16 }
 0x6c7   : > { %v4079_v19 = vrot.slane %v3990_v15, %v4036_v16 }
 0x6c8   : > { %v4039_v5 = vsel %vm4038_vm8, %v4037_v53, %v4032_v52  ;;  %v4131_v53 = vld [vmem:[%s4959_s21 + $0x78] sm:$0xff]  ;;  %v7026_v52 = vld [vmem:[#allocation16_spill] sm:$0xff] }
 0x6c9   : > { %v3969_v25 = vpop.permute.xlu1 %3968  ;;  %v4080_v18 = vsel %vm4038_vm8, %v4079_v19, %v4075_v37  ;;  %v7024_v19 = vld [vmem:[#allocation12_spill] sm:$0xff]  ;;  %v7028_v37 = vld [vmem:[#allocation18_spill] sm:$0xff] }
 0x6ca   : > { %v4044_v58 = vrot.slane %v3969_v25, %v6802_v34  ;;  %v3993_v39 = vpop.permute.xlu0 %3992 }
 0x6cb   : > { %v4084_v36 = vrot.slane %v3993_v39, %v6802_v34  ;;  %v4124_v34 = vld [vmem:[%s4959_s21 + $0x40] sm:$0xff] }
 0x6cc   : > { %v4046_v40 = vsel %vm4045_vm9, %v4044_v58, %v4039_v5  ;;  %v7027_v58 = vld [vmem:[#allocation17_spill] sm:$0xff] }
 0x6cd   : > { %v4100_v30 = vmul.f32 %v4046_v40, %v7015_v50  ;;  %v4101_v23 = vmul.f32 %v4046_v40, %v7016_v27  ;;  %v4102_v1 = vmul.f32 %v4046_v40, %v7017_v38  ;;  %v4103_v24 = vmul.f32 %v4046_v40, %v7018_v8 }
 0x6ce   : > { %v4104_v43 = vmul.f32 %v4046_v40, %v7019_v62  ;;  %v4105_v0 = vmul.f32 %v4046_v40, %v7020_v59  ;;  %v4106_v61 = vmul.f32 %v4046_v40, %v7021_v48  ;;  %v4107_v31 = vmul.f32 %v4046_v40, %v7022_v3 }
 0x6cf   : > { %v4132_v33 = vadd.f32 %v4116_v21, %v4100_v30  ;;  %v4133_v56 = vadd.f32 %v4117_v17, %v4101_v23  ;;  %v4134_v20 = vadd.f32 %v4118_v2, %v4102_v1  ;;  %v4135_v7 = vadd.f32 %v4119_v6, %v4103_v24  ;;  %v7029_v21 = vld [vmem:[#allocation21_spill] sm:$0xff] }
 0x6d0   : > { %v4136_v51 = vadd.f32 %v4120_v54, %v4104_v43  ;;  %v4137_v46 = vadd.f32 %v4121_v26, %v4105_v0  ;;  %v4138_v10 = vadd.f32 %v4122_v14, %v4106_v61  ;;  %v4139_v13 = vadd.f32 %v4123_v4, %v4107_v31 }
 0x6d1   : > { %v4148_v42 = vmax.f32 %v4132_v33, 0.0  ;;  %v4149_v16 = vmax.f32 %v4133_v56, 0.0  ;;  %v4150_v32 = vmax.f32 %v4134_v20, 0.0  ;;  %v4151_v41 = vmax.f32 %v4135_v7, 0.0 }
 0x6d2   : > { %v4152_v60 = vmax.f32 %v4136_v51, 0.0  ;;  %v4153_v29 = vmax.f32 %v4137_v46, 0.0  ;;  %v4154_v55 = vmax.f32 %v4138_v10, 0.0  ;;  %v4155_v22 = vmax.f32 %v4139_v13, 0.0 }
 0x6d3   : > { %4164 = vst.msk [vmem:[%s6835_s24] sm:$0xff] %vm421_vm0, %v4148_v42  ;;  %4165 = vst.msk [vmem:[%s6835_s24 + $0x8] sm:$0xff] %vm421_vm0, %v4149_v16  ;;  %v4085_v15 = vsel %vm4045_vm9, %v4084_v36, %v4080_v18  ;;  %v7030_v18 = vld [vmem:[#allocation20_spill] sm:$0xff] }
 0x6d4   : > { %4166 = vst.msk [vmem:[%s6835_s24 + $0x10] sm:$0xff] %vm421_vm0, %v4150_v32  ;;  %4167 = vst.msk [vmem:[%s6835_s24 + $0x18] sm:$0xff] %vm421_vm0, %v4151_v41  ;;  %v4108_v35 = vmul.f32 %v4085_v15, %v7023_v9  ;;  %v4109_v47 = vmul.f32 %v4085_v15, %v7024_v19  ;;  %v4110_v25 = vmul.f32 %v4085_v15, %v7025_v28 }
 0x6d5   : > { %4168 = vst.msk [vmem:[%s6835_s24 + $0x20] sm:$0xff] %vm421_vm0, %v4152_v60  ;;  %4169 = vst.msk [vmem:[%s6835_s24 + $0x28] sm:$0xff] %vm421_vm0, %v4153_v29  ;;  %v4111_v12 = vmul.f32 %v4085_v15, %v7026_v52  ;;  %v4112_v39 = vmul.f32 %v4085_v15, %v7027_v58  ;;  %v4113_v5 = vmul.f32 %v4085_v15, %v7028_v37 }
 0x6d6   : > { %4170 = vst.msk [vmem:[%s6835_s24 + $0x30] sm:$0xff] %vm421_vm0, %v4154_v55  ;;  %4171 = vst.msk [vmem:[%s6835_s24 + $0x38] sm:$0xff] %vm421_vm0, %v4155_v22  ;;  %v4114_v17 = vmul.f32 %v4085_v15, %v7029_v21  ;;  %v4115_v2 = vmul.f32 %v4085_v15, %v7030_v18  ;;  %v4140_v6 = vadd.f32 %v4124_v34, %v4108_v35 }
 0x6d7   : > { %v4141_v54 = vadd.f32 %v4125_v49, %v4109_v47  ;;  %v4142_v40 = vadd.f32 %v4126_v44, %v4110_v25  ;;  %v4143_v36 = vadd.f32 %v4127_v57, %v4111_v12  ;;  %v4144_v26 = vadd.f32 %v4128_v45, %v4112_v39 }
 0x6d8   : > { %v4145_v14 = vadd.f32 %v4129_v11, %v4113_v5  ;;  %v4146_v4 = vadd.f32 %v4130_v63, %v4114_v17  ;;  %v4147_v50 = vadd.f32 %v4131_v53, %v4115_v2  ;;  %v4156_v30 = vmax.f32 %v4140_v6, 0.0 }
 0x6d9   : > { %v4157_v27 = vmax.f32 %v4141_v54, 0.0  ;;  %v4158_v23 = vmax.f32 %v4142_v40, 0.0  ;;  %v4159_v38 = vmax.f32 %v4143_v36, 0.0  ;;  %v4160_v1 = vmax.f32 %v4144_v26, 0.0 }
 0x6da   : > { %v4161_v8 = vmax.f32 %v4145_v14, 0.0  ;;  %v4162_v24 = vmax.f32 %v4146_v4, 0.0  ;;  %v4163_v62 = vmax.f32 %v4147_v50, 0.0  ;;  %4172 = vst.msk [vmem:[%s6835_s24 + $0x40] sm:$0xff] %vm421_vm0, %v4156_v30 }
 0x6db   : > { %4173 = vst.msk [vmem:[%s6835_s24 + $0x48] sm:$0xff] %vm421_vm0, %v4157_v27  ;;  %4174 = vst.msk [vmem:[%s6835_s24 + $0x50] sm:$0xff] %vm421_vm0, %v4158_v23 }
 0x6dc   : > { %4175 = vst.msk [vmem:[%s6835_s24 + $0x58] sm:$0xff] %vm421_vm0, %v4159_v38  ;;  %4176 = vst.msk [vmem:[%s6835_s24 + $0x60] sm:$0xff] %vm421_vm0, %v4160_v1 }
 0x6dd   : > { %4177 = vst.msk [vmem:[%s6835_s24 + $0x68] sm:$0xff] %vm421_vm0, %v4161_v8  ;;  %4178 = vst.msk [vmem:[%s6835_s24 + $0x70] sm:$0xff] %vm421_vm0, %v4162_v24 }
 0x6de   : > { %4179 = vst.msk [vmem:[%s6835_s24 + $0x78] sm:$0xff] %vm421_vm0, %v4163_v62 }
 0x6df PF: > { %s21_s17 = sadd.s32 1, %s4847_s17  }
 0x6e0   : > { %p18_p4 = scmp.ge.s32.totalorder %s21_s17, 4  }
 0x6e2   :  { %20 = sbr.rel (!%p18_p4) target bundleno = 1 (0x1), region = 97 }

</bundles_post_ra>
